<compile_context>
chip_gen: v5e
topology: v5e:2x2
jax: 0.10.0
libtpu: 0.0.40
codegen_flags: <defaults>
</compile_context>

<pallas_src>
import jax
import jax.numpy as jnp
from jax.experimental import pallas as pl
from jax.experimental.pallas import tpu as pltpu

_PW = 8  # zero-pad width along W: one full sublane tile, so the concat stays tile-aligned


def _pad_hw(x):
    """Zero-pad a (H, W, C) value to (H + 2, W + 2*_PW, C) inside the kernel (no HBM pass)."""
    H, W, C = x.shape
    zc = jnp.zeros((H, _PW, C), x.dtype)
    x = jnp.concatenate([zc, x, zc], axis=1)       # W halo: tile-aligned sublane concat
    zr = jnp.zeros((1, W + 2 * _PW, C), x.dtype)
    return jnp.concatenate([zr, x, zr], axis=0)    # H halo: outer-dim concat (cheap)


def _conv3x3(xp, H, W, C, w_ref):
    """3x3 'same' conv as ONE MXU matmul: im2col to (H*W, 9*C), dot with (9*C, Cout)."""
    cols = []
    for kh in range(3):
        for kw in range(3):
            c0 = _PW + kw - 1
            cols.append(xp[kh:kh + H, c0:c0 + W, :].reshape(H * W, C))
    patch = jnp.concatenate(cols, axis=-1)         # (H*W, 9*C): taps folded into K
    return jnp.dot(patch, w_ref[...], preferred_element_type=jnp.float32)


def _double_conv_kernel(x_ref, w1_ref, b1_ref, w2_ref, b2_ref, o_ref):
    # x_ref : (1, H, W, Cin)    one batch element, NHWC
    # w1_ref: (9*Cin,  Cmid)    conv1 weights with BN1 scale folded in
    # b1_ref: (1, Cmid)         BN1 shift
    # w2_ref: (9*Cmid, Cout)    conv2 weights with BN2 scale folded in
    # b2_ref: (1, Cout)         BN2 shift
    # o_ref : (1, H, W, Cout)
    H, W = o_ref.shape[1], o_ref.shape[2]
    Cin = x_ref.shape[3]
    Cmid = b1_ref.shape[1]
    Cout = o_ref.shape[3]

    # ---- stage 1: conv3x3 + BN shift + ReLU ----
    xp = _pad_hw(x_ref[0].astype(jnp.float32))
    h = _conv3x3(xp, H, W, Cin, w1_ref)            # (H*W, Cmid), f32 accumulation
    h = jnp.maximum(h + b1_ref[...], 0.0)

    # ---- stage 2: intermediate stays on-chip; conv3x3 + BN shift + ReLU ----
    hp = _pad_hw(h.reshape(H, W, Cmid))
    y = _conv3x3(hp, H, W, Cmid, w2_ref)           # (H*W, Cout), f32 accumulation
    y = jnp.maximum(y + b2_ref[...], 0.0)

    o_ref[...] = y.reshape(1, H, W, Cout).astype(o_ref.dtype)


def double_conv_nhwc(x_nhwc, params, eps=1e-5):
    """Fused DoubleConv forward on NHWC input: (N, H, W, Cin) -> (N, H, W, Cout)."""
    N, H, W, Cin = x_nhwc.shape
    Cmid = params["w1"].shape[0]
    Cout = params["w2"].shape[0]

    def fold(w_oihw, gamma, beta, mean, var):
        # eval-mode BN: fold scale into the conv weights, keep shift for the epilogue
        scale = gamma / jnp.sqrt(var + eps)
        shift = beta - mean * scale
        w_hwio = jnp.transpose(w_oihw, (2, 3, 1, 0))          # OIHW -> HWIO
        w_hwio = w_hwio * scale[None, None, None, :]
        kh, kw, cin, cout = w_hwio.shape
        w2d = w_hwio.reshape(kh * kw * cin, cout)             # im2col weight slab (9*Cin, Cout)
        return w2d.astype(jnp.float32), shift.reshape(1, -1).astype(jnp.float32)

    w1f, b1f = fold(params["w1"], params["bn1_gamma"], params["bn1_beta"],
                    params["bn1_mean"], params["bn1_var"])
    w2f, b2f = fold(params["w2"], params["bn2_gamma"], params["bn2_beta"],
                    params["bn2_mean"], params["bn2_var"])

    return pl.pallas_call(
        _double_conv_kernel,
        out_shape=jax.ShapeDtypeStruct((N, H, W, Cout), x_nhwc.dtype),
        grid_spec=pltpu.PrefetchScalarGridSpec(
            num_scalar_prefetch=0,
            grid=(N,),
            in_specs=[
                pl.BlockSpec((1, H, W, Cin), lambda n: (n, 0, 0, 0)),
                pl.BlockSpec((9 * Cin, Cmid), lambda n: (0, 0)),
                pl.BlockSpec((1, Cmid), lambda n: (0, 0)),
                pl.BlockSpec((9 * Cmid, Cout), lambda n: (0, 0)),
                pl.BlockSpec((1, Cout), lambda n: (0, 0)),
            ],
            out_specs=pl.BlockSpec((1, H, W, Cout), lambda n: (n, 0, 0, 0)),
        ),
        compiler_params=pltpu.CompilerParams(
            dimension_semantics=("parallel",),        # shard batch across TCs (v7x megacore)
            vmem_limit_bytes=48 * 1024 * 1024,        # > 16/32 MiB defaults, < v7x 64 MiB physical
        ),
    )(x_nhwc, w1f, b1f, w2f, b2f)


def double_conv(x_nchw, params):
    """PyTorch-parity wrapper: NCHW in / NCHW out.

    In a full NHWC network call double_conv_nhwc directly and skip these two
    relayout passes (per perf review).
    """
    x = jnp.transpose(x_nchw, (0, 2, 3, 1))           # NCHW -> NHWC
    y = double_conv_nhwc(x, params)
    return jnp.transpose(y, (0, 3, 1, 2))             # NHWC -> NCHW


def init_params(key, in_channels, out_channels, mid_channels=None):
    if not mid_channels:
        mid_channels = out_channels
    k1, k2, k3, k4 = jax.random.split(key, 4)
    params = {
        # Conv weights in PyTorch OIHW layout, bias=False
        "w1": 0.1 * jax.random.normal(k1, (mid_channels, in_channels, 3, 3), jnp.float32),
        "w2": 0.1 * jax.random.normal(k2, (out_channels, mid_channels, 3, 3), jnp.float32),
        # BatchNorm2d parameters (deterministic, non-trivial)
        "bn1_gamma": 1.0 + 0.05 * jax.random.normal(k3, (mid_channels,), jnp.float32),
        "bn1_beta": 0.02 * jnp.arange(mid_channels, dtype=jnp.float32),
        "bn1_mean": jnp.zeros((mid_channels,), jnp.float32),
        "bn1_var": jnp.ones((mid_channels,), jnp.float32),
        "bn2_gamma": 1.0 + 0.05 * jax.random.normal(k4, (out_channels,), jnp.float32),
        "bn2_beta": 0.02 * jnp.arange(out_channels, dtype=jnp.float32),
        "bn2_mean": jnp.zeros((out_channels,), jnp.float32),
        "bn2_var": jnp.ones((out_channels,), jnp.float32),
    }
    return params


def _reference_double_conv(x_nchw, params, eps=1e-5):
    """Pure-JAX reference (eval-mode BN), for correctness checking."""
    def conv_bn_relu(x, w, gamma, beta, mean, var):
        y = jax.lax.conv_general_dilated(
            x, w, window_strides=(1, 1), padding="SAME",
            dimension_numbers=("NCHW", "OIHW", "NCHW"),
            precision=jax.lax.Precision.HIGHEST)
        s = gamma / jnp.sqrt(var + eps)
        b = beta - mean * s
        return jnp.maximum(y * s[None, :, None, None] + b[None, :, None, None], 0.0)

    x = conv_bn_relu(x_nchw, params["w1"], params["bn1_gamma"], params["bn1_beta"],
                     params["bn1_mean"], params["bn1_var"])
    return conv_bn_relu(x, params["w2"], params["bn2_gamma"], params["bn2_beta"],
                        params["bn2_mean"], params["bn2_var"])


if __name__ == "__main__":
    key = jax.random.PRNGKey(0)
    kx, kp = jax.random.split(key)

    N, Cin, H, W = 2, 4, 16, 16
    Cout = 8

    x = jax.random.normal(kx, (N, Cin, H, W), jnp.float32)   # NCHW like PyTorch
    params = init_params(kp, Cin, Cout)

    y = double_conv(x, params)
    y = jax.block_until_ready(y)

    assert y.shape == (N, Cout, H, W), y.shape
    assert bool(jnp.all(y >= 0.0))                           # ReLU output is non-negative

    y_ref = _reference_double_conv(x, params)
    max_err = float(jnp.max(jnp.abs(y - y_ref)))
    assert max_err < 2e-2, max_err

    print("KERNEL_OK")
</pallas_src>

<mosaic_0001>
module attributes {stable_mosaic.version = 11 : i64} {
  func.func @_double_conv_kernel(%arg0: i32, %arg1: memref<1x16x16x4xf32, #tpu.memory_space<vmem>>, %arg2: memref<36x8xf32, #tpu.memory_space<vmem>>, %arg3: memref<1x8xf32, #tpu.memory_space<vmem>>, %arg4: memref<72x8xf32, #tpu.memory_space<vmem>>, %arg5: memref<1x8xf32, #tpu.memory_space<vmem>>, %arg6: memref<1x16x16x8xf32, #tpu.memory_space<vmem>>) attributes {dimension_semantics = [#tpu.dimension_semantics<parallel>], iteration_bounds = array<i64: 2>, scalar_prefetch = 0 : i64, scratch_operands = 0 : i64, tpu.core_type = #tpu.core_type<tc>, window_params = [{transform_indices = @transform_0, window_bounds = array<i64: 1, 16, 16, 4>}, {pipeline_mode = #tpu.pipeline_mode<synchronous>, transform_indices = @transform_1, window_bounds = array<i64: 36, 8>}, {pipeline_mode = #tpu.pipeline_mode<synchronous>, transform_indices = @transform_2, window_bounds = array<i64: 1, 8>}, {pipeline_mode = #tpu.pipeline_mode<synchronous>, transform_indices = @transform_3, window_bounds = array<i64: 72, 8>}, {pipeline_mode = #tpu.pipeline_mode<synchronous>, transform_indices = @transform_4, window_bounds = array<i64: 1, 8>}, {transform_indices = @transform_5, window_bounds = array<i64: 1, 16, 16, 8>}]} {
    %c0 = arith.constant 0 : index
    %c0_0 = arith.constant 0 : index
    %c0_1 = arith.constant 0 : index
    %c0_2 = arith.constant 0 : index
    %0 = vector.load %arg1[%c0, %c0_0, %c0_1, %c0_2] : memref<1x16x16x4xf32, #tpu.memory_space<vmem>>, vector<1x16x16x4xf32>
    %1 = vector.shape_cast %0 : vector<1x16x16x4xf32> to vector<16x16x4xf32>
    %cst = arith.constant 0.000000e+00 : f32
    %2 = vector.broadcast %cst : f32 to vector<16x8x4xf32>
    %3 = tpu.concatenate %2, %1, %2 in 1 : vector<16x8x4xf32>, vector<16x16x4xf32>, vector<16x8x4xf32> -> vector<16x32x4xf32>
    %cst_3 = arith.constant 0.000000e+00 : f32
    %4 = vector.broadcast %cst_3 : f32 to vector<1x32x4xf32>
    %5 = tpu.concatenate %4, %3, %4 in 0 : vector<1x32x4xf32>, vector<16x32x4xf32>, vector<1x32x4xf32> -> vector<18x32x4xf32>
    %6 = vector.extract_strided_slice %5 {offsets = [0, 7, 0], sizes = [16, 16, 4], strides = [1, 1, 1]} : vector<18x32x4xf32> to vector<16x16x4xf32>
    %7 = vector.shape_cast %6 : vector<16x16x4xf32> to vector<256x4xf32>
    %8 = vector.extract_strided_slice %5 {offsets = [0, 8, 0], sizes = [16, 16, 4], strides = [1, 1, 1]} : vector<18x32x4xf32> to vector<16x16x4xf32>
    %9 = vector.shape_cast %8 : vector<16x16x4xf32> to vector<256x4xf32>
    %10 = vector.extract_strided_slice %5 {offsets = [0, 9, 0], sizes = [16, 16, 4], strides = [1, 1, 1]} : vector<18x32x4xf32> to vector<16x16x4xf32>
    %11 = vector.shape_cast %10 : vector<16x16x4xf32> to vector<256x4xf32>
    %12 = vector.extract_strided_slice %5 {offsets = [1, 7, 0], sizes = [16, 16, 4], strides = [1, 1, 1]} : vector<18x32x4xf32> to vector<16x16x4xf32>
    %13 = vector.shape_cast %12 : vector<16x16x4xf32> to vector<256x4xf32>
    %14 = vector.extract_strided_slice %5 {offsets = [1, 8, 0], sizes = [16, 16, 4], strides = [1, 1, 1]} : vector<18x32x4xf32> to vector<16x16x4xf32>
    %15 = vector.shape_cast %14 : vector<16x16x4xf32> to vector<256x4xf32>
    %16 = vector.extract_strided_slice %5 {offsets = [1, 9, 0], sizes = [16, 16, 4], strides = [1, 1, 1]} : vector<18x32x4xf32> to vector<16x16x4xf32>
    %17 = vector.shape_cast %16 : vector<16x16x4xf32> to vector<256x4xf32>
    %18 = vector.extract_strided_slice %5 {offsets = [2, 7, 0], sizes = [16, 16, 4], strides = [1, 1, 1]} : vector<18x32x4xf32> to vector<16x16x4xf32>
    %19 = vector.shape_cast %18 : vector<16x16x4xf32> to vector<256x4xf32>
    %20 = vector.extract_strided_slice %5 {offsets = [2, 8, 0], sizes = [16, 16, 4], strides = [1, 1, 1]} : vector<18x32x4xf32> to vector<16x16x4xf32>
    %21 = vector.shape_cast %20 : vector<16x16x4xf32> to vector<256x4xf32>
    %22 = vector.extract_strided_slice %5 {offsets = [2, 9, 0], sizes = [16, 16, 4], strides = [1, 1, 1]} : vector<18x32x4xf32> to vector<16x16x4xf32>
    %23 = vector.shape_cast %22 : vector<16x16x4xf32> to vector<256x4xf32>
    %24 = tpu.concatenate %7, %9, %11, %13, %15, %17, %19, %21, %23 in 1 : vector<256x4xf32>, vector<256x4xf32>, vector<256x4xf32>, vector<256x4xf32>, vector<256x4xf32>, vector<256x4xf32>, vector<256x4xf32>, vector<256x4xf32>, vector<256x4xf32> -> vector<256x36xf32>
    %c0_4 = arith.constant 0 : index
    %c0_5 = arith.constant 0 : index
    %25 = vector.load %arg2[%c0_4, %c0_5] : memref<36x8xf32, #tpu.memory_space<vmem>>, vector<36x8xf32>
    %cst_6 = arith.constant dense<0.000000e+00> : vector<256x8xf32>
    %26 = tpu.matmul %24, %25, %cst_6 {dimension_numbers = #tpu.dot_dimension_numbers<[1], [0], [0], [1], [0, 0, 1, 1], [], []>} : vector<256x36xf32>, vector<36x8xf32>, vector<256x8xf32> -> vector<256x8xf32>
    %c0_7 = arith.constant 0 : index
    %c0_8 = arith.constant 0 : index
    %27 = vector.load %arg3[%c0_7, %c0_8] : memref<1x8xf32, #tpu.memory_space<vmem>>, vector<1x8xf32>
    %28 = vector.broadcast %27 : vector<1x8xf32> to vector<256x8xf32>
    %29 = arith.addf %26, %28 : vector<256x8xf32>
    %cst_9 = arith.constant 0.000000e+00 : f32
    %30 = vector.broadcast %cst_9 : f32 to vector<256x8xf32>
    %31 = arith.maximumf %29, %30 : vector<256x8xf32>
    %32 = vector.shape_cast %31 : vector<256x8xf32> to vector<16x16x8xf32>
    %cst_10 = arith.constant 0.000000e+00 : f32
    %33 = vector.broadcast %cst_10 : f32 to vector<16x8x8xf32>
    %34 = tpu.concatenate %33, %32, %33 in 1 : vector<16x8x8xf32>, vector<16x16x8xf32>, vector<16x8x8xf32> -> vector<16x32x8xf32>
    %cst_11 = arith.constant 0.000000e+00 : f32
    %35 = vector.broadcast %cst_11 : f32 to vector<1x32x8xf32>
    %36 = tpu.concatenate %35, %34, %35 in 0 : vector<1x32x8xf32>, vector<16x32x8xf32>, vector<1x32x8xf32> -> vector<18x32x8xf32>
    %37 = vector.extract_strided_slice %36 {offsets = [0, 7, 0], sizes = [16, 16, 8], strides = [1, 1, 1]} : vector<18x32x8xf32> to vector<16x16x8xf32>
    %38 = vector.shape_cast %37 : vector<16x16x8xf32> to vector<256x8xf32>
    %39 = vector.extract_strided_slice %36 {offsets = [0, 8, 0], sizes = [16, 16, 8], strides = [1, 1, 1]} : vector<18x32x8xf32> to vector<16x16x8xf32>
    %40 = vector.shape_cast %39 : vector<16x16x8xf32> to vector<256x8xf32>
    %41 = vector.extract_strided_slice %36 {offsets = [0, 9, 0], sizes = [16, 16, 8], strides = [1, 1, 1]} : vector<18x32x8xf32> to vector<16x16x8xf32>
    %42 = vector.shape_cast %41 : vector<16x16x8xf32> to vector<256x8xf32>
    %43 = vector.extract_strided_slice %36 {offsets = [1, 7, 0], sizes = [16, 16, 8], strides = [1, 1, 1]} : vector<18x32x8xf32> to vector<16x16x8xf32>
    %44 = vector.shape_cast %43 : vector<16x16x8xf32> to vector<256x8xf32>
    %45 = vector.extract_strided_slice %36 {offsets = [1, 8, 0], sizes = [16, 16, 8], strides = [1, 1, 1]} : vector<18x32x8xf32> to vector<16x16x8xf32>
    %46 = vector.shape_cast %45 : vector<16x16x8xf32> to vector<256x8xf32>
    %47 = vector.extract_strided_slice %36 {offsets = [1, 9, 0], sizes = [16, 16, 8], strides = [1, 1, 1]} : vector<18x32x8xf32> to vector<16x16x8xf32>
    %48 = vector.shape_cast %47 : vector<16x16x8xf32> to vector<256x8xf32>
    %49 = vector.extract_strided_slice %36 {offsets = [2, 7, 0], sizes = [16, 16, 8], strides = [1, 1, 1]} : vector<18x32x8xf32> to vector<16x16x8xf32>
    %50 = vector.shape_cast %49 : vector<16x16x8xf32> to vector<256x8xf32>
    %51 = vector.extract_strided_slice %36 {offsets = [2, 8, 0], sizes = [16, 16, 8], strides = [1, 1, 1]} : vector<18x32x8xf32> to vector<16x16x8xf32>
    %52 = vector.shape_cast %51 : vector<16x16x8xf32> to vector<256x8xf32>
    %53 = vector.extract_strided_slice %36 {offsets = [2, 9, 0], sizes = [16, 16, 8], strides = [1, 1, 1]} : vector<18x32x8xf32> to vector<16x16x8xf32>
    %54 = vector.shape_cast %53 : vector<16x16x8xf32> to vector<256x8xf32>
    %55 = tpu.concatenate %38, %40, %42, %44, %46, %48, %50, %52, %54 in 1 : vector<256x8xf32>, vector<256x8xf32>, vector<256x8xf32>, vector<256x8xf32>, vector<256x8xf32>, vector<256x8xf32>, vector<256x8xf32>, vector<256x8xf32>, vector<256x8xf32> -> vector<256x72xf32>
    %c0_12 = arith.constant 0 : index
    %c0_13 = arith.constant 0 : index
    %56 = vector.load %arg4[%c0_12, %c0_13] : memref<72x8xf32, #tpu.memory_space<vmem>>, vector<72x8xf32>
    %cst_14 = arith.constant dense<0.000000e+00> : vector<256x8xf32>
    %57 = tpu.matmul %55, %56, %cst_14 {dimension_numbers = #tpu.dot_dimension_numbers<[1], [0], [0], [1], [0, 0, 1, 1], [], []>} : vector<256x72xf32>, vector<72x8xf32>, vector<256x8xf32> -> vector<256x8xf32>
    %c0_15 = arith.constant 0 : index
    %c0_16 = arith.constant 0 : index
    %58 = vector.load %arg5[%c0_15, %c0_16] : memref<1x8xf32, #tpu.memory_space<vmem>>, vector<1x8xf32>
    %59 = vector.broadcast %58 : vector<1x8xf32> to vector<256x8xf32>
    %60 = arith.addf %57, %59 : vector<256x8xf32>
    %cst_17 = arith.constant 0.000000e+00 : f32
    %61 = vector.broadcast %cst_17 : f32 to vector<256x8xf32>
    %62 = arith.maximumf %60, %61 : vector<256x8xf32>
    %63 = vector.shape_cast %62 : vector<256x8xf32> to vector<1x16x16x8xf32>
    %c0_18 = arith.constant 0 : index
    %c0_19 = arith.constant 0 : index
    %c0_20 = arith.constant 0 : index
    %c0_21 = arith.constant 0 : index
    %64 = vector.load %arg6[%c0_18, %c0_19, %c0_20, %c0_21] : memref<1x16x16x8xf32, #tpu.memory_space<vmem>>, vector<1x16x16x8xf32>
    tpu.vector_store %arg6[%c0_18, %c0_19, %c0_20, %c0_21], %63 {strides = array<i32>} : memref<1x16x16x8xf32, #tpu.memory_space<vmem>>, vector<1x16x16x8xf32>,
    return
  }
  func.func @transform_0(%arg0: i32) -> (i32, i32, i32, i32) {
    %c0_i32 = arith.constant 0 : i32
    %c0_i32_0 = arith.constant 0 : i32
    %c0_i32_1 = arith.constant 0 : i32
    %c0_i32_2 = arith.constant 0 : i32
    return %arg0, %c0_i32, %c0_i32_0, %c0_i32_1 : i32, i32, i32, i32
  }
  func.func @transform_1(%arg0: i32) -> (i32, i32) {
    %c0_i32 = arith.constant 0 : i32
    %c0_i32_0 = arith.constant 0 : i32
    %c0_i32_1 = arith.constant 0 : i32
    return %c0_i32, %c0_i32_0 : i32, i32
  }
  func.func @transform_2(%arg0: i32) -> (i32, i32) {
    %c0_i32 = arith.constant 0 : i32
    %c0_i32_0 = arith.constant 0 : i32
    %c0_i32_1 = arith.constant 0 : i32
    return %c0_i32, %c0_i32_0 : i32, i32
  }
  func.func @transform_3(%arg0: i32) -> (i32, i32) {
    %c0_i32 = arith.constant 0 : i32
    %c0_i32_0 = arith.constant 0 : i32
    %c0_i32_1 = arith.constant 0 : i32
    return %c0_i32, %c0_i32_0 : i32, i32
  }
  func.func @transform_4(%arg0: i32) -> (i32, i32) {
    %c0_i32 = arith.constant 0 : i32
    %c0_i32_0 = arith.constant 0 : i32
    %c0_i32_1 = arith.constant 0 : i32
    return %c0_i32, %c0_i32_0 : i32, i32
  }
  func.func @transform_5(%arg0: i32) -> (i32, i32, i32, i32) {
    %c0_i32 = arith.constant 0 : i32
    %c0_i32_0 = arith.constant 0 : i32
    %c0_i32_1 = arith.constant 0 : i32
    %c0_i32_2 = arith.constant 0 : i32
    return %arg0, %c0_i32, %c0_i32_0, %c0_i32_1 : i32, i32, i32, i32
  }
}

</mosaic_0001>

<bundles_post_ra>
// kernel: tpu_custom_call.1
= control target key start
LH: loop header
LB: loop body
LE: loop exit
PB: predicated region body
PF: predicated region fallthrough
CT: control target
= control target key end

     0   :  { %s3439_s18 = smov 0   ;;  %s7157_s0 = inlined_call_operand.vmem [shape: f32[2,16,16,4], index: 0, kind: input, shape index: {}]   ;;  %s7158_s1 = inlined_call_operand.vmem [shape: f32[36,8], index: 1, kind: input, shape index: {}]   ;;  %s7159_s2 = inlined_call_operand.vmem [shape: f32[1,8], index: 2, kind: input, shape index: {}]   ;;  %s7160_s3 = inlined_call_operand.vmem [shape: f32[72,8], index: 3, kind: input, shape index: {}]   ;;  %s7161_s4 = inlined_call_operand.vmem [shape: f32[1,8], index: 4, kind: input, shape index: {}]   ;;  %s7162_s5 = inlined_call_operand.vmem [shape: f32[2,16,16,8], index: 5, kind: output, shape index: {}]  }
   0x1 LB: > { %s3268_s19 = sadd.s32 4294967295, %s3394_s18   ;;  %p3272_p0 = scmp.ge.s32.totalorder %s3394_s18, 1  ;;  %s3394_s18 = sphi %s3439_s18, %s15_s18  }
   0x2   : > { %p187_p1 = scmp.lt.s32.totalorder %s3394_s18, 3 }
   0x4   : > { %p188_p2 = pnand %p3272_p0, %p187_p1 }
   0x6   : > { %191 = sbr.rel (%p188_p2) target bundleno = 1840 (0x730), region = 40 }
   0xb   : > { %p215_p3 = scmp.lt.s32.totalorder %s3268_s19, 1  ;;  %v7163_v0 = vmov 0.0   ;;  %s3397_s20 = smov 4   ;;  %vm382_vm0 = vcmask 1046528   ;;  %vm288_vm1 = vcmask 1040384   ;;  %vm1576_vm2 = vcmask 1043456  }
   0xc   : > { %455 = vrot.lane.b32.xlu0 %v7163_v0, %s3397_s20  ;;  %v3604_v31 = vrot.slane %v7163_v0, 1  ;;  %s3398_s25 = smov 8   ;;  %s3399_s26 = smov 12   ;;  %vm1208_vm3 = vcmask 31744   ;;  %vm1272_vm4 = vcmask 97280   ;;  %vm1240_vm5 = vcmask 64512  }
   0xd   : > { %s8175_s19 = smov (!%p215_p3, %s3268_s19), 1  ;;  %s3400_s27 = smov 16   ;;  %vm1305_vm6 = vcmask 130048   ;;  %vm1371_vm7 = vcmask 195584   ;;  %vm1338_vm8 = vcmask 162816   ;;  %vm1404_vm9 = vcmask 228352  }
   0xe   : > { %s3344_s21 = sshll.u32 %s8175_s19, 8  ;;  %7360 = vst [vmem:[#allocation2_spill] sm:$0xff] %v3604_v31  ;;  %v3381_v34 = vpack.i.bf16 0.0, %v3604_v31  ;;  %s3401_s28 = smov 20   ;;  %vm1479_vm10 = vcmask 293888   ;;  %vm1437_vm11 = vcmask 261120  }
   0xf   : > { %s3457_s24 = scalar_lea.vmem %s7157_s0, %s3344_s21  ;;  %s3402_s29 = smov 24   ;;  %vm2794_vm12 = vcmask 326656   ;;  %vm2860_vm13 = vcmask 457728   ;;  %vm2827_vm14 = vcmask 392192   ;;  %vm2893_vm15 = vcmask 523264  }
  0x10   : > { %v3460_v1 = vld [vmem:[%s3457_s24 + $0x18] sm:$0xff]  ;;  %v3463_v2 = vld [vmem:[%s3457_s24 + $0x8] sm:$0xff]  ;;  %v3466_v3 = vld [vmem:[%s3457_s24] sm:$0xff]  ;;  %s3403_s30 = smov 28   ;;  %s3404_s6 = smov 32  }
  0x11   : > { %463 = vrot.lane.b32.xlu2 %v3460_v1, %s3397_s20  ;;  %459 = vrot.lane.b32.xlu1 %v3463_v2, %s3397_s20  ;;  %v3475_v4 = vld [vmem:[%s3457_s24 + $0x20] sm:$0xff]  ;;  %v3478_v5 = vld [vmem:[%s3457_s24 + $0x10] sm:$0xff]  ;;  %v385_v32 = vrot.slane %v3466_v3, 1  ;;  %v386_v33 = vrot.slane %v3463_v2, 1  ;;  %v390_v38 = vrot.slane %v3460_v1, 1  ;;  %s3405_s22 = smov 40  }
  0x12   : > { %v3481_v6 = vld [vmem:[%s3457_s24 + $0x28] sm:$0xff]  ;;  %v3490_v7 = vld [vmem:[%s3457_s24 + $0x38] sm:$0xff]  ;;  %v3493_v8 = vld [vmem:[%s3457_s24 + $0x30] sm:$0xff]  ;;  %v389_v37 = vrot.slane %v3478_v5, 1  ;;  %v393_v39 = vrot.slane %v3475_v4, 1  ;;  %s3406_s23 = smov 56  }
  0x13   : > { %v3496_v9 = vld [vmem:[%s3457_s24 + $0x40] sm:$0xff]  ;;  %v3505_v10 = vld [vmem:[%s3457_s24 + $0x50] sm:$0xff]  ;;  %v3508_v11 = vld [vmem:[%s3457_s24 + $0x48] sm:$0xff]  ;;  %v3616_v35 = vsel %vm382_vm0, %v385_v32, %v386_v33  ;;  %v3620_v36 = vsel %vm382_vm0, %v386_v33, %v3604_v31  ;;  %v394_v40 = vrot.slane %v3481_v6, 1  ;;  %v3636_v42 = vsel %vm382_vm0, %v390_v38, %v3604_v31 }
  0x14   : > { %457 = vrot.lane.b32.xlu0 %v3466_v3, %s3397_s20  ;;  %v3511_v12 = vld [vmem:[%s3457_s24 + $0x58] sm:$0xff]  ;;  %v3520_v13 = vld [vmem:[%s3457_s24 + $0x68] sm:$0xff]  ;;  %v3523_v14 = vld [vmem:[%s3457_s24 + $0x60] sm:$0xff]  ;;  %v3632_v41 = vsel %vm382_vm0, %v389_v37, %v390_v38  ;;  %v397_v44 = vrot.slane %v3493_v8, 1  ;;  %v398_v45 = vrot.slane %v3490_v7, 1  ;;  %v401_v50 = vrot.slane %v3496_v9, 1 }
  0x15   : > { %v3526_v15 = vld [vmem:[%s3457_s24 + $0x70] sm:$0xff]  ;;  %v3535_v16 = vld [vmem:[%s3457_s24 + $0x80] sm:$0xff]  ;;  %v3538_v17 = vld [vmem:[%s3457_s24 + $0x78] sm:$0xff]  ;;  %v3639_v43 = vsel %vm382_vm0, %v393_v39, %v394_v40  ;;  %v3653_v47 = vsel %vm382_vm0, %v394_v40, %v3604_v31  ;;  %v402_v51 = vrot.slane %v3508_v11, 1  ;;  %v405_v53 = vrot.slane %v3505_v10, 1 }
  0x16   : > { %v3541_v18 = vld [vmem:[%s3457_s24 + $0x88] sm:$0xff]  ;;  %v3550_v19 = vld [vmem:[%s3457_s24 + $0x98] sm:$0xff]  ;;  %v3553_v20 = vld [vmem:[%s3457_s24 + $0x90] sm:$0xff]  ;;  %v3656_v48 = vsel %vm382_vm0, %v397_v44, %v398_v45  ;;  %v3660_v49 = vsel %vm382_vm0, %v398_v45, %v3604_v31  ;;  %v406_v54 = vrot.slane %v3511_v12, 1  ;;  %v409_v58 = vrot.slane %v3523_v14, 1 }
  0x17   : > { %v3556_v21 = vld [vmem:[%s3457_s24 + $0xa0] sm:$0xff]  ;;  %v3565_v22 = vld [vmem:[%s3457_s24 + $0xb0] sm:$0xff]  ;;  %v3568_v23 = vld [vmem:[%s3457_s24 + $0xa8] sm:$0xff]  ;;  %v3675_v55 = vsel %vm382_vm0, %v401_v50, %v402_v51  ;;  %v3679_v56 = vsel %vm382_vm0, %v402_v51, %v3604_v31  ;;  %v410_v59 = vrot.slane %v3520_v13, 1  ;;  %v413_v33 = vrot.slane %v3526_v15, 1 }
  0x18   : > { %v3571_v24 = vld [vmem:[%s3457_s24 + $0xb8] sm:$0xff]  ;;  %v3580_v25 = vld [vmem:[%s3457_s24 + $0xc8] sm:$0xff]  ;;  %v3583_v26 = vld [vmem:[%s3457_s24 + $0xc0] sm:$0xff]  ;;  %v3682_v57 = vsel %vm382_vm0, %v405_v53, %v406_v54  ;;  %v3698_v62 = vsel %vm382_vm0, %v406_v54, %v3604_v31  ;;  %v417_v39 = vrot.slane %v3535_v16, 1  ;;  %v418_v40 = vrot.slane %v3541_v18, 1 }
  0x19   : > { %465 = vrot.lane.b32.xlu2 %v3475_v4, %s3397_s20  ;;  %461 = vrot.lane.b32.xlu1 %v3478_v5, %s3397_s20  ;;  %v3586_v27 = vld [vmem:[%s3457_s24 + $0xd0] sm:$0xff]  ;;  %v3595_v28 = vld [vmem:[%s3457_s24 + $0xe0] sm:$0xff]  ;;  %v3701_v63 = vsel %vm382_vm0, %v409_v58, %v410_v59  ;;  %v3705_v32 = vsel %vm382_vm0, %v410_v59, %v3604_v31  ;;  %v421_v53 = vrot.slane %v3553_v20, 1  ;;  %v422_v54 = vrot.slane %v3550_v19, 1 }
  0x1a   : > { %v3598_v29 = vld [vmem:[%s3457_s24 + $0xd8] sm:$0xff]  ;;  %v3601_v30 = vld [vmem:[%s3457_s24 + $0xe8] sm:$0xff]  ;;  %v3731_v51 = vsel %vm382_vm0, %v417_v39, %v418_v40 }
  0x1b   : > { %v3752_v39 = vsel %vm382_vm0, %v421_v53, %v422_v54  ;;  %v3756_v0 = vsel %vm382_vm0, %v422_v54, %v3604_v31  ;;  %v429_v53 = vrot.slane %v3565_v22, 1  ;;  %v430_v54 = vrot.slane %v3571_v24, 1 }
  0x1c   : > { %467 = vrot.lane.b32.xlu0 %v3481_v6, %s3397_s20 }
  0x21   : > { %471 = vrot.lane.b32.xlu2 %v3490_v7, %s3397_s20  ;;  %469 = vrot.lane.b32.xlu1 %v3493_v8, %s3397_s20 }
  0x24   : > { %473 = vrot.lane.b32.xlu0 %v3496_v9, %s3397_s20 }
  0x29   : > { %477 = vrot.lane.b32.xlu2 %v3505_v10, %s3397_s20  ;;  %475 = vrot.lane.b32.xlu1 %v3508_v11, %s3397_s20 }
  0x2c   : > { %479 = vrot.lane.b32.xlu0 %v3511_v12, %s3397_s20 }
  0x31   : > { %483 = vrot.lane.b32.xlu2 %v3520_v13, %s3397_s20  ;;  %481 = vrot.lane.b32.xlu1 %v3523_v14, %s3397_s20 }
  0x34   : > { %485 = vrot.lane.b32.xlu0 %v3526_v15, %s3397_s20 }
  0x39   : > { %489 = vrot.lane.b32.xlu2 %v3535_v16, %s3397_s20  ;;  %487 = vrot.lane.b32.xlu1 %v3538_v17, %s3397_s20 }
  0x3c   : > { %491 = vrot.lane.b32.xlu0 %v3541_v18, %s3397_s20 }
  0x41   : > { %495 = vrot.lane.b32.xlu2 %v3550_v19, %s3397_s20  ;;  %493 = vrot.lane.b32.xlu1 %v3553_v20, %s3397_s20 }
  0x44   : > { %497 = vrot.lane.b32.xlu0 %v3556_v21, %s3397_s20 }
  0x49   : > { %501 = vrot.lane.b32.xlu2 %v3565_v22, %s3397_s20  ;;  %499 = vrot.lane.b32.xlu1 %v3568_v23, %s3397_s20 }
  0x4c   : > { %503 = vrot.lane.b32.xlu0 %v3571_v24, %s3397_s20 }
  0x51   : > { %507 = vrot.lane.b32.xlu2 %v3580_v25, %s3397_s20  ;;  %505 = vrot.lane.b32.xlu1 %v3583_v26, %s3397_s20 }
  0x54   : > { %509 = vrot.lane.b32.xlu0 %v3586_v27, %s3397_s20 }
  0x59   : > { %513 = vrot.lane.b32.xlu2 %v3595_v28, %s3397_s20  ;;  %511 = vrot.lane.b32.xlu1 %v3598_v29, %s3397_s20 }
  0x5c   : > { %515 = vrot.lane.b32.xlu0 %v3601_v30, %s3397_s20 }
  0x61   : > { %3382 = vrot.lane.b32.xlu1 %v3381_v34, %s3398_s25  ;;  %550 = vrot.lane.b32.xlu2 %v3616_v35, %s3398_s25  ;;  %v414_v34 = vrot.slane %v3538_v17, 1 }
  0x63   : > { %v3724_v45 = vsel %vm382_vm0, %v413_v33, %v414_v34  ;;  %v3728_v50 = vsel %vm382_vm0, %v414_v34, %v3604_v31  ;;  %v3749_v34 = vsel %vm382_vm0, %v418_v40, %v3604_v31 }
  0x64   : > { %552 = vrot.lane.b32.xlu0 %v3620_v36, %s3398_s25 }
  0x69   : > { %554 = vrot.lane.b32.xlu1 %v3632_v41, %s3398_s25  ;;  %556 = vrot.lane.b32.xlu2 %v3636_v42, %s3398_s25 }
  0x6b   : > { %v3647_v46 = vpop.permute.xlu2 %463 }
  0x6c   : > { %7361 = vst [vmem:[#allocation3_spill] sm:$0xff] %v3647_v46  ;;  %558 = vrot.lane.b32.xlu0 %v3639_v43, %s3398_s25 }
  0x71   : > { %560 = vrot.lane.b32.xlu1 %v3653_v47, %s3398_s25  ;;  %562 = vrot.lane.b32.xlu2 %v3656_v48, %s3398_s25 }
  0x73   : > { %v3668_v52 = vpop.permute.xlu2 %465 }
  0x74   : > { %7362 = vst [vmem:[#allocation4_spill] sm:$0xff] %v3668_v52  ;;  %564 = vrot.lane.b32.xlu0 %v3660_v49, %s3398_s25 }
  0x79   : > { %566 = vrot.lane.b32.xlu1 %v3675_v55, %s3398_s25  ;;  %568 = vrot.lane.b32.xlu2 %v3679_v56, %s3398_s25 }
  0x7b   : > { %v3690_v60 = vpop.permute.xlu2 %471 }
  0x7c   : > { %7363 = vst [vmem:[#allocation5_spill] sm:$0xff] %v3690_v60  ;;  %570 = vrot.lane.b32.xlu0 %v3682_v57, %s3398_s25 }
  0x7e   : > { %v3694_v61 = vpop.permute.xlu0 %455 }
  0x7f   : > { %7364 = vst [vmem:[#allocation6_spill] sm:$0xff] %v3694_v61 }
  0x81   : > { %572 = vrot.lane.b32.xlu1 %v3698_v62, %s3398_s25  ;;  %574 = vrot.lane.b32.xlu2 %v3701_v63, %s3398_s25 }
  0x83   : > { %v3713_v37 = vpop.permute.xlu2 %477  ;;  %v3715_v38 = vpop.permute.xlu1 %459 }
  0x84   : > { %7365 = vst [vmem:[#allocation7_spill] sm:$0xff] %v3713_v37  ;;  %576 = vrot.lane.b32.xlu0 %v3705_v32, %s3398_s25  ;;  %v426_v37 = vrot.slane %v3568_v23, 1 }
  0x85   : > { %7366 = vst [vmem:[#allocation8_spill] sm:$0xff] %v3715_v38 }
  0x86   : > { %v3721_v44 = vpop.permute.xlu0 %457  ;;  %v3779_v46 = vsel %vm382_vm0, %v426_v37, %v3604_v31 }
  0x87   : > { %7367 = vst [vmem:[#allocation9_spill] sm:$0xff] %v3721_v44 }
  0x88   : > { %7374 = vst [vmem:[#allocation16_spill] sm:$0xff] %v3779_v46 }
  0x89   : > { %578 = vrot.lane.b32.xlu1 %v3724_v45, %s3398_s25  ;;  %580 = vrot.lane.b32.xlu2 %v3728_v50, %s3398_s25 }
  0x8b   : > { %v3739_v58 = vpop.permute.xlu2 %483  ;;  %v3741_v59 = vpop.permute.xlu1 %461 }
  0x8c   : > { %7368 = vst [vmem:[#allocation10_spill] sm:$0xff] %v3739_v58  ;;  %582 = vrot.lane.b32.xlu0 %v3731_v51, %s3398_s25  ;;  %v425_v58 = vrot.slane %v3556_v21, 1 }
  0x8d   : > { %7369 = vst [vmem:[#allocation11_spill] sm:$0xff] %v3741_v59 }
  0x8e   : > { %v3745_v33 = vpop.permute.xlu0 %467  ;;  %v3775_v52 = vsel %vm382_vm0, %v425_v58, %v426_v37 }
  0x8f   : > { %7370 = vst [vmem:[#allocation12_spill] sm:$0xff] %v3745_v33 }
  0x91   : > { %584 = vrot.lane.b32.xlu1 %v3749_v34, %s3398_s25  ;;  %586 = vrot.lane.b32.xlu2 %v3752_v39, %s3398_s25 }
  0x93   : > { %v3764_v60 = vpop.permute.xlu2 %489  ;;  %v3766_v40 = vpop.permute.xlu1 %469 }
  0x94   : > { %7371 = vst [vmem:[#allocation13_spill] sm:$0xff] %v3764_v60  ;;  %588 = vrot.lane.b32.xlu0 %v3756_v0, %s3398_s25  ;;  %v3782_v60 = vsel %vm382_vm0, %v429_v53, %v430_v54  ;;  %v3800_v53 = vsel %vm382_vm0, %v430_v54, %v3604_v31 }
  0x95   : > { %7372 = vst [vmem:[#allocation14_spill] sm:$0xff] %v3766_v40  ;;  %v433_v40 = vrot.slane %v3583_v26, 1 }
  0x96   : > { %v3772_v33 = vpop.permute.xlu0 %473  ;;  %7375 = vst [vmem:[#allocation17_spill] sm:$0xff] %v3782_v60 }
  0x97   : > { %7373 = vst [vmem:[#allocation15_spill] sm:$0xff] %v3772_v33  ;;  %v434_v33 = vrot.slane %v3580_v25, 1 }
  0x98   : > { %7379 = vst [vmem:[#allocation21_spill] sm:$0xff] %v3800_v53 }
  0x99   : > { %590 = vrot.lane.b32.xlu1 %v3775_v52, %s3398_s25  ;;  %592 = vrot.lane.b32.xlu2 %v3779_v46, %s3398_s25  ;;  %v3803_v38 = vsel %vm382_vm0, %v433_v40, %v434_v33  ;;  %v3807_v44 = vsel %vm382_vm0, %v434_v33, %v3604_v31  ;;  %v441_v33 = vrot.slane %v3595_v28, 1  ;;  %v442_v40 = vrot.slane %v3601_v30, 1 }
  0x9a   : > { %7380 = vst [vmem:[#allocation22_spill] sm:$0xff] %v3803_v38 }
  0x9b   : > { %v3790_v59 = vpop.permute.xlu2 %495  ;;  %v3792_v58 = vpop.permute.xlu1 %475  ;;  %7381 = vst [vmem:[#allocation23_spill] sm:$0xff] %v3807_v44 }
  0x9c   : > { %7376 = vst [vmem:[#allocation18_spill] sm:$0xff] %v3790_v59  ;;  %594 = vrot.lane.b32.xlu0 %v3782_v60, %s3398_s25  ;;  %v291_v60 = vrot.slane %v3466_v3, 7 }
  0x9d   : > { %7377 = vst [vmem:[#allocation19_spill] sm:$0xff] %v3792_v58  ;;  %v437_v58 = vrot.slane %v3586_v27, 1 }
  0x9e   : > { %v3796_v37 = vpop.permute.xlu0 %479 }
  0x9f   : > { %7378 = vst [vmem:[#allocation20_spill] sm:$0xff] %v3796_v37  ;;  %v438_v37 = vrot.slane %v3598_v29, 1 }
  0xa1   : > { %596 = vrot.lane.b32.xlu1 %v3800_v53, %s3398_s25  ;;  %598 = vrot.lane.b32.xlu2 %v3803_v38, %s3398_s25  ;;  %v3826_v53 = vsel %vm382_vm0, %v437_v58, %v438_v37  ;;  %v3830_v38 = vsel %vm382_vm0, %v438_v37, %v3604_v31  ;;  %v7391_v37 = vmov 0.0  }
  0xa2   : > { %7385 = vst [vmem:[#allocation27_spill] sm:$0xff] %v3826_v53 }
  0xa3   : > { %v3815_v59 = vpop.permute.xlu2 %501  ;;  %v3817_v54 = vpop.permute.xlu1 %481  ;;  %7386 = vst [vmem:[#allocation28_spill] sm:$0xff] %v3830_v38 }
  0xa4   : > { %7382 = vst [vmem:[#allocation24_spill] sm:$0xff] %v3815_v59  ;;  %600 = vrot.lane.b32.xlu0 %v3807_v44, %s3398_s25  ;;  %v3833_v59 = vsel %vm382_vm0, %v441_v33, %v442_v40  ;;  %v293_v33 = vrot.slane %v3463_v2, 7 }
  0xa5   : > { %7383 = vst [vmem:[#allocation25_spill] sm:$0xff] %v3817_v54 }
  0xa6   : > { %v3823_v61 = vpop.permute.xlu0 %485  ;;  %7387 = vst [vmem:[#allocation29_spill] sm:$0xff] %v3833_v59 }
  0xa7   : > { %7384 = vst [vmem:[#allocation26_spill] sm:$0xff] %v3823_v61  ;;  %v3848_v61 = vrot.slane %v7391_v37, 7 }
  0xa9   : > { %602 = vrot.lane.b32.xlu1 %v3826_v53, %s3398_s25  ;;  %604 = vrot.lane.b32.xlu2 %v3830_v38, %s3398_s25  ;;  %7392 = vst [vmem:[#allocation33_spill] sm:$0xff] %v3848_v61  ;;  %v3854_v53 = vsel %vm382_vm0, %v442_v40, %v3604_v31  ;;  %v295_v40 = vrot.slane %v3478_v5, 7  ;;  %v297_v31 = vrot.slane %v3460_v1, 7  ;;  %v4083_v38 = vld [vmem:[%s3457_s24 + $0xf0] sm:$0xff] }
  0xaa   : > { %7393 = vst [vmem:[#allocation34_spill] sm:$0xff] %v3854_v53 }
  0xab   : > { %v3839_v54 = vpop.permute.xlu2 %507  ;;  %v3841_v44 = vpop.permute.xlu1 %487 }
  0xac   : > { %7388 = vst [vmem:[#allocation30_spill] sm:$0xff] %v3839_v54  ;;  %606 = vrot.lane.b32.xlu0 %v3833_v59, %s3398_s25  ;;  %v3858_v54 = vsel %vm288_vm1, %v3848_v61, %v291_v60 }
  0xad   : > { %7389 = vst [vmem:[#allocation31_spill] sm:$0xff] %v3841_v44 }
  0xae   : > { %v3845_v58 = vpop.permute.xlu0 %491  ;;  %7394 = vst [vmem:[#allocation35_spill] sm:$0xff] %v3858_v54 }
  0xaf   : > { %7390 = vst [vmem:[#allocation32_spill] sm:$0xff] %v3845_v58  ;;  %v3865_v58 = vsel %vm288_vm1, %v291_v60, %v293_v33  ;;  %v3883_v60 = vsel %vm288_vm1, %v3848_v61, %v295_v40 }
  0xb0   : > { %7395 = vst [vmem:[#allocation36_spill] sm:$0xff] %v3865_v58 }
  0xb1   : > { %608 = vrot.lane.b32.xlu1 %v3854_v53, %s3398_s25  ;;  %641 = vrot.lane.b32.xlu2 %v3858_v54, %s3399_s26  ;;  %v299_v53 = vrot.slane %v3475_v4, 7  ;;  %v3879_v54 = vsel %vm288_vm1, %v295_v40, %v297_v31  ;;  %7400 = vst [vmem:[#allocation41_spill] sm:$0xff] %v3883_v60  ;;  %v303_v31 = vrot.slane %v3493_v8, 7  ;;  %v301_v40 = vrot.slane %v3481_v6, 7 }
  0xb2   : > { %7399 = vst [vmem:[#allocation40_spill] sm:$0xff] %v3879_v54 }
  0xb3   : > { %v3867_v44 = vpop.permute.xlu2 %513  ;;  %v3869_v37 = vpop.permute.xlu1 %493  ;;  %v3891_v33 = vsel %vm288_vm1, %v3848_v61, %v299_v53 }
  0xb4   : > { %7396 = vst [vmem:[#allocation37_spill] sm:$0xff] %v3867_v44  ;;  %643 = vrot.lane.b32.xlu0 %v3865_v58, %s3399_s26  ;;  %v305_v58 = vrot.slane %v3490_v7, 7 }
  0xb5   : > { %7397 = vst [vmem:[#allocation38_spill] sm:$0xff] %v3869_v37 }
  0xb6   : > { %v3875_v59 = vpop.permute.xlu0 %497  ;;  %7401 = vst [vmem:[#allocation42_spill] sm:$0xff] %v3891_v33 }
  0xb7   : > { %7398 = vst [vmem:[#allocation39_spill] sm:$0xff] %v3875_v59 }
  0xb9   : > { %645 = vrot.lane.b32.xlu1 %v3883_v60, %s3399_s26  ;;  %647 = vrot.lane.b32.xlu2 %v3879_v54, %s3399_s26  ;;  %v3905_v54 = vsel %vm288_vm1, %v299_v53, %v301_v40  ;;  %v3909_v60 = vsel %vm288_vm1, %v3848_v61, %v303_v31  ;;  %v307_v53 = vrot.slane %v3496_v9, 7  ;;  %v309_v40 = vrot.slane %v3508_v11, 7 }
  0xba   : > { %7405 = vst [vmem:[#allocation46_spill] sm:$0xff] %v3905_v54 }
  0xbb   : > { %v3893_v44 = vpop.permute.xlu1 %499  ;;  %v3895_v59 = vpop.permute.xlu2 %550  ;;  %7406 = vst [vmem:[#allocation47_spill] sm:$0xff] %v3909_v60 }
  0xbc   : > { %7402 = vst [vmem:[#allocation43_spill] sm:$0xff] %v3893_v44  ;;  %649 = vrot.lane.b32.xlu0 %v3891_v33, %s3399_s26  ;;  %v3916_v44 = vsel %vm288_vm1, %v303_v31, %v305_v58  ;;  %v3934_v58 = vsel %vm288_vm1, %v307_v53, %v309_v40  ;;  %v313_v40 = vrot.slane %v3511_v12, 7 }
  0xbd   : > { %7403 = vst [vmem:[#allocation44_spill] sm:$0xff] %v3895_v59 }
  0xbe   : > { %v3901_v37 = vpop.permute.xlu0 %503  ;;  %7407 = vst [vmem:[#allocation48_spill] sm:$0xff] %v3916_v44 }
  0xbf   : > { %7404 = vst [vmem:[#allocation45_spill] sm:$0xff] %v3901_v37 }
  0xc0   : > { %7412 = vst [vmem:[#allocation53_spill] sm:$0xff] %v3934_v58 }
  0xc1   : > { %651 = vrot.lane.b32.xlu1 %v3905_v54, %s3399_s26  ;;  %653 = vrot.lane.b32.xlu2 %v3909_v60, %s3399_s26  ;;  %v311_v54 = vrot.slane %v3505_v10, 7  ;;  %v3931_v60 = vsel %vm288_vm1, %v3848_v61, %v307_v53  ;;  %v315_v53 = vrot.slane %v3523_v14, 7 }
  0xc2   : > { %7411 = vst [vmem:[#allocation52_spill] sm:$0xff] %v3931_v60 }
  0xc3   : > { %v3918_v59 = vpop.permute.xlu1 %505  ;;  %v3920_v37 = vpop.permute.xlu2 %556  ;;  %v3942_v31 = vsel %vm288_vm1, %v3848_v61, %v311_v54 }
  0xc4   : > { %7408 = vst [vmem:[#allocation49_spill] sm:$0xff] %v3918_v59  ;;  %655 = vrot.lane.b32.xlu0 %v3916_v44, %s3399_s26  ;;  %v3960_v44 = vsel %vm288_vm1, %v3848_v61, %v315_v53 }
  0xc5   : > { %7409 = vst [vmem:[#allocation50_spill] sm:$0xff] %v3920_v37 }
  0xc6   : > { %v3926_v33 = vpop.permute.xlu0 %509  ;;  %7413 = vst [vmem:[#allocation54_spill] sm:$0xff] %v3942_v31 }
  0xc7   : > { %7410 = vst [vmem:[#allocation51_spill] sm:$0xff] %v3926_v33 }
  0xc8   : > { %7418 = vst [vmem:[#allocation59_spill] sm:$0xff] %v3960_v44 }
  0xc9   : > { %657 = vrot.lane.b32.xlu1 %v3931_v60, %s3399_s26  ;;  %659 = vrot.lane.b32.xlu2 %v3934_v58, %s3399_s26  ;;  %v317_v60 = vrot.slane %v3520_v13, 7  ;;  %v3956_v58 = vsel %vm288_vm1, %v311_v54, %v313_v40  ;;  %v319_v54 = vrot.slane %v3526_v15, 7  ;;  %v321_v40 = vrot.slane %v3538_v17, 7 }
  0xca   : > { %7417 = vst [vmem:[#allocation58_spill] sm:$0xff] %v3956_v58 }
  0xcb   : > { %v3944_v33 = vpop.permute.xlu1 %511  ;;  %v3946_v59 = vpop.permute.xlu2 %562 }
  0xcc   : > { %7414 = vst [vmem:[#allocation55_spill] sm:$0xff] %v3944_v33  ;;  %661 = vrot.lane.b32.xlu0 %v3942_v31, %s3399_s26  ;;  %v3967_v33 = vsel %vm288_vm1, %v315_v53, %v317_v60  ;;  %v3985_v60 = vsel %vm288_vm1, %v319_v54, %v321_v40  ;;  %v325_v40 = vrot.slane %v3541_v18, 7 }
  0xcd   : > { %7415 = vst [vmem:[#allocation56_spill] sm:$0xff] %v3946_v59 }
  0xce   : > { %v3952_v37 = vpop.permute.xlu0 %515  ;;  %7419 = vst [vmem:[#allocation60_spill] sm:$0xff] %v3967_v33 }
  0xcf   : > { %7416 = vst [vmem:[#allocation57_spill] sm:$0xff] %v3952_v37 }
  0xd0   : > { %7424 = vst [vmem:[#allocation65_spill] sm:$0xff] %v3985_v60 }
  0xd1   : > { %663 = vrot.lane.b32.xlu1 %v3956_v58, %s3399_s26  ;;  %665 = vrot.lane.b32.xlu2 %v3960_v44, %s3399_s26  ;;  %v323_v58 = vrot.slane %v3535_v16, 7  ;;  %v3982_v44 = vsel %vm288_vm1, %v3848_v61, %v319_v54  ;;  %v327_v54 = vrot.slane %v3553_v20, 7 }
  0xd2   : > { %7423 = vst [vmem:[#allocation64_spill] sm:$0xff] %v3982_v44 }
  0xd3   : > { %v3969_v59 = vpop.permute.xlu1 %3382  ;;  %v3971_v37 = vpop.permute.xlu2 %568  ;;  %v3993_v53 = vsel %vm288_vm1, %v3848_v61, %v323_v58 }
  0xd4   : > { %7420 = vst [vmem:[#allocation61_spill] sm:$0xff] %v3969_v59  ;;  %667 = vrot.lane.b32.xlu0 %v3967_v33, %s3399_s26  ;;  %v4011_v33 = vsel %vm288_vm1, %v3848_v61, %v327_v54 }
  0xd5   : > { %7421 = vst [vmem:[#allocation62_spill] sm:$0xff] %v3971_v37 }
  0xd6   : > { %v3977_v31 = vpop.permute.xlu0 %552  ;;  %7425 = vst [vmem:[#allocation66_spill] sm:$0xff] %v3993_v53 }
  0xd7   : > { %7422 = vst [vmem:[#allocation63_spill] sm:$0xff] %v3977_v31 }
  0xd8   : > { %7430 = vst [vmem:[#allocation71_spill] sm:$0xff] %v4011_v33 }
  0xd9   : > { %669 = vrot.lane.b32.xlu1 %v3982_v44, %s3399_s26  ;;  %671 = vrot.lane.b32.xlu2 %v3985_v60, %s3399_s26  ;;  %v329_v44 = vrot.slane %v3550_v19, 7  ;;  %v4007_v60 = vsel %vm288_vm1, %v323_v58, %v325_v40  ;;  %v331_v58 = vrot.slane %v3556_v21, 7  ;;  %v333_v40 = vrot.slane %v3568_v23, 7 }
  0xda   : > { %7429 = vst [vmem:[#allocation70_spill] sm:$0xff] %v4007_v60 }
  0xdb   : > { %v3995_v37 = vpop.permute.xlu1 %554  ;;  %v3997_v31 = vpop.permute.xlu2 %574 }
  0xdc   : > { %7426 = vst [vmem:[#allocation67_spill] sm:$0xff] %v3995_v37  ;;  %673 = vrot.lane.b32.xlu0 %v3993_v53, %s3399_s26 }
  0xdd   : > { %7427 = vst [vmem:[#allocation68_spill] sm:$0xff] %v3997_v31  ;;  %v4018_v31 = vsel %vm288_vm1, %v327_v54, %v329_v44  ;;  %v4036_v44 = vsel %vm288_vm1, %v331_v58, %v333_v40  ;;  %v337_v40 = vrot.slane %v3571_v24, 7 }
  0xde   : > { %v4003_v59 = vpop.permute.xlu0 %558  ;;  %7431 = vst [vmem:[#allocation72_spill] sm:$0xff] %v4018_v31 }
  0xdf   : > { %7428 = vst [vmem:[#allocation69_spill] sm:$0xff] %v4003_v59 }
  0xe0   : > { %7436 = vst [vmem:[#allocation77_spill] sm:$0xff] %v4036_v44 }
  0xe1   : > { %675 = vrot.lane.b32.xlu1 %v4007_v60, %s3399_s26  ;;  %677 = vrot.lane.b32.xlu2 %v4011_v33, %s3399_s26  ;;  %v335_v60 = vrot.slane %v3565_v22, 7  ;;  %v4033_v33 = vsel %vm288_vm1, %v3848_v61, %v331_v58  ;;  %v339_v58 = vrot.slane %v3583_v26, 7 }
  0xe2   : > { %7435 = vst [vmem:[#allocation76_spill] sm:$0xff] %v4033_v33 }
  0xe3   : > { %v4020_v37 = vpop.permute.xlu1 %560  ;;  %v4022_v59 = vpop.permute.xlu2 %580  ;;  %v4044_v54 = vsel %vm288_vm1, %v3848_v61, %v335_v60 }
  0xe4   : > { %7432 = vst [vmem:[#allocation73_spill] sm:$0xff] %v4020_v37  ;;  %679 = vrot.lane.b32.xlu0 %v4018_v31, %s3399_s26 }
  0xe5   : > { %7433 = vst [vmem:[#allocation74_spill] sm:$0xff] %v4022_v59 }
  0xe6   : > { %v4028_v53 = vpop.permute.xlu0 %564  ;;  %7437 = vst [vmem:[#allocation78_spill] sm:$0xff] %v4044_v54 }
  0xe7   : > { %7434 = vst [vmem:[#allocation75_spill] sm:$0xff] %v4028_v53 }
  0xe9   : > { %681 = vrot.lane.b32.xlu1 %v4033_v33, %s3399_s26  ;;  %683 = vrot.lane.b32.xlu2 %v4036_v44, %s3399_s26  ;;  %v341_v44 = vrot.slane %v3580_v25, 7  ;;  %v4058_v33 = vsel %vm288_vm1, %v335_v60, %v337_v40  ;;  %v343_v60 = vrot.slane %v3586_v27, 7  ;;  %v345_v40 = vrot.slane %v3598_v29, 7 }
  0xea   : > { %7441 = vst [vmem:[#allocation82_spill] sm:$0xff] %v4058_v33 }
  0xeb   : > { %v4046_v53 = vpop.permute.xlu1 %566  ;;  %v4048_v37 = vpop.permute.xlu2 %586 }
  0xec   : > { %7438 = vst [vmem:[#allocation79_spill] sm:$0xff] %v4046_v53  ;;  %685 = vrot.lane.b32.xlu0 %v4044_v54, %s3399_s26  ;;  %v4062_v53 = vsel %vm288_vm1, %v3848_v61, %v339_v58 }
  0xed   : > { %7439 = vst [vmem:[#allocation80_spill] sm:$0xff] %v4048_v37  ;;  %v4069_v37 = vsel %vm288_vm1, %v339_v58, %v341_v44  ;;  %v4087_v44 = vsel %vm288_vm1, %v3848_v61, %v343_v60  ;;  %v4090_v58 = vsel %vm288_vm1, %v343_v60, %v345_v40  ;;  %v349_v60 = vrot.slane %v3601_v30, 7 }
  0xee   : > { %v4054_v59 = vpop.permute.xlu0 %570  ;;  %7442 = vst [vmem:[#allocation83_spill] sm:$0xff] %v4062_v53 }
  0xef   : > { %7440 = vst [vmem:[#allocation81_spill] sm:$0xff] %v4054_v59 }
  0xf0   : > { %7443 = vst [vmem:[#allocation84_spill] sm:$0xff] %v4069_v37 }
  0xf1   : > { %687 = vrot.lane.b32.xlu1 %v4058_v33, %s3399_s26  ;;  %689 = vrot.lane.b32.xlu2 %v4062_v53, %s3399_s26  ;;  %v347_v33 = vrot.slane %v3595_v28, 7  ;;  %7447 = vst [vmem:[#allocation88_spill] sm:$0xff] %v4087_v44 }
  0xf2   : > { %7448 = vst [vmem:[#allocation89_spill] sm:$0xff] %v4090_v58 }
  0xf3   : > { %v4071_v59 = vpop.permute.xlu1 %572  ;;  %v4073_v54 = vpop.permute.xlu2 %592  ;;  %v4119_v46 = vsel %vm288_vm1, %v347_v33, %v349_v60 }
  0xf4   : > { %7444 = vst [vmem:[#allocation85_spill] sm:$0xff] %v4071_v59  ;;  %691 = vrot.lane.b32.xlu0 %v4069_v37, %s3399_s26  ;;  %v4097_v59 = vld [vmem:[%s3457_s24 + $0xf8] sm:$0xff]  ;;  %s3407_s24 = smov 48  }
  0xf5   : > { %7445 = vst [vmem:[#allocation86_spill] sm:$0xff] %v4073_v54  ;;  %v447_v54 = vrot.slane %v4083_v38, 7  ;;  %v449_v40 = vrot.slane %v4097_v59, 7 }
  0xf6   : > { %v4079_v31 = vpop.permute.xlu0 %576  ;;  %7453 = vst [vmem:[#allocation94_spill] sm:$0xff] %v4119_v46 }
  0xf7   : > { %7446 = vst [vmem:[#allocation87_spill] sm:$0xff] %v4079_v31  ;;  %v4101_v31 = vsel %vm288_vm1, %v3848_v61, %v347_v33 }
  0xf8   : > { %7449 = vst [vmem:[#allocation90_spill] sm:$0xff] %v4101_v31 }
  0xf9   : > { %693 = vrot.lane.b32.xlu1 %v4087_v44, %s3399_s26  ;;  %695 = vrot.lane.b32.xlu2 %v4090_v58, %s3399_s26  ;;  %v4116_v44 = vsel %vm288_vm1, %v3848_v61, %v447_v54 }
  0xfb   : > { %v4104_v37 = vpop.permute.xlu1 %578  ;;  %v4106_v53 = vpop.permute.xlu2 %598 }
  0xfc   : > { %7450 = vst [vmem:[#allocation91_spill] sm:$0xff] %v4104_v37  ;;  %697 = vrot.lane.b32.xlu0 %v4101_v31, %s3399_s26  ;;  %v4122_v37 = vsel %vm288_vm1, %v447_v54, %v449_v40 }
  0xfd   : > { %7451 = vst [vmem:[#allocation92_spill] sm:$0xff] %v4106_v53 }
  0xfe   : > { %v4112_v58 = vpop.permute.xlu0 %582 }
  0xff   : > { %7452 = vst [vmem:[#allocation93_spill] sm:$0xff] %v4112_v58 }
 0x101   : > { %699 = vrot.lane.b32.xlu1 %v4119_v46, %s3399_s26  ;;  %701 = vrot.lane.b32.xlu2 %v4116_v44, %s3399_s26 }
 0x103   : > { %v4128_v53 = vpop.permute.xlu1 %584  ;;  %v4130_v31 = vpop.permute.xlu2 %604 }
 0x104   : > { %7454 = vst [vmem:[#allocation95_spill] sm:$0xff] %v4128_v53  ;;  %703 = vrot.lane.b32.xlu0 %v4122_v37, %s3399_s26 }
 0x105   : > { %7455 = vst [vmem:[#allocation96_spill] sm:$0xff] %v4130_v31 }
 0x106   : > { %v4134_v58 = vpop.permute.xlu0 %588 }
 0x107   : > { %7456 = vst [vmem:[#allocation97_spill] sm:$0xff] %v4134_v58 }
 0x109   : > { %737 = vrot.lane.b32.xlu1 %v3466_v3, %s3400_s27  ;;  %739 = vrot.lane.b32.xlu2 %v3463_v2, %s3400_s27 }
 0x10b   : > { %v4140_v33 = vpop.permute.xlu1 %590  ;;  %v4144_v54 = vpop.permute.xlu2 %641 }
 0x10c   : > { %7457 = vst [vmem:[#allocation98_spill] sm:$0xff] %v4140_v33  ;;  %741 = vrot.lane.b32.xlu0 %v3478_v5, %s3400_s27 }
 0x10d   : > { %7458 = vst [vmem:[#allocation99_spill] sm:$0xff] %v4144_v54  ;;  %v7521_v54 = vld [vmem:[#allocation28_spill] sm:$0xff] }
 0x10e   : > { %v4146_v60 = vpop.permute.xlu0 %594 }
 0x10f   : > { %7459 = vst [vmem:[#allocation100_spill] sm:$0xff] %v4146_v60 }
 0x111   : > { %743 = vrot.lane.b32.xlu1 %v3460_v1, %s3400_s27  ;;  %745 = vrot.lane.b32.xlu2 %v3475_v4, %s3400_s27 }
 0x113   : > { %v4152_v40 = vpop.permute.xlu1 %596  ;;  %v4156_v2 = vpop.permute.xlu2 %647 }
 0x114   : > { %7460 = vst [vmem:[#allocation101_spill] sm:$0xff] %v4152_v40  ;;  %747 = vrot.lane.b32.xlu0 %v3481_v6, %s3400_s27 }
 0x115   : > { %7461 = vst [vmem:[#allocation102_spill] sm:$0xff] %v4156_v2 }
 0x116   : > { %v4158_v3 = vpop.permute.xlu0 %600 }
 0x117   : > { %7462 = vst [vmem:[#allocation103_spill] sm:$0xff] %v4158_v3 }
 0x119   : > { %749 = vrot.lane.b32.xlu1 %v3493_v8, %s3400_s27  ;;  %751 = vrot.lane.b32.xlu2 %v3490_v7, %s3400_s27 }
 0x11b   : > { %v4164_v31 = vpop.permute.xlu1 %602  ;;  %v4168_v60 = vpop.permute.xlu2 %653 }
 0x11c   : > { %7463 = vst [vmem:[#allocation104_spill] sm:$0xff] %v4164_v31  ;;  %753 = vrot.lane.b32.xlu0 %v3496_v9, %s3400_s27 }
 0x11d   : > { %7464 = vst [vmem:[#allocation105_spill] sm:$0xff] %v4168_v60 }
 0x11e   : > { %v4170_v40 = vpop.permute.xlu0 %606 }
 0x11f   : > { %7465 = vst [vmem:[#allocation106_spill] sm:$0xff] %v4170_v40 }
 0x121   : > { %755 = vrot.lane.b32.xlu1 %v3508_v11, %s3400_s27  ;;  %757 = vrot.lane.b32.xlu2 %v3505_v10, %s3400_s27 }
 0x123   : > { %v4176_v3 = vpop.permute.xlu1 %608  ;;  %v4180_v33 = vpop.permute.xlu2 %659 }
 0x124   : > { %7466 = vst [vmem:[#allocation107_spill] sm:$0xff] %v4176_v3  ;;  %759 = vrot.lane.b32.xlu0 %v3511_v12, %s3400_s27 }
 0x125   : > { %7467 = vst [vmem:[#allocation108_spill] sm:$0xff] %v4180_v33 }
 0x126   : > { %v4182_v31 = vpop.permute.xlu0 %643 }
 0x127   : > { %7468 = vst [vmem:[#allocation109_spill] sm:$0xff] %v4182_v31 }
 0x129   : > { %761 = vrot.lane.b32.xlu1 %v3523_v14, %s3400_s27  ;;  %763 = vrot.lane.b32.xlu2 %v3520_v13, %s3400_s27 }
 0x12b   : > { %v4188_v40 = vpop.permute.xlu1 %645  ;;  %v4192_v58 = vpop.permute.xlu2 %665 }
 0x12c   : > { %7469 = vst [vmem:[#allocation110_spill] sm:$0xff] %v4188_v40  ;;  %765 = vrot.lane.b32.xlu0 %v3526_v15, %s3400_s27  ;;  %v7512_v40 = vld [vmem:[#allocation17_spill] sm:$0xff] }
 0x12d   : > { %7470 = vst [vmem:[#allocation111_spill] sm:$0xff] %v4192_v58 }
 0x12e   : > { %v4194_v3 = vpop.permute.xlu0 %649 }
 0x12f   : > { %7471 = vst [vmem:[#allocation112_spill] sm:$0xff] %v4194_v3 }
 0x131   : > { %767 = vrot.lane.b32.xlu1 %v3538_v17, %s3400_s27  ;;  %769 = vrot.lane.b32.xlu2 %v3535_v16, %s3400_s27 }
 0x133   : > { %v4200_v33 = vpop.permute.xlu1 %651  ;;  %v4204_v53 = vpop.permute.xlu2 %671 }
 0x134   : > { %7472 = vst [vmem:[#allocation113_spill] sm:$0xff] %v4200_v33  ;;  %771 = vrot.lane.b32.xlu0 %v3541_v18, %s3400_s27 }
 0x135   : > { %7473 = vst [vmem:[#allocation114_spill] sm:$0xff] %v4204_v53 }
 0x136   : > { %v4206_v60 = vpop.permute.xlu0 %655 }
 0x137   : > { %7474 = vst [vmem:[#allocation115_spill] sm:$0xff] %v4206_v60 }
 0x139   : > { %773 = vrot.lane.b32.xlu1 %v3553_v20, %s3400_s27  ;;  %775 = vrot.lane.b32.xlu2 %v3550_v19, %s3400_s27 }
 0x13b   : > { %v4212_v58 = vpop.permute.xlu1 %657  ;;  %v4216_v3 = vpop.permute.xlu2 %677 }
 0x13c   : > { %7475 = vst [vmem:[#allocation116_spill] sm:$0xff] %v4212_v58  ;;  %777 = vrot.lane.b32.xlu0 %v3556_v21, %s3400_s27 }
 0x13d   : > { %7476 = vst [vmem:[#allocation117_spill] sm:$0xff] %v4216_v3 }
 0x13e   : > { %v4218_v33 = vpop.permute.xlu0 %661 }
 0x13f   : > { %7477 = vst [vmem:[#allocation118_spill] sm:$0xff] %v4218_v33 }
 0x141   : > { %779 = vrot.lane.b32.xlu1 %v3568_v23, %s3400_s27  ;;  %781 = vrot.lane.b32.xlu2 %v3565_v22, %s3400_s27 }
 0x143   : > { %v4224_v53 = vpop.permute.xlu1 %663  ;;  %v4228_v60 = vpop.permute.xlu2 %683 }
 0x144   : > { %7478 = vst [vmem:[#allocation119_spill] sm:$0xff] %v4224_v53  ;;  %783 = vrot.lane.b32.xlu0 %v3571_v24, %s3400_s27 }
 0x145   : > { %7479 = vst [vmem:[#allocation120_spill] sm:$0xff] %v4228_v60 }
 0x146   : > { %v4230_v58 = vpop.permute.xlu0 %667 }
 0x147   : > { %7480 = vst [vmem:[#allocation121_spill] sm:$0xff] %v4230_v58 }
 0x149   : > { %785 = vrot.lane.b32.xlu1 %v3583_v26, %s3400_s27  ;;  %787 = vrot.lane.b32.xlu2 %v3580_v25, %s3400_s27 }
 0x14b   : > { %v4236_v33 = vpop.permute.xlu1 %669  ;;  %v4240_v3 = vpop.permute.xlu2 %689 }
 0x14c   : > { %7481 = vst [vmem:[#allocation122_spill] sm:$0xff] %v4236_v33  ;;  %789 = vrot.lane.b32.xlu0 %v3586_v27, %s3400_s27 }
 0x14d   : > { %7482 = vst [vmem:[#allocation123_spill] sm:$0xff] %v4240_v3 }
 0x14e   : > { %v4242_v53 = vpop.permute.xlu0 %673 }
 0x14f   : > { %7483 = vst [vmem:[#allocation124_spill] sm:$0xff] %v4242_v53 }
 0x151   : > { %791 = vrot.lane.b32.xlu1 %v3598_v29, %s3400_s27  ;;  %793 = vrot.lane.b32.xlu2 %v3595_v28, %s3400_s27 }
 0x153   : > { %v4248_v58 = vpop.permute.xlu1 %675  ;;  %v4252_v60 = vpop.permute.xlu2 %695 }
 0x154   : > { %7484 = vst [vmem:[#allocation125_spill] sm:$0xff] %v4248_v58  ;;  %795 = vrot.lane.b32.xlu0 %v3601_v30, %s3400_s27 }
 0x155   : > { %7485 = vst [vmem:[#allocation126_spill] sm:$0xff] %v4252_v60 }
 0x156   : > { %v4254_v33 = vpop.permute.xlu0 %679 }
 0x157   : > { %7486 = vst [vmem:[#allocation127_spill] sm:$0xff] %v4254_v33 }
 0x159   : > { %797 = vrot.lane.b32.xlu1 %v4083_v38, %s3400_s27  ;;  %799 = vrot.lane.b32.xlu2 %v4097_v59, %s3400_s27 }
 0x15b   : > { %v4260_v53 = vpop.permute.xlu1 %681  ;;  %v4264_v3 = vpop.permute.xlu2 %701 }
 0x15c   : > { %7487 = vst [vmem:[#allocation128_spill] sm:$0xff] %v4260_v53  ;;  %833 = vrot.lane.b32.xlu0 %v3616_v35, %s3401_s28 }
 0x15d   : > { %7488 = vst [vmem:[#allocation129_spill] sm:$0xff] %v4264_v3 }
 0x15e   : > { %v4266_v58 = vpop.permute.xlu0 %685 }
 0x15f   : > { %7489 = vst [vmem:[#allocation130_spill] sm:$0xff] %v4266_v58 }
 0x161   : > { %835 = vrot.lane.b32.xlu1 %v3620_v36, %s3401_s28  ;;  %837 = vrot.lane.b32.xlu2 %v3632_v41, %s3401_s28 }
 0x163   : > { %v4272_v60 = vpop.permute.xlu1 %687  ;;  %v4276_v53 = vpop.permute.xlu2 %739 }
 0x164   : > { %7490 = vst [vmem:[#allocation131_spill] sm:$0xff] %v4272_v60  ;;  %839 = vrot.lane.b32.xlu0 %v3636_v42, %s3401_s28 }
 0x165   : > { %7491 = vst [vmem:[#allocation132_spill] sm:$0xff] %v4276_v53  ;;  %v7515_v53 = vld [vmem:[#allocation22_spill] sm:$0xff] }
 0x166   : > { %v4278_v33 = vpop.permute.xlu0 %691 }
 0x167   : > { %7492 = vst [vmem:[#allocation133_spill] sm:$0xff] %v4278_v33 }
 0x169   : > { %841 = vrot.lane.b32.xlu1 %v3639_v43, %s3401_s28  ;;  %843 = vrot.lane.b32.xlu2 %v3653_v47, %s3401_s28 }
 0x16b   : > { %v4284_v35 = vpop.permute.xlu1 %693  ;;  %v4288_v36 = vpop.permute.xlu2 %745 }
 0x16c   : > { %7493 = vst [vmem:[#allocation134_spill] sm:$0xff] %v4284_v35  ;;  %845 = vrot.lane.b32.xlu0 %v3656_v48, %s3401_s28 }
 0x16d   : > { %7494 = vst [vmem:[#allocation135_spill] sm:$0xff] %v4288_v36 }
 0x16e   : > { %v4290_v3 = vpop.permute.xlu0 %697 }
 0x16f   : > { %7495 = vst [vmem:[#allocation136_spill] sm:$0xff] %v4290_v3 }
 0x171   : > { %847 = vrot.lane.b32.xlu1 %v3660_v49, %s3401_s28  ;;  %849 = vrot.lane.b32.xlu2 %v3675_v55, %s3401_s28 }
 0x173   : > { %v4296_v33 = vpop.permute.xlu1 %699  ;;  %v4300_v60 = vpop.permute.xlu2 %751 }
 0x174   : > { %7496 = vst [vmem:[#allocation137_spill] sm:$0xff] %v4296_v33  ;;  %851 = vrot.lane.b32.xlu0 %v3679_v56, %s3401_s28 }
 0x175   : > { %7497 = vst [vmem:[#allocation138_spill] sm:$0xff] %v4300_v60 }
 0x176   : > { %v4302_v35 = vpop.permute.xlu0 %703 }
 0x177   : > { %7498 = vst [vmem:[#allocation139_spill] sm:$0xff] %v4302_v35 }
 0x179   : > { %853 = vrot.lane.b32.xlu1 %v3682_v57, %s3401_s28  ;;  %855 = vrot.lane.b32.xlu2 %v3698_v62, %s3401_s28 }
 0x17b   : > { %v4308_v3 = vpop.permute.xlu1 %737  ;;  %v4312_v58 = vpop.permute.xlu2 %757 }
 0x17c   : > { %7499 = vst [vmem:[#allocation140_spill] sm:$0xff] %v4308_v3  ;;  %857 = vrot.lane.b32.xlu0 %v3701_v63, %s3401_s28  ;;  %v7518_v3 = vld [vmem:[#allocation23_spill] sm:$0xff] }
 0x17d   : > { %7500 = vst [vmem:[#allocation141_spill] sm:$0xff] %v4312_v58 }
 0x17e   : > { %v4314_v33 = vpop.permute.xlu0 %741 }
 0x17f   : > { %7501 = vst [vmem:[#allocation142_spill] sm:$0xff] %v4314_v33 }
 0x181   : > { %859 = vrot.lane.b32.xlu1 %v3705_v32, %s3401_s28  ;;  %861 = vrot.lane.b32.xlu2 %v3724_v45, %s3401_s28 }
 0x183   : > { %v4320_v35 = vpop.permute.xlu1 %743  ;;  %v4324_v60 = vpop.permute.xlu2 %763 }
 0x184   : > { %7502 = vst [vmem:[#allocation143_spill] sm:$0xff] %v4320_v35  ;;  %863 = vrot.lane.b32.xlu0 %v3728_v50, %s3401_s28 }
 0x185   : > { %7503 = vst [vmem:[#allocation144_spill] sm:$0xff] %v4324_v60 }
 0x186   : > { %v4326_v36 = vpop.permute.xlu0 %747 }
 0x187   : > { %7504 = vst [vmem:[#allocation145_spill] sm:$0xff] %v4326_v36  ;;  %v7509_v36 = vld [vmem:[#allocation16_spill] sm:$0xff] }
 0x189   : > { %865 = vrot.lane.b32.xlu1 %v3731_v51, %s3401_s28  ;;  %867 = vrot.lane.b32.xlu2 %v3749_v34, %s3401_s28 }
 0x18b   : > { %v4332_v58 = vpop.permute.xlu1 %749  ;;  %v4336_v2 = vpop.permute.xlu2 %769 }
 0x18c   : > { %7505 = vst [vmem:[#allocation146_spill] sm:$0xff] %v4332_v58  ;;  %869 = vrot.lane.b32.xlu0 %v3752_v39, %s3401_s28 }
 0x18d   : > { %7506 = vst [vmem:[#allocation147_spill] sm:$0xff] %v4336_v2  ;;  %v7513_v2 = vld [vmem:[#allocation21_spill] sm:$0xff] }
 0x18e   : > { %v4338_v35 = vpop.permute.xlu0 %753 }
 0x18f   : > { %7507 = vst [vmem:[#allocation148_spill] sm:$0xff] %v4338_v35 }
 0x191   : > { %871 = vrot.lane.b32.xlu1 %v3756_v0, %s3401_s28  ;;  %873 = vrot.lane.b32.xlu2 %v3775_v52, %s3401_s28 }
 0x193   : > { %v4344_v60 = vpop.permute.xlu1 %755  ;;  %v4348_v33 = vpop.permute.xlu2 %775 }
 0x194   : > { %7508 = vst [vmem:[#allocation149_spill] sm:$0xff] %v4344_v60  ;;  %875 = vrot.lane.b32.xlu0 %v7509_v36, %s3401_s28 }
 0x195   : > { %7510 = vst [vmem:[#allocation16_spill] sm:$0xff] %v4348_v33 }
 0x196   : > { %v4350_v58 = vpop.permute.xlu0 %759 }
 0x197   : > { %7511 = vst [vmem:[#allocation150_spill] sm:$0xff] %v4350_v58  ;;  %v7519_v58 = vld [vmem:[#allocation27_spill] sm:$0xff] }
 0x199   : > { %877 = vrot.lane.b32.xlu1 %v7512_v40, %s3401_s28  ;;  %879 = vrot.lane.b32.xlu2 %v7513_v2, %s3401_s28  ;;  %v7530_v40 = vld [vmem:[#allocation2_spill] sm:$0xff] }
 0x19b   : > { %v4356_v35 = vpop.permute.xlu1 %761  ;;  %v4360_v31 = vpop.permute.xlu2 %781 }
 0x19c   : > { %7514 = vst [vmem:[#allocation151_spill] sm:$0xff] %v4356_v35  ;;  %881 = vrot.lane.b32.xlu0 %v7515_v53, %s3401_s28  ;;  %v451_v35 = vrot.slane %v4083_v38, 1  ;;  %v452_v53 = vrot.slane %v4097_v59, 1 }
 0x19d   : > { %7516 = vst [vmem:[#allocation152_spill] sm:$0xff] %v4360_v31 }
 0x19e   : > { %v4362_v60 = vpop.permute.xlu0 %765 }
 0x19f   : > { %7517 = vst [vmem:[#allocation153_spill] sm:$0xff] %v4362_v60  ;;  %v4379_v60 = vsel %vm382_vm0, %v451_v35, %v452_v53  ;;  %v7532_v35 = vld [vmem:[#allocation41_spill] sm:$0xff] }
 0x1a0   : > { %7524 = vst [vmem:[#allocation157_spill] sm:$0xff] %v4379_v60 }
 0x1a1   : > { %883 = vrot.lane.b32.xlu1 %v7518_v3, %s3401_s28  ;;  %885 = vrot.lane.b32.xlu2 %v7519_v58, %s3401_s28  ;;  %v7525_v3 = vld [vmem:[#allocation29_spill] sm:$0xff]  ;;  %v7526_v58 = vld [vmem:[#allocation34_spill] sm:$0xff] }
 0x1a3   : > { %v4368_v33 = vpop.permute.xlu1 %767  ;;  %v4372_v2 = vpop.permute.xlu2 %787 }
 0x1a4   : > { %7520 = vst [vmem:[#allocation154_spill] sm:$0xff] %v4368_v33  ;;  %887 = vrot.lane.b32.xlu0 %v7521_v54, %s3401_s28 }
 0x1a5   : > { %7522 = vst [vmem:[#allocation155_spill] sm:$0xff] %v4372_v2 }
 0x1a6   : > { %v4376_v31 = vpop.permute.xlu0 %771 }
 0x1a7   : > { %7523 = vst [vmem:[#allocation156_spill] sm:$0xff] %v4376_v31  ;;  %v4395_v31 = vsel %vm382_vm0, %v452_v53, %v7530_v40  ;;  %v7538_v53 = vld [vmem:[#allocation46_spill] sm:$0xff] }
 0x1a8   : > { %7531 = vst [vmem:[#allocation160_spill] sm:$0xff] %v4395_v31 }
 0x1a9   : > { %889 = vrot.lane.b32.xlu1 %v7525_v3, %s3401_s28  ;;  %891 = vrot.lane.b32.xlu2 %v7526_v58, %s3401_s28 }
 0x1ab   : > { %v4385_v33 = vpop.permute.xlu1 %773  ;;  %v4389_v2 = vpop.permute.xlu2 %793 }
 0x1ac   : > { %7527 = vst [vmem:[#allocation29_spill] sm:$0xff] %v4385_v33  ;;  %893 = vrot.lane.b32.xlu0 %v4379_v60, %s3401_s28  ;;  %v7534_v33 = vld [vmem:[#allocation40_spill] sm:$0xff] }
 0x1ad   : > { %7528 = vst [vmem:[#allocation158_spill] sm:$0xff] %v4389_v2 }
 0x1ae   : > { %v4391_v54 = vpop.permute.xlu0 %777 }
 0x1af   : > { %7529 = vst [vmem:[#allocation159_spill] sm:$0xff] %v4391_v54  ;;  %v7537_v54 = vld [vmem:[#allocation42_spill] sm:$0xff] }
 0x1b1   : > { %895 = vrot.lane.b32.xlu1 %v4395_v31, %s3401_s28  ;;  %929 = vrot.lane.b32.xlu2 %v7532_v35, %s3402_s29  ;;  %v7540_v31 = vld [vmem:[#allocation47_spill] sm:$0xff] }
 0x1b3   : > { %v4401_v58 = vpop.permute.xlu1 %779  ;;  %v4405_v60 = vpop.permute.xlu2 %799 }
 0x1b4   : > { %7533 = vst [vmem:[#allocation161_spill] sm:$0xff] %v4401_v58  ;;  %931 = vrot.lane.b32.xlu0 %v7534_v33, %s3402_s29  ;;  %v7543_v33 = vld [vmem:[#allocation48_spill] sm:$0xff] }
 0x1b5   : > { %7535 = vst [vmem:[#allocation162_spill] sm:$0xff] %v4405_v60  ;;  %v7544_v60 = vld [vmem:[#allocation52_spill] sm:$0xff] }
 0x1b6   : > { %v4407_v2 = vpop.permute.xlu0 %783 }
 0x1b7   : > { %7536 = vst [vmem:[#allocation163_spill] sm:$0xff] %v4407_v2 }
 0x1b9   : > { %933 = vrot.lane.b32.xlu1 %v7537_v54, %s3402_s29  ;;  %935 = vrot.lane.b32.xlu2 %v7538_v53, %s3402_s29  ;;  %v7546_v54 = vld [vmem:[#allocation53_spill] sm:$0xff] }
 0x1bb   : > { %v4413_v40 = vpop.permute.xlu1 %785  ;;  %v4417_v35 = vpop.permute.xlu2 %837 }
 0x1bc   : > { %7539 = vst [vmem:[#allocation164_spill] sm:$0xff] %v4413_v40  ;;  %937 = vrot.lane.b32.xlu0 %v7540_v31, %s3402_s29  ;;  %v7549_v31 = vld [vmem:[#allocation54_spill] sm:$0xff] }
 0x1bd   : > { %7541 = vst [vmem:[#allocation165_spill] sm:$0xff] %v4417_v35 }
 0x1be   : > { %v4419_v58 = vpop.permute.xlu0 %789 }
 0x1bf   : > { %7542 = vst [vmem:[#allocation166_spill] sm:$0xff] %v4419_v58  ;;  %v7550_v58 = vld [vmem:[#allocation58_spill] sm:$0xff] }
 0x1c1   : > { %939 = vrot.lane.b32.xlu1 %v7543_v33, %s3402_s29  ;;  %941 = vrot.lane.b32.xlu2 %v7544_v60, %s3402_s29  ;;  %v7552_v33 = vld [vmem:[#allocation59_spill] sm:$0xff] }
 0x1c3   : > { %v4425_v2 = vpop.permute.xlu1 %791  ;;  %v4429_v53 = vpop.permute.xlu2 %843 }
 0x1c4   : > { %7545 = vst [vmem:[#allocation167_spill] sm:$0xff] %v4425_v2  ;;  %943 = vrot.lane.b32.xlu0 %v7546_v54, %s3402_s29  ;;  %v7555_v54 = vld [vmem:[#allocation60_spill] sm:$0xff] }
 0x1c5   : > { %7547 = vst [vmem:[#allocation168_spill] sm:$0xff] %v4429_v53 }
 0x1c6   : > { %v4431_v40 = vpop.permute.xlu0 %795 }
 0x1c7   : > { %7548 = vst [vmem:[#allocation169_spill] sm:$0xff] %v4431_v40  ;;  %v7556_v40 = vld [vmem:[#allocation64_spill] sm:$0xff] }
 0x1c9   : > { %945 = vrot.lane.b32.xlu1 %v7549_v31, %s3402_s29  ;;  %947 = vrot.lane.b32.xlu2 %v7550_v58, %s3402_s29  ;;  %v7558_v31 = vld [vmem:[#allocation65_spill] sm:$0xff] }
 0x1cb   : > { %v4437_v35 = vpop.permute.xlu1 %797  ;;  %v4441_v60 = vpop.permute.xlu2 %849 }
 0x1cc   : > { %7551 = vst [vmem:[#allocation170_spill] sm:$0xff] %v4437_v35  ;;  %949 = vrot.lane.b32.xlu0 %v7552_v33, %s3402_s29  ;;  %v7561_v33 = vld [vmem:[#allocation66_spill] sm:$0xff] }
 0x1cd   : > { %7553 = vst [vmem:[#allocation171_spill] sm:$0xff] %v4441_v60  ;;  %v7562_v60 = vld [vmem:[#allocation70_spill] sm:$0xff] }
 0x1ce   : > { %v4443_v2 = vpop.permute.xlu0 %833 }
 0x1cf   : > { %7554 = vst [vmem:[#allocation172_spill] sm:$0xff] %v4443_v2 }
 0x1d1   : > { %951 = vrot.lane.b32.xlu1 %v7555_v54, %s3402_s29  ;;  %953 = vrot.lane.b32.xlu2 %v7556_v40, %s3402_s29  ;;  %v7564_v54 = vld [vmem:[#allocation71_spill] sm:$0xff] }
 0x1d3   : > { %v4449_v53 = vpop.permute.xlu1 %835  ;;  %v4453_v58 = vpop.permute.xlu2 %855 }
 0x1d4   : > { %7557 = vst [vmem:[#allocation173_spill] sm:$0xff] %v4449_v53  ;;  %955 = vrot.lane.b32.xlu0 %v7558_v31, %s3402_s29  ;;  %v7567_v31 = vld [vmem:[#allocation72_spill] sm:$0xff] }
 0x1d5   : > { %7559 = vst [vmem:[#allocation174_spill] sm:$0xff] %v4453_v58  ;;  %v7568_v58 = vld [vmem:[#allocation76_spill] sm:$0xff] }
 0x1d6   : > { %v4455_v35 = vpop.permute.xlu0 %839 }
 0x1d7   : > { %7560 = vst [vmem:[#allocation175_spill] sm:$0xff] %v4455_v35 }
 0x1d9   : > { %957 = vrot.lane.b32.xlu1 %v7561_v33, %s3402_s29  ;;  %959 = vrot.lane.b32.xlu2 %v7562_v60, %s3402_s29  ;;  %v7570_v33 = vld [vmem:[#allocation77_spill] sm:$0xff] }
 0x1db   : > { %v4461_v2 = vpop.permute.xlu1 %841  ;;  %v4465_v40 = vpop.permute.xlu2 %861 }
 0x1dc   : > { %7563 = vst [vmem:[#allocation176_spill] sm:$0xff] %v4461_v2  ;;  %961 = vrot.lane.b32.xlu0 %v7564_v54, %s3402_s29  ;;  %v7573_v54 = vld [vmem:[#allocation78_spill] sm:$0xff] }
 0x1dd   : > { %7565 = vst [vmem:[#allocation177_spill] sm:$0xff] %v4465_v40  ;;  %v7574_v40 = vld [vmem:[#allocation82_spill] sm:$0xff] }
 0x1de   : > { %v4467_v53 = vpop.permute.xlu0 %845 }
 0x1df   : > { %7566 = vst [vmem:[#allocation178_spill] sm:$0xff] %v4467_v53 }
 0x1e1   : > { %963 = vrot.lane.b32.xlu1 %v7567_v31, %s3402_s29  ;;  %965 = vrot.lane.b32.xlu2 %v7568_v58, %s3402_s29  ;;  %v7576_v31 = vld [vmem:[#allocation83_spill] sm:$0xff] }
 0x1e3   : > { %v4473_v35 = vpop.permute.xlu1 %847  ;;  %v4477_v60 = vpop.permute.xlu2 %867 }
 0x1e4   : > { %7569 = vst [vmem:[#allocation179_spill] sm:$0xff] %v4473_v35  ;;  %967 = vrot.lane.b32.xlu0 %v7570_v33, %s3402_s29  ;;  %v7578_v33 = vld [vmem:[#allocation84_spill] sm:$0xff] }
 0x1e5   : > { %7571 = vst [vmem:[#allocation180_spill] sm:$0xff] %v4477_v60 }
 0x1e6   : > { %v4479_v2 = vpop.permute.xlu0 %851 }
 0x1e7   : > { %7572 = vst [vmem:[#allocation181_spill] sm:$0xff] %v4479_v2  ;;  %v7579_v2 = vld [vmem:[#allocation88_spill] sm:$0xff] }
 0x1e9   : > { %969 = vrot.lane.b32.xlu1 %v7573_v54, %s3402_s29  ;;  %971 = vrot.lane.b32.xlu2 %v7574_v40, %s3402_s29  ;;  %v7580_v54 = vld [vmem:[#allocation89_spill] sm:$0xff] }
 0x1eb   : > { %v4485_v53 = vpop.permute.xlu1 %853  ;;  %v4489_v58 = vpop.permute.xlu2 %873 }
 0x1ec   : > { %7575 = vst [vmem:[#allocation182_spill] sm:$0xff] %v4485_v53  ;;  %973 = vrot.lane.b32.xlu0 %v7576_v31, %s3402_s29  ;;  %v7582_v31 = vld [vmem:[#allocation90_spill] sm:$0xff] }
 0x1ee   : > { %v4491_v35 = vpop.permute.xlu0 %857 }
 0x1ef   : > { %7577 = vst [vmem:[#allocation183_spill] sm:$0xff] %v4491_v35 }
 0x1f1   : > { %975 = vrot.lane.b32.xlu1 %v7578_v33, %s3402_s29  ;;  %977 = vrot.lane.b32.xlu2 %v7579_v2, %s3402_s29 }
 0x1f3   : > { %v4497_v60 = vpop.permute.xlu1 %859  ;;  %v4501_v40 = vpop.permute.xlu2 %879 }
 0x1f4   : > { %979 = vrot.lane.b32.xlu0 %v7580_v54, %s3402_s29 }
 0x1f6   : > { %v4503_v53 = vpop.permute.xlu0 %863 }
 0x1f7   : > { %7581 = vst [vmem:[#allocation184_spill] sm:$0xff] %v4503_v53 }
 0x1f9   : > { %981 = vrot.lane.b32.xlu1 %v7582_v31, %s3402_s29  ;;  %983 = vrot.lane.b32.xlu2 %v4119_v46, %s3402_s29 }
 0x1fb   : > { %v4509_v35 = vpop.permute.xlu1 %865  ;;  %v4513_v2 = vpop.permute.xlu2 %885 }
 0x1fc   : > { %7583 = vst [vmem:[#allocation185_spill] sm:$0xff] %v4509_v35  ;;  %985 = vrot.lane.b32.xlu0 %v4116_v44, %s3402_s29 }
 0x1fd   : > { %7584 = vst [vmem:[#allocation186_spill] sm:$0xff] %v4513_v2 }
 0x1fe   : > { %v4515_v33 = vpop.permute.xlu0 %869 }
 0x201   : > { %987 = vrot.lane.b32.xlu1 %v4122_v37, %s3402_s29  ;;  %989 = vrot.lane.b32.xlu2 %v3848_v61, %s3402_s29 }
 0x203   : > { %v4521_v54 = vpop.permute.xlu1 %871  ;;  %v4525_v46 = vpop.permute.xlu2 %891 }
 0x204   : > { %1022 = vrot.lane.b32.xlu0 %v3478_v5, %s3403_s30  ;;  %7585 = vst [vmem:[#allocation187_spill] sm:$0xff] %v4525_v46  ;;  %v7607_v46 = vld [vmem:[#allocation27_spill] sm:$0xff] }
 0x206   : > { %v4527_v31 = vpop.permute.xlu0 %875 }
 0x209   : > { %1024 = vrot.lane.b32.xlu1 %v3460_v1, %s3403_s30  ;;  %1026 = vrot.lane.b32.xlu2 %v3475_v4, %s3403_s30 }
 0x20b   : > { %v4533_v37 = vpop.permute.xlu1 %877  ;;  %v4537_v44 = vpop.permute.xlu2 %929 }
 0x20c   : > { %1028 = vrot.lane.b32.xlu0 %v3481_v6, %s3403_s30 }
 0x20e   : > { %v4539_v35 = vpop.permute.xlu0 %881 }
 0x211   : > { %1030 = vrot.lane.b32.xlu1 %v3493_v8, %s3403_s30  ;;  %1032 = vrot.lane.b32.xlu2 %v3490_v7, %s3403_s30 }
 0x213   : > { %v4545_v5 = vpop.permute.xlu1 %883  ;;  %v4549_v1 = vpop.permute.xlu2 %935 }
 0x214   : > { %7586 = vst [vmem:[#allocation188_spill] sm:$0xff] %v4545_v5  ;;  %1034 = vrot.lane.b32.xlu0 %v3496_v9, %s3403_s30 }
 0x216   : > { %v4551_v4 = vpop.permute.xlu0 %887 }
 0x217   : > { %7587 = vst [vmem:[#allocation189_spill] sm:$0xff] %v4551_v4 }
 0x219   : > { %1036 = vrot.lane.b32.xlu1 %v3508_v11, %s3403_s30  ;;  %1038 = vrot.lane.b32.xlu2 %v3505_v10, %s3403_s30 }
 0x21b   : > { %v4557_v6 = vpop.permute.xlu1 %889  ;;  %v4561_v7 = vpop.permute.xlu2 %941 }
 0x21c   : > { %7588 = vst [vmem:[#allocation190_spill] sm:$0xff] %v4557_v6  ;;  %1040 = vrot.lane.b32.xlu0 %v3511_v12, %s3403_s30  ;;  %v7612_v6 = vld [vmem:[#allocation157_spill] sm:$0xff] }
 0x21e   : > { %v4563_v8 = vpop.permute.xlu0 %893 }
 0x21f   : > { %7589 = vst [vmem:[#allocation191_spill] sm:$0xff] %v4563_v8 }
 0x221   : > { %1042 = vrot.lane.b32.xlu1 %v3523_v14, %s3403_s30  ;;  %1044 = vrot.lane.b32.xlu2 %v3520_v13, %s3403_s30 }
 0x223   : > { %v4569_v9 = vpop.permute.xlu1 %895  ;;  %v4573_v10 = vpop.permute.xlu2 %947 }
 0x224   : > { %7590 = vst [vmem:[#allocation192_spill] sm:$0xff] %v4569_v9  ;;  %1046 = vrot.lane.b32.xlu0 %v3526_v15, %s3403_s30 }
 0x226   : > { %v4575_v11 = vpop.permute.xlu0 %931 }
 0x229   : > { %1048 = vrot.lane.b32.xlu1 %v3538_v17, %s3403_s30  ;;  %1050 = vrot.lane.b32.xlu2 %v3535_v16, %s3403_s30 }
 0x22b   : > { %v4581_v12 = vpop.permute.xlu1 %933  ;;  %v4585_v13 = vpop.permute.xlu2 %953 }
 0x22c   : > { %1052 = vrot.lane.b32.xlu0 %v3541_v18, %s3403_s30 }
 0x22e   : > { %v4587_v14 = vpop.permute.xlu0 %937 }
 0x231   : > { %1054 = vrot.lane.b32.xlu1 %v3553_v20, %s3403_s30  ;;  %1056 = vrot.lane.b32.xlu2 %v3550_v19, %s3403_s30 }
 0x233   : > { %v4593_v15 = vpop.permute.xlu1 %939  ;;  %v4597_v16 = vpop.permute.xlu2 %959 }
 0x234   : > { %1058 = vrot.lane.b32.xlu0 %v3556_v21, %s3403_s30  ;;  %7591 = vst [vmem:[#allocation193_spill] sm:$0xff] %v4597_v16 }
 0x236   : > { %v4599_v17 = vpop.permute.xlu0 %943 }
 0x239   : > { %1060 = vrot.lane.b32.xlu1 %v3568_v23, %s3403_s30  ;;  %1062 = vrot.lane.b32.xlu2 %v3565_v22, %s3403_s30 }
 0x23b   : > { %v4605_v18 = vpop.permute.xlu1 %945  ;;  %v4609_v19 = vpop.permute.xlu2 %965 }
 0x23c   : > { %1064 = vrot.lane.b32.xlu0 %v3571_v24, %s3403_s30 }
 0x23e   : > { %v4611_v20 = vpop.permute.xlu0 %949 }
 0x241   : > { %1066 = vrot.lane.b32.xlu1 %v3583_v26, %s3403_s30  ;;  %1068 = vrot.lane.b32.xlu2 %v3580_v25, %s3403_s30 }
 0x243   : > { %v4617_v21 = vpop.permute.xlu1 %951  ;;  %v4621_v22 = vpop.permute.xlu2 %971 }
 0x244   : > { %1070 = vrot.lane.b32.xlu0 %v3586_v27, %s3403_s30 }
 0x246   : > { %v4623_v23 = vpop.permute.xlu0 %955 }
 0x247   : > { %7592 = vst [vmem:[#allocation194_spill] sm:$0xff] %v4623_v23  ;;  %v7631_v23 = vld [vmem:[#allocation35_spill] sm:$0xff] }
 0x249   : > { %1072 = vrot.lane.b32.xlu1 %v3598_v29, %s3403_s30  ;;  %1074 = vrot.lane.b32.xlu2 %v3595_v28, %s3403_s30  ;;  %v7595_v29 = vmov 0.0  }
 0x24b   : > { %v4629_v24 = vpop.permute.xlu1 %957  ;;  %v4633_v25 = vpop.permute.xlu2 %977 }
 0x24c   : > { %7593 = vst [vmem:[#allocation195_spill] sm:$0xff] %v4629_v24  ;;  %1076 = vrot.lane.b32.xlu0 %v3601_v30, %s3403_s30 }
 0x24e   : > { %v4635_v26 = vpop.permute.xlu0 %961 }
 0x24f   : > { %7594 = vst [vmem:[#allocation196_spill] sm:$0xff] %v4635_v26 }
 0x251   : > { %1078 = vrot.lane.b32.xlu1 %v4083_v38, %s3403_s30  ;;  %1080 = vrot.lane.b32.xlu2 %v4097_v59, %s3403_s30 }
 0x253   : > { %v4641_v27 = vpop.permute.xlu1 %963  ;;  %v4645_v28 = vpop.permute.xlu2 %983 }
 0x254   : > { %1082 = vrot.lane.b32.xlu0 %v7595_v29, %s3403_s30  ;;  %7596 = vst [vmem:[#allocation197_spill] sm:$0xff] %v4645_v28 }
 0x256   : > { %v4647_v9 = vpop.permute.xlu0 %967 }
 0x259   : > { %1115 = vrot.lane.b32.xlu1 %v3632_v41, %s3404_s6  ;;  %1117 = vrot.lane.b32.xlu2 %v3636_v42, %s3404_s6 }
 0x25b   : > { %v4653_v30 = vpop.permute.xlu1 %969  ;;  %v4657_v38 = vpop.permute.xlu2 %989 }
 0x25c   : > { %1119 = vrot.lane.b32.xlu0 %v3639_v43, %s3404_s6  ;;  %7597 = vst [vmem:[#allocation198_spill] sm:$0xff] %v4657_v38  ;;  %v7604_v38 = vld [vmem:[#allocation21_spill] sm:$0xff] }
 0x25e   : > { %v4659_v59 = vpop.permute.xlu0 %973 }
 0x261   : > { %1121 = vrot.lane.b32.xlu1 %v3653_v47, %s3404_s6  ;;  %1123 = vrot.lane.b32.xlu2 %v3656_v48, %s3404_s6 }
 0x263   : > { %v4665_v29 = vpop.permute.xlu1 %975  ;;  %v4669_v41 = vpop.permute.xlu2 %1026 }
 0x264   : > { %1125 = vrot.lane.b32.xlu0 %v3660_v49, %s3404_s6 }
 0x266   : > { %v4671_v42 = vpop.permute.xlu0 %979 }
 0x267   : > { %7598 = vst [vmem:[#allocation199_spill] sm:$0xff] %v4671_v42 }
 0x269   : > { %1127 = vrot.lane.b32.xlu1 %v3675_v55, %s3404_s6  ;;  %1129 = vrot.lane.b32.xlu2 %v3679_v56, %s3404_s6 }
 0x26b   : > { %v4677_v43 = vpop.permute.xlu1 %981  ;;  %v4681_v47 = vpop.permute.xlu2 %1032 }
 0x26c   : > { %7599 = vst [vmem:[#allocation200_spill] sm:$0xff] %v4677_v43  ;;  %1131 = vrot.lane.b32.xlu0 %v3682_v57, %s3404_s6  ;;  %v7620_v43 = vld [vmem:[#allocation61_spill] sm:$0xff] }
 0x26e   : > { %v4683_v48 = vpop.permute.xlu0 %985 }
 0x26f   : > { %7600 = vst [vmem:[#allocation201_spill] sm:$0xff] %v4683_v48 }
 0x271   : > { %1133 = vrot.lane.b32.xlu1 %v3698_v62, %s3404_s6  ;;  %1135 = vrot.lane.b32.xlu2 %v3701_v63, %s3404_s6 }
 0x273   : > { %v4689_v49 = vpop.permute.xlu1 %987  ;;  %v4695_v56 = vpop.permute.xlu2 %1038 }
 0x274   : > { %7601 = vst [vmem:[#allocation202_spill] sm:$0xff] %v4689_v49  ;;  %1137 = vrot.lane.b32.xlu0 %v3705_v32, %s3404_s6 }
 0x276   : > { %v4693_v55 = vpop.permute.xlu0 %1022 }
 0x279   : > { %1139 = vrot.lane.b32.xlu1 %v3724_v45, %s3404_s6  ;;  %1141 = vrot.lane.b32.xlu2 %v3728_v50, %s3404_s6 }
 0x27b   : > { %v4701_v57 = vpop.permute.xlu1 %1024  ;;  %v4707_v63 = vpop.permute.xlu2 %1044 }
 0x27c   : > { %1143 = vrot.lane.b32.xlu0 %v3731_v51, %s3404_s6 }
 0x27e   : > { %v4705_v62 = vpop.permute.xlu0 %1028 }
 0x281   : > { %1145 = vrot.lane.b32.xlu1 %v3749_v34, %s3404_s6  ;;  %1147 = vrot.lane.b32.xlu2 %v3752_v39, %s3404_s6  ;;  %v7603_v34 = vld [vmem:[#allocation17_spill] sm:$0xff] }
 0x283   : > { %v4713_v32 = vpop.permute.xlu1 %1030  ;;  %v4723_v50 = vpop.permute.xlu2 %1050 }
 0x284   : > { %1149 = vrot.lane.b32.xlu0 %v3756_v0, %s3404_s6  ;;  %7602 = vst [vmem:[#allocation203_spill] sm:$0xff] %v4723_v50  ;;  %v7605_v0 = vld [vmem:[#allocation22_spill] sm:$0xff]  ;;  %v3384_v50 = vunpack.i.l.bf16 %v7620_v43  ;;  %v7625_v43 = vld [vmem:[#allocation140_spill] sm:$0xff] }
 0x286   : > { %v4717_v45 = vpop.permute.xlu0 %1034 }
 0x289   : > { %1151 = vrot.lane.b32.xlu1 %v3775_v52, %s3404_s6  ;;  %1153 = vrot.lane.b32.xlu2 %v7509_v36, %s3404_s6  ;;  %v7606_v52 = vld [vmem:[#allocation23_spill] sm:$0xff] }
 0x28b   : > { %v4725_v51 = vpop.permute.xlu1 %1036  ;;  %v4739_v36 = vpop.permute.xlu2 %1056 }
 0x28c   : > { %1155 = vrot.lane.b32.xlu0 %v7603_v34, %s3404_s6  ;;  %v7608_v34 = vld [vmem:[#allocation28_spill] sm:$0xff] }
 0x28e   : > { %v4729_v39 = vpop.permute.xlu0 %1040 }
 0x291   : > { %1157 = vrot.lane.b32.xlu1 %v7604_v38, %s3404_s6  ;;  %1159 = vrot.lane.b32.xlu2 %v7605_v0, %s3404_s6 }
 0x293   : > { %v4735_v8 = vpop.permute.xlu1 %1042  ;;  %v4753_v0 = vpop.permute.xlu2 %1062 }
 0x294   : > { %1161 = vrot.lane.b32.xlu0 %v7606_v52, %s3404_s6  ;;  %v7611_v52 = vld [vmem:[#allocation34_spill] sm:$0xff] }
 0x296   : > { %v4741_v49 = vpop.permute.xlu0 %1046 }
 0x299   : > { %1163 = vrot.lane.b32.xlu1 %v7607_v46, %s3404_s6  ;;  %1165 = vrot.lane.b32.xlu2 %v7608_v34, %s3404_s6  ;;  %v7614_v46 = vld [vmem:[#allocation160_spill] sm:$0xff]  ;;  %v1474_v34 = vld [vmem:[%s7158_s1 + $0x20] sm:$0xf] }
 0x29a   : > { %3277 = vmatpush.msk.msra.mxu0 %vm1576_vm2, %v1474_v34  ;;  %3346 = vmatpush.msk.msra.mxu3 %vm1576_vm2, %v1474_v34  ;;  %v7615_v34 = vld [vmem:[#allocation2_spill] sm:$0xff] }
 0x29b   : > { %v4747_v48 = vpop.permute.xlu1 %1048 }
 0x29c   : > { %7609 = vst [vmem:[#allocation17_spill] sm:$0xff] %v4747_v48  ;;  %1167 = vrot.lane.b32.xlu0 %v7525_v3, %s3404_s6  ;;  %v7626_v48 = vld [vmem:[#allocation172_spill] sm:$0xff] }
 0x29e   : > { %v4751_v38 = vpop.permute.xlu0 %1052 }
 0x29f   : > { %7610 = vst [vmem:[#allocation21_spill] sm:$0xff] %v4751_v38  ;;  %v1470_v38 = vld [vmem:[%s7158_s1] sm:$0xff] }
 0x2a1   : > { %1169 = vrot.lane.b32.xlu1 %v7611_v52, %s3404_s6  ;;  %1171 = vrot.lane.b32.xlu2 %v7612_v6, %s3404_s6  ;;  %v1473_v52 = vld [vmem:[%s7158_s1 + $0x18] sm:$0xff]  ;;  %v1472_v6 = vld [vmem:[%s7158_s1 + $0x10] sm:$0xff] }
 0x2a2   : > { %1592 = vmatpush.msra.mxu0 %v1473_v52  ;;  %3347 = vmatpush.msra.mxu3 %v1473_v52 }
 0x2a3   : > { %v4759_v26 = vpop.permute.xlu1 %1054 }
 0x2a4   : > { %7613 = vst [vmem:[#allocation22_spill] sm:$0xff] %v4759_v26  ;;  %1173 = vrot.lane.b32.xlu0 %v7614_v46, %s3404_s6  ;;  %v1471_v46 = vld [vmem:[%s7158_s1 + $0x8] sm:$0xff]  ;;  %1593 = vmatpush.msra.mxu0 %v1472_v6  ;;  %v4777_v26 = vpop.permute.xlu2 %1068 }
 0x2a5   : > { %3348 = vmatpush.msra.mxu3 %v1472_v6 }
 0x2a6   : > { %v4766_v3 = vpop.permute.xlu0 %1058  ;;  %1594 = vmatpush.msra.mxu0 %v1471_v46 }
 0x2a7   : > { %3349 = vmatpush.msra.mxu3 %v1471_v46 }
 0x2a8   : > { %1595 = vmatpush.msra.mxu0 %v1470_v38 }
 0x2a9   : > { %1175 = vrot.lane.b32.xlu1 %v7615_v34, %s3404_s6  ;;  %3350 = vmatpush.msra.mxu3 %v1470_v38  ;;  %v7622_v38 = vld [vmem:[#allocation6_spill] sm:$0xff] }
 0x2ab   : > { %v4781_v28 = vpop.permute.xlu1 %1060 }
 0x2ac   : > { %v4788_v4 = vpop.permute.xlu2 %1074 }
 0x2ad   : > { %7616 = vst [vmem:[#allocation23_spill] sm:$0xff] %v4788_v4  ;;  %v1209_v4 = vsel %vm1208_vm3, %v3848_v61, %v7622_v38 }
 0x2ae   : > { %v4786_v52 = vpop.permute.xlu0 %1064  ;;  %v1241_v42 = vsel %vm1240_vm5, %v1209_v4, %v3384_v50 }
 0x2b3   : > { %v4790_v6 = vpop.permute.xlu1 %1066 }
 0x2b4   : > { %v4796_v34 = vpop.permute.xlu2 %1080 }
 0x2b5   : > { %7618 = vst [vmem:[#allocation28_spill] sm:$0xff] %v4796_v34 }
 0x2b6   : > { %v4792_v16 = vpop.permute.xlu0 %1070 }
 0x2bb   : > { %v4794_v53 = vpop.permute.xlu1 %1072 }
 0x2bc   : > { %7617 = vst [vmem:[#allocation27_spill] sm:$0xff] %v4794_v53  ;;  %v7624_v53 = vld [vmem:[#allocation99_spill] sm:$0xff] }
 0x2bd   : > { %v1273_v34 = vsel %vm1272_vm4, %v1241_v42, %v7624_v53 }
 0x2be   : > { %v4798_v46 = vpop.permute.xlu0 %1076 }
 0x2bf   : > { %7619 = vst [vmem:[#allocation34_spill] sm:$0xff] %v4798_v46  ;;  %v1118_v46 = vpop.permute.xlu2 %1117 }
 0x2c3   : > { %v4801_v2 = vpop.permute.xlu1 %1078 }
 0x2c4   : > { %7621 = vst [vmem:[#allocation157_spill] sm:$0xff] %v4801_v2  ;;  %v1306_v2 = vsel %vm1305_vm6, %v1273_v34, %v7625_v43  ;;  %v7627_v43 = vld [vmem:[#allocation109_spill] sm:$0xff] }
 0x2c5   : > { %v1339_v5 = vsel %vm1338_vm8, %v1306_v2, %v7626_v48  ;;  %v1274_v34 = vsel %vm1272_vm4, %v1241_v42, %v7627_v43  ;;  %v7629_v48 = vld [vmem:[#allocation173_spill] sm:$0xff] }
 0x2c6   : > { %v4806_v24 = vpop.permute.xlu0 %1082  ;;  %v1372_v38 = vsel %vm1371_vm7, %v1339_v5, %v4537_v44 }
 0x2c7   : > { %7623 = vst [vmem:[#allocation160_spill] sm:$0xff] %v4806_v24  ;;  %v1405_v4 = vsel %vm1404_vm9, %v1372_v38, %v4693_v55  ;;  %v7628_v24 = vld [vmem:[#allocation132_spill] sm:$0xff]  ;;  %v1124_v5 = vpop.permute.xlu2 %1123 }
 0x2c8   : > { %v1307_v2 = vsel %vm1305_vm6, %v1274_v34, %v7628_v24  ;;  %v7632_v24 = vld [vmem:[#allocation44_spill] sm:$0xff] }
 0x2c9   : > { %v1340_v44 = vsel %vm1338_vm8, %v1307_v2, %v7629_v48  ;;  %v7633_v2 = vld [vmem:[#allocation110_spill] sm:$0xff] }
 0x2ca   : > { %v1373_v55 = vsel %vm1371_vm7, %v1340_v44, %v4575_v11  ;;  %v7634_v11 = vld [vmem:[#allocation142_spill] sm:$0xff] }
 0x2cb   : > { %v1116_v50 = vpop.permute.xlu1 %1115  ;;  %v1406_v38 = vsel %vm1404_vm9, %v1373_v55, %v4701_v57  ;;  %v7635_v57 = vld [vmem:[#allocation165_spill] sm:$0xff] }
 0x2cc   : > { %v1438_v53 = vsel %vm1437_vm11, %v1405_v4, %v1116_v50  ;;  %v1439_v50 = vsel %vm1437_vm11, %v1406_v38, %v1118_v46 }
 0x2cd   : > { %3278 = vmatmul.msk.f32.vlgmr.msra.gmra.mxu0 %vm1479_vm10, %v1438_v53  ;;  %v7630_v53 = vld [vmem:[#allocation9_spill] sm:$0xff] }
 0x2ce   : > { %v1120_v61 = vpop.permute.xlu0 %1119  ;;  %v1210_v42 = vsel %vm1208_vm3, %v7631_v23, %v7630_v53 }
 0x2cf   : > { %v1242_v34 = vsel %vm1240_vm5, %v1210_v42, %v7632_v24  ;;  %v4848_v38 = vpop.permute.xlu2 %1129  ;;  %v7636_v42 = vld [vmem:[#allocation8_spill] sm:$0xff] }
 0x2d0   : > { %v1275_v48 = vsel %vm1272_vm4, %v1242_v34, %v7633_v2  ;;  %v7637_v24 = vld [vmem:[#allocation36_spill] sm:$0xff] }
 0x2d1   : > { %v1308_v44 = vsel %vm1305_vm6, %v1275_v48, %v7634_v11  ;;  %v1211_v34 = vsel %vm1208_vm3, %v7637_v24, %v7636_v42  ;;  %v7638_v48 = vld [vmem:[#allocation63_spill] sm:$0xff]  ;;  %v7639_v11 = vld [vmem:[#allocation102_spill] sm:$0xff] }
 0x2d2   : > { %v1341_v55 = vsel %vm1338_vm8, %v1308_v44, %v7635_v57  ;;  %v7640_v44 = vld [vmem:[#allocation143_spill] sm:$0xff] }
 0x2d3   : > { %v1122_v4 = vpop.permute.xlu1 %1121  ;;  %v1374_v46 = vsel %vm1371_vm7, %v1341_v55, %v4581_v12  ;;  %v1243_v12 = vsel %vm1240_vm5, %v1211_v34, %v7638_v48  ;;  %v7641_v55 = vld [vmem:[#allocation175_spill] sm:$0xff]  ;;  %v7643_v34 = vld [vmem:[#allocation41_spill] sm:$0xff] }
 0x2d4   : > { %v1407_v23 = vsel %vm1404_vm9, %v1374_v46, %v4669_v41  ;;  %v1276_v41 = vsel %vm1272_vm4, %v1243_v12, %v7639_v11  ;;  %v7642_v24 = vld [vmem:[#allocation11_spill] sm:$0xff] }
 0x2d5   : > { %3279 = vmatmul.msk.f32.gmra.mxu0 %vm1479_vm10, %v1439_v50  ;;  %v1440_v53 = vsel %vm1437_vm11, %v1407_v23, %v1120_v61  ;;  %v1309_v57 = vsel %vm1305_vm6, %v1276_v41, %v7640_v44  ;;  %v1212_v48 = vsel %vm1208_vm3, %v7643_v34, %v7642_v24  ;;  %v7644_v41 = vld [vmem:[#allocation67_spill] sm:$0xff]  ;;  %v7645_v44 = vld [vmem:[#allocation112_spill] sm:$0xff] }
 0x2d6   : > { %v1126_v43 = vpop.permute.xlu0 %1125  ;;  %v1342_v61 = vsel %vm1338_vm8, %v1309_v57, %v7641_v55  ;;  %v7646_v57 = vld [vmem:[#allocation135_spill] sm:$0xff] }
 0x2d7   : > { %v1375_v46 = vsel %vm1371_vm7, %v1342_v61, %v4549_v1  ;;  %v4877_v12 = vpop.permute.xlu2 %1135  ;;  %v1244_v1 = vsel %vm1240_vm5, %v1212_v48, %v7644_v41  ;;  %v7648_v34 = vld [vmem:[#allocation3_spill] sm:$0xff]  ;;  %v7649_v48 = vld [vmem:[#allocation40_spill] sm:$0xff] }
 0x2d8   : > { %v1408_v23 = vsel %vm1404_vm9, %v1375_v46, %v4705_v62  ;;  %v1277_v62 = vsel %vm1272_vm4, %v1244_v1, %v7645_v44  ;;  %v1213_v41 = vsel %vm1208_vm3, %v7649_v48, %v7648_v34  ;;  %v7651_v44 = vld [vmem:[#allocation50_spill] sm:$0xff]  ;;  %v7657_v48 = vld [vmem:[#allocation125_spill] sm:$0xff] }
 0x2d9   : > { %v1310_v55 = vsel %vm1305_vm6, %v1277_v62, %v7646_v57  ;;  %v1245_v62 = vsel %vm1240_vm5, %v1213_v41, %v7651_v44  ;;  %v7652_v57 = vld [vmem:[#allocation31_spill] sm:$0xff]  ;;  %v7659_v44 = vld [vmem:[#allocation156_spill] sm:$0xff] }
 0x2db   : > { %v4850_v50 = vpop.permute.xlu1 %1127 }
 0x2dd   : > { %3280 = vmatmul.msk.f32.gmra.mxu0 %vm1479_vm10, %v1440_v53  ;;  %v1441_v53 = vsel %vm1437_vm11, %v1408_v23, %v1122_v4  ;;  %v7647_v4 = vld [vmem:[#allocation176_spill] sm:$0xff] }
 0x2de   : > { %v4856_v2 = vpop.permute.xlu0 %1131  ;;  %v1343_v61 = vsel %vm1338_vm8, %v1310_v55, %v7647_v4 }
 0x2df   : > { %v1376_v46 = vsel %vm1371_vm7, %v1343_v61, %v4587_v14  ;;  %v7653_v14 = vld [vmem:[#allocation65_spill] sm:$0xff]  ;;  %v4910_v61 = vpop.permute.xlu2 %1141 }
 0x2e0   : > { %v1409_v23 = vsel %vm1404_vm9, %v1376_v46, %v4713_v32  ;;  %v1225_v55 = vsel %vm1208_vm3, %v7653_v14, %v7652_v57  ;;  %v7654_v32 = vld [vmem:[#allocation113_spill] sm:$0xff]  ;;  %v7660_v14 = vld [vmem:[#allocation180_spill] sm:$0xff] }
 0x2e1   : > { %v1278_v4 = vsel %vm1272_vm4, %v1245_v62, %v7654_v32 }
 0x2e3   : > { %v4871_v42 = vpop.permute.xlu1 %1133 }
 0x2e5   : > { %3281 = vmatmul.msk.f32.gmra.mxu0 %vm1479_vm10, %v1441_v53  ;;  %v1442_v53 = vsel %vm1437_vm11, %v1409_v23, %v1124_v5  ;;  %v7655_v5 = vld [vmem:[#allocation74_spill] sm:$0xff]  ;;  %v7656_v23 = vld [vmem:[#allocation145_spill] sm:$0xff] }
 0x2e6   : > { %v4879_v11 = vpop.permute.xlu0 %1137  ;;  %v1257_v46 = vsel %vm1240_vm5, %v1225_v55, %v7655_v5  ;;  %v1311_v34 = vsel %vm1305_vm6, %v1278_v4, %v7656_v23  ;;  %v7662_v23 = vld [vmem:[#allocation42_spill] sm:$0xff] }
 0x2eb   : > { %v4894_v24 = vpop.permute.xlu1 %1139 }
 0x2ed   : > { %3282 = vmatmul.msk.f32.gmra.mxu0 %vm1479_vm10, %v1442_v53  ;;  %v1290_v53 = vsel %vm1272_vm4, %v1257_v46, %v7657_v48 }
 0x2ee   : > { %v4900_v1 = vpop.permute.xlu0 %1143  ;;  %v1323_v57 = vsel %vm1305_vm6, %v1290_v53, %v7659_v44  ;;  %v7663_v53 = vld [vmem:[#allocation69_spill] sm:$0xff] }
 0x2ef   : > { %7650 = vst [vmem:[#allocation6_spill] sm:$0xff] %v4900_v1  ;;  %v7658_v1 = vld [vmem:[#allocation168_spill] sm:$0xff]  ;;  %v1356_v32 = vsel %vm1338_vm8, %v1323_v57, %v7660_v14  ;;  %v7664_v44 = vld [vmem:[#allocation13_spill] sm:$0xff]  ;;  %v7665_v57 = vld [vmem:[#allocation66_spill] sm:$0xff] }
 0x2f0   : > { %v1344_v41 = vsel %vm1338_vm8, %v1311_v34, %v7658_v1  ;;  %v1389_v4 = vsel %vm1371_vm7, %v1356_v32, %v4641_v27  ;;  %v7661_v1 = vld [vmem:[#allocation4_spill] sm:$0xff]  ;;  %v1226_v27 = vsel %vm1208_vm3, %v7665_v57, %v7664_v44  ;;  %v7667_v14 = vld [vmem:[#allocation93_spill] sm:$0xff]  ;;  %v7668_v32 = vld [vmem:[#allocation146_spill] sm:$0xff] }
 0x2f1   : > { %v1377_v62 = vsel %vm1371_vm7, %v1344_v41, %v4593_v15  ;;  %v1214_v34 = vsel %vm1208_vm3, %v7662_v23, %v7661_v1  ;;  %v1422_v15 = vsel %vm1404_vm9, %v1389_v4, %v4739_v36  ;;  %v1258_v36 = vsel %vm1240_vm5, %v1226_v27, %v7667_v14  ;;  %v7669_v4 = vld [vmem:[#allocation117_spill] sm:$0xff]  ;;  %v7670_v1 = vld [vmem:[#allocation178_spill] sm:$0xff] }
 0x2f2   : > { %v1410_v55 = vsel %vm1404_vm9, %v1377_v62, %v4681_v47  ;;  %v1246_v47 = vsel %vm1240_vm5, %v1214_v34, %v7663_v53  ;;  %v4956_v34 = vpop.permute.xlu2 %1147 }
 0x2f3   : > { %v4928_v5 = vpop.permute.xlu1 %1145  ;;  %v1443_v46 = vsel %vm1437_vm11, %v1410_v55, %v1126_v43  ;;  %v7666_v43 = vld [vmem:[#allocation105_spill] sm:$0xff] }
 0x2f4   : > { %v1279_v62 = vsel %vm1272_vm4, %v1246_v47, %v7666_v43  ;;  %v7672_v43 = vld [vmem:[#allocation12_spill] sm:$0xff] }
 0x2f5   : > { %3283 = vmatmul.msk.f32.gmra.mxu0 %vm1479_vm10, %v1443_v46  ;;  %v1312_v55 = vsel %vm1305_vm6, %v1279_v62, %v7668_v32  ;;  %v1291_v46 = vsel %vm1272_vm4, %v1258_v36, %v7669_v4  ;;  %v7673_v62 = vld [vmem:[#allocation46_spill] sm:$0xff]  ;;  %v7675_v32 = vld [vmem:[#allocation32_spill] sm:$0xff]  ;;  %v7677_v4 = vld [vmem:[#allocation115_spill] sm:$0xff] }
 0x2f6   : > { %v1150_v48 = vpop.permute.xlu0 %1149  ;;  %v1345_v23 = vsel %vm1338_vm8, %v1312_v55, %v7670_v1  ;;  %v1215_v14 = vsel %vm1208_vm3, %v7673_v62, %v7672_v43  ;;  %v7676_v55 = vld [vmem:[#allocation70_spill] sm:$0xff] }
 0x2f7   : > { %v1455_v41 = vsel %vm1437_vm11, %v1422_v15, %v1150_v48  ;;  %v7671_v15 = vld [vmem:[#allocation29_spill] sm:$0xff]  ;;  %v1378_v53 = vsel %vm1371_vm7, %v1345_v23, %v4561_v7 }
 0x2f8   : > { %3295 = vmatmul.msk.f32.vlgmr.msra.gmra.mxu3 %vm1479_vm10, %v1455_v41  ;;  %v1324_v48 = vsel %vm1305_vm6, %v1291_v46, %v7671_v15  ;;  %v1411_v41 = vsel %vm1404_vm9, %v1378_v53, %v4717_v45  ;;  %v7678_v46 = vld [vmem:[#allocation95_spill] sm:$0xff] }
 0x2f9   : > { %v1357_v47 = vsel %vm1338_vm8, %v1324_v48, %v4515_v33  ;;  %v1444_v27 = vsel %vm1437_vm11, %v1411_v41, %v4850_v50  ;;  %v7674_v33 = vld [vmem:[#allocation73_spill] sm:$0xff]  ;;  %v7680_v15 = vld [vmem:[#allocation127_spill] sm:$0xff]  ;;  %v7682_v41 = vld [vmem:[#allocation16_spill] sm:$0xff] }
 0x2fa   : > { %v1390_v57 = vsel %vm1371_vm7, %v1357_v47, %v4609_v19  ;;  %v1247_v36 = vsel %vm1240_vm5, %v1215_v14, %v7674_v33  ;;  %v1227_v19 = vsel %vm1208_vm3, %v7676_v55, %v7675_v32  ;;  %v7681_v53 = vld [vmem:[#allocation179_spill] sm:$0xff]  ;;  %v1154_v62 = vpop.permute.xlu2 %1153  ;;  %v7683_v33 = vld [vmem:[#allocation14_spill] sm:$0xff] }
 0x2fb   : > { %v1152_v44 = vpop.permute.xlu1 %1151  ;;  %v1423_v7 = vsel %vm1404_vm9, %v1390_v57, %v4766_v3  ;;  %v1280_v50 = vsel %vm1272_vm4, %v1247_v36, %v7677_v4  ;;  %v1259_v1 = vsel %vm1240_vm5, %v1227_v19, %v7678_v46  ;;  %v7679_v3 = vld [vmem:[#allocation138_spill] sm:$0xff]  ;;  %v7684_v36 = vld [vmem:[#allocation47_spill] sm:$0xff]  ;;  %v7688_v4 = vld [vmem:[#allocation116_spill] sm:$0xff] }
 0x2fc   : > { %v1456_v45 = vsel %vm1437_vm11, %v1423_v7, %v1152_v44  ;;  %v1313_v23 = vsel %vm1305_vm6, %v1280_v50, %v7679_v3  ;;  %v1292_v48 = vsel %vm1272_vm4, %v1259_v1, %v7680_v15  ;;  %v7686_v55 = vld [vmem:[#allocation38_spill] sm:$0xff]  ;;  %v7687_v19 = vld [vmem:[#allocation71_spill] sm:$0xff]  ;;  %v7689_v50 = vld [vmem:[#allocation80_spill] sm:$0xff] }
 0x2fd   : > { %3284 = vmatmul.msk.f32.gmra.mxu0 %vm1479_vm10, %v1444_v27  ;;  %v1346_v47 = vsel %vm1338_vm8, %v1313_v23, %v7681_v53  ;;  %v1325_v44 = vsel %vm1305_vm6, %v1292_v48, %v7682_v41  ;;  %v7691_v3 = vld [vmem:[#allocation128_spill] sm:$0xff]  ;;  %v7692_v15 = vld [vmem:[#allocation171_spill] sm:$0xff] }
 0x2fe   : > { %v1379_v57 = vsel %vm1371_vm7, %v1346_v47, %v4599_v17  ;;  %v1358_v27 = vsel %vm1338_vm8, %v1325_v44, %v4521_v54  ;;  %v7685_v54 = vld [vmem:[#allocation56_spill] sm:$0xff]  ;;  %v7693_v53 = vld [vmem:[#allocation159_spill] sm:$0xff] }
 0x2ff   : > { %v1412_v43 = vsel %vm1404_vm9, %v1379_v57, %v4725_v51  ;;  %v1391_v14 = vsel %vm1371_vm7, %v1358_v27, %v4647_v9  ;;  %v1228_v9 = vsel %vm1208_vm3, %v7687_v19, %v7686_v55  ;;  %v1156_v27 = vpop.permute.xlu0 %1155  ;;  %v7702_v19 = vld [vmem:[#allocation120_spill] sm:$0xff] }
 0x300   : > { %3296 = vmatmul.msk.f32.gmra.mxu3 %vm1479_vm10, %v1456_v45  ;;  %v1445_v7 = vsel %vm1437_vm11, %v1412_v43, %v4848_v38  ;;  %v1216_v45 = vsel %vm1208_vm3, %v7684_v36, %v7683_v33  ;;  %v1424_v17 = vsel %vm1404_vm9, %v1391_v14, %v4781_v28  ;;  %v1260_v46 = vsel %vm1240_vm5, %v1228_v9, %v7689_v50  ;;  %v7690_v28 = vld [vmem:[#allocation148_spill] sm:$0xff]  ;;  %v7694_v14 = vld [vmem:[#allocation5_spill] sm:$0xff] }
 0x301   : > { %v1248_v32 = vsel %vm1240_vm5, %v1216_v45, %v7685_v54  ;;  %v1457_v51 = vsel %vm1437_vm11, %v1424_v17, %v1154_v62  ;;  %v1293_v23 = vsel %vm1272_vm4, %v1260_v46, %v7691_v3  ;;  %v7697_v45 = vld [vmem:[#allocation18_spill] sm:$0xff]  ;;  %v7698_v17 = vld [vmem:[#allocation72_spill] sm:$0xff]  ;;  %v7704_v50 = vld [vmem:[#allocation161_spill] sm:$0xff] }
 0x302   : > { %v1281_v38 = vsel %vm1272_vm4, %v1248_v32, %v7688_v4  ;;  %v1326_v47 = vsel %vm1305_vm6, %v1293_v23, %v7693_v53  ;;  %v7699_v54 = vld [vmem:[#allocation108_spill] sm:$0xff]  ;;  %v7700_v32 = vld [vmem:[#allocation97_spill] sm:$0xff]  ;;  %v7705_v53 = vld [vmem:[#allocation15_spill] sm:$0xff] }
 0x303   : > { %v1314_v1 = vsel %vm1305_vm6, %v1281_v38, %v7690_v28  ;;  %v1359_v44 = vsel %vm1338_vm8, %v1326_v47, %v4489_v58  ;;  %v7696_v58 = vld [vmem:[#allocation75_spill] sm:$0xff]  ;;  %v7703_v4 = vld [vmem:[#allocation181_spill] sm:$0xff]  ;;  %v1158_v23 = vpop.permute.xlu1 %1157  ;;  %v7706_v47 = vld [vmem:[#allocation52_spill] sm:$0xff] }
 0x304   : > { %v1347_v48 = vsel %vm1338_vm8, %v1314_v1, %v7692_v15  ;;  %v1392_v43 = vsel %vm1371_vm7, %v1359_v44, %v4653_v30  ;;  %v1229_v30 = vsel %vm1208_vm3, %v7698_v17, %v7697_v45 }
 0x305   : > { %3285 = vmatmul.msk.f32.gmra.mxu0 %vm1479_vm10, %v1445_v7  ;;  %v1380_v41 = vsel %vm1371_vm7, %v1347_v48, %v4605_v18  ;;  %v7695_v7 = vld [vmem:[#allocation48_spill] sm:$0xff]  ;;  %v1425_v18 = vsel %vm1404_vm9, %v1392_v43, %v4753_v0  ;;  %v7701_v0 = vld [vmem:[#allocation149_spill] sm:$0xff]  ;;  %v7710_v43 = vld [vmem:[#allocation118_spill] sm:$0xff] }
 0x306   : > { %v1413_v57 = vsel %vm1404_vm9, %v1380_v41, %v4695_v56  ;;  %v1217_v33 = vsel %vm1208_vm3, %v7695_v7, %v7694_v14  ;;  %v1458_v56 = vsel %vm1437_vm11, %v1425_v18, %v1156_v27  ;;  %v1218_v41 = vsel %vm1208_vm3, %v7706_v47, %v7705_v53  ;;  %v7709_v27 = vld [vmem:[#allocation76_spill] sm:$0xff]  ;;  %v7726_v53 = vld [vmem:[#allocation163_spill] sm:$0xff] }
 0x307   : > { %v1446_v62 = vsel %vm1437_vm11, %v1413_v57, %v4856_v2  ;;  %v1249_v36 = vsel %vm1240_vm5, %v1217_v33, %v7696_v58  ;;  %v7708_v57 = vld [vmem:[#allocation39_spill] sm:$0xff]  ;;  %v7713_v33 = vld [vmem:[#allocation130_spill] sm:$0xff] }
 0x308   : > { %3297 = vmatmul.msk.f32.gmra.mxu3 %vm1479_vm10, %v1457_v51  ;;  %v1282_v2 = vsel %vm1272_vm4, %v1249_v36, %v7699_v54  ;;  %v1261_v51 = vsel %vm1240_vm5, %v1229_v30, %v7700_v32  ;;  %v7714_v58 = vld [vmem:[#allocation182_spill] sm:$0xff] }
 0x309   : > { %v1315_v55 = vsel %vm1305_vm6, %v1282_v2, %v7701_v0  ;;  %v1294_v9 = vsel %vm1272_vm4, %v1261_v51, %v7702_v19  ;;  %v1160_v2 = vpop.permute.xlu2 %1159  ;;  %v7716_v0 = vld [vmem:[#allocation19_spill] sm:$0xff] }
 0x30a   : > { %v1348_v38 = vsel %vm1338_vm8, %v1315_v55, %v7703_v4  ;;  %v1327_v46 = vsel %vm1305_vm6, %v1294_v9, %v7704_v50  ;;  %v7717_v55 = vld [vmem:[#allocation53_spill] sm:$0xff]  ;;  %v7719_v4 = vld [vmem:[#allocation43_spill] sm:$0xff] }
 0x30b   : > { %v1381_v28 = vsel %vm1371_vm7, %v1348_v38, %v4573_v10  ;;  %v1360_v1 = vsel %vm1338_vm8, %v1327_v46, %v4527_v31  ;;  %v7707_v31 = vld [vmem:[#allocation79_spill] sm:$0xff]  ;;  %v1219_v19 = vsel %vm1208_vm3, %v7717_v55, %v7716_v0  ;;  %v7720_v38 = vld [vmem:[#allocation77_spill] sm:$0xff]  ;;  %v7722_v46 = vld [vmem:[#allocation86_spill] sm:$0xff] }
 0x30c   : > { %v1414_v3 = vsel %vm1404_vm9, %v1381_v28, %v4729_v39  ;;  %v1393_v15 = vsel %vm1371_vm7, %v1360_v1, %v4621_v22  ;;  %v1250_v44 = vsel %vm1240_vm5, %v1218_v41, %v7707_v31  ;;  %v1230_v22 = vsel %vm1208_vm3, %v7709_v27, %v7708_v57  ;;  %v7721_v50 = vld [vmem:[#allocation119_spill] sm:$0xff] }
 0x30d   : > { %3286 = vmatmul.msk.f32.gmra.mxu0 %vm1479_vm10, %v1446_v62  ;;  %v1447_v48 = vsel %vm1437_vm11, %v1414_v3, %v4871_v42  ;;  %v1426_v10 = vsel %vm1404_vm9, %v1393_v15, %v4786_v52  ;;  %v1283_v42 = vsel %vm1272_vm4, %v1250_v44, %v7710_v43  ;;  %v7711_v62 = vld [vmem:[#allocation98_spill] sm:$0xff]  ;;  %v7712_v52 = vld [vmem:[#allocation141_spill] sm:$0xff]  ;;  %v7724_v3 = vld [vmem:[#allocation131_spill] sm:$0xff]  ;;  %v1162_v44 = vpop.permute.xlu0 %1161 }
 0x30e   : > { %v1459_v39 = vsel %vm1437_vm11, %v1426_v10, %v1158_v23  ;;  %v1262_v14 = vsel %vm1240_vm5, %v1230_v22, %v7711_v62  ;;  %v1316_v7 = vsel %vm1305_vm6, %v1283_v42, %v7712_v52  ;;  %v7725_v15 = vld [vmem:[#allocation174_spill] sm:$0xff]  ;;  %v7727_v27 = vld [vmem:[#allocation7_spill] sm:$0xff]  ;;  %v7730_v62 = vld [vmem:[#allocation24_spill] sm:$0xff] }
 0x30f   : > { %v1295_v18 = vsel %vm1272_vm4, %v1262_v14, %v7713_v33  ;;  %v1349_v36 = vsel %vm1338_vm8, %v1316_v7, %v7714_v58  ;;  %v7728_v22 = vld [vmem:[#allocation54_spill] sm:$0xff]  ;;  %v7732_v52 = vld [vmem:[#allocation111_spill] sm:$0xff]  ;;  %v7733_v7 = vld [vmem:[#allocation100_spill] sm:$0xff] }
 0x310   : > { %3298 = vmatmul.msk.f32.gmra.mxu3 %vm1479_vm10, %v1458_v56  ;;  %v7715_v56 = vld [vmem:[#allocation152_spill] sm:$0xff]  ;;  %v1382_v17 = vsel %vm1371_vm7, %v1349_v36, %v4611_v20  ;;  %v1220_v43 = vsel %vm1208_vm3, %v7728_v22, %v7727_v27  ;;  %v7731_v14 = vld [vmem:[#allocation78_spill] sm:$0xff]  ;;  %v7735_v58 = vld [vmem:[#allocation123_spill] sm:$0xff] }
 0x311   : > { %v1328_v45 = vsel %vm1305_vm6, %v1295_v18, %v7715_v56  ;;  %v1415_v54 = vsel %vm1404_vm9, %v1382_v17, %v4735_v8  ;;  %v7736_v56 = vld [vmem:[#allocation183_spill] sm:$0xff]  ;;  %v7737_v17 = vld [vmem:[#allocation164_spill] sm:$0xff] }
 0x312   : > { %v1361_v30 = vsel %vm1338_vm8, %v1328_v45, %v4533_v37  ;;  %v1448_v51 = vsel %vm1437_vm11, %v1415_v54, %v4877_v12  ;;  %v7718_v37 = vld [vmem:[#allocation62_spill] sm:$0xff]  ;;  %v7754_v22 = vld [vmem:[#allocation27_spill] sm:$0xff] }
 0x313   : > { %v1394_v32 = vsel %vm1371_vm7, %v1361_v30, %v4659_v59  ;;  %v1251_v9 = vsel %vm1240_vm5, %v1219_v19, %v7718_v37  ;;  %v1231_v59 = vsel %vm1208_vm3, %v7720_v38, %v7719_v4  ;;  %v7738_v19 = vld [vmem:[#allocation20_spill] sm:$0xff]  ;;  %v7742_v4 = vld [vmem:[#allocation82_spill] sm:$0xff]  ;;  %v7743_v38 = vld [vmem:[#allocation121_spill] sm:$0xff] }
 0x314   : > { %v1427_v20 = vsel %vm1404_vm9, %v1394_v32, %v4790_v6  ;;  %v1284_v12 = vsel %vm1272_vm4, %v1251_v9, %v7721_v50  ;;  %v1263_v28 = vsel %vm1240_vm5, %v1231_v59, %v7722_v46  ;;  %v7723_v6 = vld [vmem:[#allocation150_spill] sm:$0xff]  ;;  %v7744_v59 = vld [vmem:[#allocation101_spill] sm:$0xff] }
 0x315   : > { %3287 = vmatmul.msk.f32.gmra.mxu0 %vm1479_vm10, %v1447_v48  ;;  %v1460_v8 = vsel %vm1437_vm11, %v1427_v20, %v1160_v2  ;;  %v1317_v1 = vsel %vm1305_vm6, %v1284_v12, %v7723_v6  ;;  %v1296_v23 = vsel %vm1272_vm4, %v1263_v28, %v7724_v3  ;;  %v7739_v20 = vld [vmem:[#allocation58_spill] sm:$0xff]  ;;  %v7746_v46 = vld [vmem:[#allocation133_spill] sm:$0xff] }
 0x316   : > { %v1350_v48 = vsel %vm1338_vm8, %v1317_v1, %v7725_v15  ;;  %v1329_v47 = vsel %vm1305_vm6, %v1296_v23, %v7726_v53  ;;  %v1221_v37 = vsel %vm1208_vm3, %v7739_v20, %v7738_v19  ;;  %v7747_v1 = vld [vmem:[#allocation155_spill] sm:$0xff]  ;;  %v7748_v23 = vld [vmem:[#allocation194_spill] sm:$0xff] }
 0x317   : > { %v1383_v41 = vsel %vm1371_vm7, %v1350_v48, %v4617_v21  ;;  %v1362_v10 = vsel %vm1338_vm8, %v1329_v47, %v4501_v40  ;;  %v7729_v40 = vld [vmem:[#allocation81_spill] sm:$0xff]  ;;  %v7749_v48 = vld [vmem:[#allocation188_spill] sm:$0xff]  ;;  %v7768_v20 = vld [vmem:[#allocation6_spill] sm:$0xff] }
 0x318   : > { %3299 = vmatmul.msk.f32.gmra.mxu3 %vm1479_vm10, %v1459_v39  ;;  %v1416_v31 = vsel %vm1404_vm9, %v1383_v41, %v4707_v63  ;;  %v1395_v39 = vsel %vm1371_vm7, %v1362_v10, %v4665_v29  ;;  %v1252_v42 = vsel %vm1240_vm5, %v1220_v43, %v7729_v40  ;;  %v1232_v29 = vsel %vm1208_vm3, %v7731_v14, %v7730_v62  ;;  %v7750_v47 = vld [vmem:[#allocation17_spill] sm:$0xff]  ;;  %v1166_v10 = vpop.permute.xlu2 %1165  ;;  %v7757_v62 = vld [vmem:[#allocation83_spill] sm:$0xff] }
 0x319   : > { %v1449_v57 = vsel %vm1437_vm11, %v1416_v31, %v4879_v11  ;;  %v1428_v21 = vsel %vm1404_vm9, %v1395_v39, %v4777_v26  ;;  %v1285_v11 = vsel %vm1272_vm4, %v1252_v42, %v7732_v52  ;;  %v1264_v33 = vsel %vm1240_vm5, %v1232_v29, %v7733_v7  ;;  %v7734_v26 = vld [vmem:[#allocation151_spill] sm:$0xff]  ;;  %v7758_v29 = vld [vmem:[#allocation122_spill] sm:$0xff]  ;;  %v7759_v52 = vld [vmem:[#allocation92_spill] sm:$0xff] }
 0x31a   : > { %v1461_v63 = vsel %vm1437_vm11, %v1428_v21, %v1162_v44  ;;  %v1318_v18 = vsel %vm1305_vm6, %v1285_v11, %v7734_v26  ;;  %v1297_v36 = vsel %vm1272_vm4, %v1264_v33, %v7735_v58  ;;  %v7751_v31 = vld [vmem:[#allocation199_spill] sm:$0xff]  ;;  %v7755_v21 = vld [vmem:[#allocation68_spill] sm:$0xff]  ;;  %v7760_v7 = vld [vmem:[#allocation153_spill] sm:$0xff] }
 0x31b   : > { %v1351_v45 = vsel %vm1338_vm8, %v1318_v18, %v7736_v56  ;;  %v1330_v30 = vsel %vm1305_vm6, %v1297_v36, %v7737_v17  ;;  %v7761_v26 = vld [vmem:[#allocation134_spill] sm:$0xff]  ;;  %v7762_v58 = vld [vmem:[#allocation177_spill] sm:$0xff]  ;;  %v7764_v17 = vld [vmem:[#allocation195_spill] sm:$0xff] }
 0x31c   : > { %v1384_v54 = vsel %vm1371_vm7, %v1351_v45, %v4585_v13  ;;  %v1363_v2 = vsel %vm1338_vm8, %v1330_v30, %v4539_v35  ;;  %v7740_v35 = vld [vmem:[#allocation85_spill] sm:$0xff]  ;;  %v7763_v56 = vld [vmem:[#allocation166_spill] sm:$0xff] }
 0x31d   : > { %3288 = vmatmul.msk.f32.gmra.mxu0 %vm1479_vm10, %v1448_v51  ;;  %v1417_v32 = vsel %vm1404_vm9, %v1384_v54, %v4741_v49  ;;  %v1164_v51 = vpop.permute.xlu1 %1163  ;;  %v1396_v0 = vsel %vm1371_vm7, %v1363_v2, %v4633_v25  ;;  %v1253_v9 = vsel %vm1240_vm5, %v1221_v37, %v7740_v35  ;;  %v7765_v54 = vld [vmem:[#allocation186_spill] sm:$0xff]  ;;  %v7770_v35 = vld [vmem:[#allocation60_spill] sm:$0xff] }
 0x31e   : > { %v1450_v55 = vsel %vm1437_vm11, %v1417_v32, %v4894_v24  ;;  %v1429_v13 = vsel %vm1404_vm9, %v1396_v0, %v4792_v16  ;;  %v1286_v24 = vsel %vm1272_vm4, %v1253_v9, %v7743_v38  ;;  %v7745_v16 = vld [vmem:[#allocation144_spill] sm:$0xff]  ;;  %v7766_v32 = vld [vmem:[#allocation203_spill] sm:$0xff]  ;;  %v1168_v0 = vpop.permute.xlu0 %1167 }
 0x31f   : > { %v1462_v49 = vsel %vm1437_vm11, %v1429_v13, %v1164_v51  ;;  %v1319_v12 = vsel %vm1305_vm6, %v1286_v24, %v7745_v16  ;;  %v7769_v13 = vld [vmem:[#allocation10_spill] sm:$0xff] }
 0x320   : > { %3300 = vmatmul.msk.f32.gmra.mxu3 %vm1479_vm10, %v1460_v8  ;;  %v7741_v8 = vld [vmem:[#allocation45_spill] sm:$0xff]  ;;  %v1352_v6 = vsel %vm1338_vm8, %v1319_v12, %v4497_v60  ;;  %v1223_v9 = vsel %vm1208_vm3, %v7770_v35, %v7769_v13  ;;  %v7773_v24 = vld [vmem:[#allocation30_spill] sm:$0xff]  ;;  %v1172_v35 = vpop.permute.xlu2 %1171 }
 0x321   : > { %v1233_v25 = vsel %vm1208_vm3, %v7742_v4, %v7741_v8  ;;  %v1385_v15 = vsel %vm1371_vm7, %v1352_v6, %v7748_v23  ;;  %v7752_v60 = vld [vmem:[#allocation25_spill] sm:$0xff]  ;;  %v7772_v4 = vld [vmem:[#allocation87_spill] sm:$0xff]  ;;  %v7775_v16 = vld [vmem:[#allocation114_spill] sm:$0xff] }
 0x322   : > { %v1265_v50 = vsel %vm1240_vm5, %v1233_v25, %v7744_v59  ;;  %v1418_v41 = vsel %vm1404_vm9, %v1385_v15, %v7750_v47  ;;  %v1255_v25 = vsel %vm1240_vm5, %v1223_v9, %v7772_v4  ;;  %v7774_v59 = vld [vmem:[#allocation84_spill] sm:$0xff]  ;;  %v7777_v6 = vld [vmem:[#allocation154_spill] sm:$0xff] }
 0x323   : > { %v1298_v28 = vsel %vm1272_vm4, %v1265_v50, %v7746_v46  ;;  %v1451_v39 = vsel %vm1437_vm11, %v1418_v41, %v4910_v61  ;;  %v1235_v50 = vsel %vm1208_vm3, %v7774_v59, %v7773_v24  ;;  %v1288_v12 = vsel %vm1272_vm4, %v1255_v25, %v7775_v16  ;;  %v7776_v46 = vld [vmem:[#allocation103_spill] sm:$0xff]  ;;  %v7779_v15 = vld [vmem:[#allocation184_spill] sm:$0xff]  ;;  %v7781_v41 = vld [vmem:[#allocation193_spill] sm:$0xff] }
 0x324   : > { %v1331_v3 = vsel %vm1305_vm6, %v1298_v28, %v7747_v1  ;;  %v1267_v28 = vsel %vm1240_vm5, %v1235_v50, %v7776_v46  ;;  %v1321_v1 = vsel %vm1305_vm6, %v1288_v12, %v7777_v6  ;;  %v7801_v25 = vld [vmem:[#allocation157_spill] sm:$0xff]  ;;  %v7802_v50 = vld [vmem:[#allocation55_spill] sm:$0xff]  ;;  %v7804_v46 = vld [vmem:[#allocation96_spill] sm:$0xff] }
 0x325   : > { %3289 = vmatmul.msk.f32.gmra.mxu0 %vm1479_vm10, %v1449_v57  ;;  %v1364_v53 = vsel %vm1338_vm8, %v1331_v3, %v7749_v48  ;;  %v7753_v57 = vld [vmem:[#allocation59_spill] sm:$0xff]  ;;  %v7778_v3 = vld [vmem:[#allocation126_spill] sm:$0xff]  ;;  %v1354_v48 = vsel %vm1338_vm8, %v1321_v1, %v7779_v15  ;;  %v7803_v16 = vld [vmem:[#allocation89_spill] sm:$0xff] }
 0x326   : > { %v1397_v44 = vsel %vm1371_vm7, %v1364_v53, %v7751_v31  ;;  %v1222_v27 = vsel %vm1208_vm3, %v7753_v57, %v7752_v60  ;;  %v1300_v23 = vsel %vm1272_vm4, %v1267_v28, %v7778_v3  ;;  %v7780_v53 = vld [vmem:[#allocation167_spill] sm:$0xff]  ;;  %v7782_v31 = vld [vmem:[#allocation189_spill] sm:$0xff]  ;;  %v1170_v57 = vpop.permute.xlu1 %1169  ;;  %v1237_v12 = vsel %vm1208_vm3, %v7803_v16, %v7802_v50 }
 0x327   : > { %v1430_v43 = vsel %vm1404_vm9, %v1397_v44, %v7754_v22  ;;  %v1254_v40 = vsel %vm1240_vm5, %v1222_v27, %v7755_v21  ;;  %v1333_v47 = vsel %vm1305_vm6, %v1300_v23, %v7780_v53  ;;  %v7784_v27 = vld [vmem:[#allocation197_spill] sm:$0xff]  ;;  %v7785_v21 = vld [vmem:[#allocation26_spill] sm:$0xff]  ;;  %v7807_v15 = vld [vmem:[#allocation187_spill] sm:$0xff]  ;;  %v1174_v53 = vpop.permute.xlu0 %1173 }
 0x328   : > { %3301 = vmatmul.msk.f32.gmra.mxu3 %vm1479_vm10, %v1461_v63  ;;  %v1463_v42 = vsel %vm1437_vm11, %v1430_v43, %v1166_v10  ;;  %v7756_v63 = vld [vmem:[#allocation49_spill] sm:$0xff]  ;;  %v1287_v61 = vsel %vm1272_vm4, %v1254_v40, %v7758_v29  ;;  %v1387_v10 = vsel %vm1371_vm7, %v1354_v48, %v7781_v41  ;;  %v1366_v44 = vsel %vm1338_vm8, %v1333_v47, %v7782_v31  ;;  %v7786_v40 = vld [vmem:[#allocation64_spill] sm:$0xff]  ;;  %v7808_v41 = vld [vmem:[#allocation202_spill] sm:$0xff] }
 0x329   : > { %v1234_v14 = vsel %vm1208_vm3, %v7757_v62, %v7756_v63  ;;  %v1320_v33 = vsel %vm1305_vm6, %v1287_v61, %v7760_v7  ;;  %v1399_v22 = vsel %vm1371_vm7, %v1366_v44, %v7784_v27  ;;  %v7787_v63 = vld [vmem:[#allocation34_spill] sm:$0xff]  ;;  %v7805_v28 = vld [vmem:[#allocation137_spill] sm:$0xff]  ;;  %v7809_v31 = vld [vmem:[#allocation28_spill] sm:$0xff] }
 0x32a   : > { %v1266_v11 = vsel %vm1240_vm5, %v1234_v14, %v7759_v52  ;;  %v1353_v36 = vsel %vm1338_vm8, %v1320_v33, %v7762_v58  ;;  %v1432_v62 = vsel %vm1404_vm9, %v1399_v22, %v7787_v63  ;;  %v7788_v14 = vld [vmem:[#allocation91_spill] sm:$0xff]  ;;  %v7791_v33 = vld [vmem:[#allocation124_spill] sm:$0xff]  ;;  %v7806_v1 = vld [vmem:[#allocation169_spill] sm:$0xff] }
 0x32b   : > { %v1299_v18 = vsel %vm1272_vm4, %v1266_v11, %v7761_v26  ;;  %v1386_v30 = vsel %vm1371_vm7, %v1353_v36, %v7764_v17  ;;  %v1465_v61 = vsel %vm1437_vm11, %v1432_v62, %v1170_v57  ;;  %v7789_v52 = vld [vmem:[#allocation51_spill] sm:$0xff]  ;;  %v7790_v11 = vld [vmem:[#allocation88_spill] sm:$0xff]  ;;  %v5303_v26 = vld [vmem:[%s7159_s2] ss:$0 sm:$0xff] }
 0x32c   : > { %v1332_v45 = vsel %vm1305_vm6, %v1299_v18, %v7763_v56  ;;  %v1419_v51 = vsel %vm1404_vm9, %v1386_v30, %v7766_v32  ;;  %v1236_v7 = vsel %vm1208_vm3, %v7790_v11, %v7789_v52  ;;  %v7792_v18 = vld [vmem:[#allocation104_spill] sm:$0xff]  ;;  %v7793_v36 = vld [vmem:[#allocation147_spill] sm:$0xff]  ;;  %v7795_v30 = vld [vmem:[#allocation185_spill] sm:$0xff] }
 0x32d   : > { %3290 = vmatmul.msk.f32.gmra.mxu0 %vm1479_vm10, %v1450_v55  ;;  %v1365_v2 = vsel %vm1338_vm8, %v1332_v45, %v7765_v54  ;;  %v7767_v55 = vld [vmem:[#allocation200_spill] sm:$0xff]  ;;  %v1452_v37 = vsel %vm1437_vm11, %v1419_v51, %v7768_v20  ;;  %v1268_v58 = vsel %vm1240_vm5, %v1236_v7, %v7792_v18  ;;  %v7810_v57 = vld [vmem:[#allocation37_spill] sm:$0xff]  ;;  %v7811_v27 = vld [vmem:[#allocation90_spill] sm:$0xff] }
 0x32e   : > { %v1398_v19 = vsel %vm1371_vm7, %v1365_v2, %v7767_v55  ;;  %v7794_v45 = vld [vmem:[#allocation136_spill] sm:$0xff]  ;;  %v7796_v2 = vld [vmem:[#allocation158_spill] sm:$0xff]  ;;  %v1238_v22 = vsel %vm1208_vm3, %v7811_v27, %v7810_v57  ;;  %v1176_v52 = vpop.permute.xlu1 %1175 }
 0x32f   : > { %v1301_v17 = vsel %vm1272_vm4, %v1268_v58, %v7794_v45  ;;  %v7797_v51 = vld [vmem:[#allocation196_spill] sm:$0xff]  ;;  %v7814_v63 = vld [vmem:[#allocation170_spill] sm:$0xff] }
 0x330   : > { %3302 = vmatmul.msk.f32.gmra.mxu3 %vm1479_vm10, %v1462_v49  ;;  %v7771_v49 = vld [vmem:[#allocation23_spill] sm:$0xff]  ;;  %v1334_v32 = vsel %vm1305_vm6, %v1301_v17, %v7796_v2  ;;  %v7816_v7 = vld [vmem:[#allocation198_spill] sm:$0xff] }
 0x331   : > { %v1431_v8 = vsel %vm1404_vm9, %v1398_v19, %v7771_v49  ;;  %v7798_v19 = vld [vmem:[#allocation190_spill] sm:$0xff]  ;;  %v7800_v49 = vld [vmem:[#allocation201_spill] sm:$0xff]  ;;  %v7821_v2 = vld [vmem:[#allocation139_spill] sm:$0xff] }
 0x332   : > { %v1464_v38 = vsel %vm1437_vm11, %v1431_v8, %v1168_v0  ;;  %v1367_v20 = vsel %vm1338_vm8, %v1334_v32, %v7798_v19  ;;  %v7819_v45 = vld [vmem:[#allocation94_spill] sm:$0xff]  ;;  %v7823_v19 = vld [vmem:[#allocation192_spill] sm:$0xff] }
 0x333   : > { %v1400_v8 = vsel %vm1371_vm7, %v1367_v20, %v7800_v49 }
 0x335   : > { %3291 = vmatmul.msk.f32.gmra.mxu0 %vm1479_vm10, %v1451_v39  ;;  %v7783_v39 = vld [vmem:[#allocation21_spill] sm:$0xff] }
 0x336   : > { %v1420_v60 = vsel %vm1404_vm9, %v1387_v10, %v7783_v39 }
 0x337   : > { %v1453_v43 = vsel %vm1437_vm11, %v1420_v60, %v4928_v5 }
 0x338   : > { %3303 = vmatmul.msk.f32.gmra.mxu3 %vm1479_vm10, %v1463_v42  ;;  %v1224_v42 = vsel %vm1208_vm3, %v7786_v40, %v7785_v21  ;;  %v7813_v40 = vld [vmem:[#allocation129_spill] sm:$0xff] }
 0x339   : > { %v1256_v29 = vsel %vm1240_vm5, %v1224_v42, %v7788_v14 }
 0x33a   : > { %v1289_v5 = vsel %vm1272_vm4, %v1256_v29, %v7791_v33  ;;  %v7815_v29 = vld [vmem:[#allocation191_spill] sm:$0xff] }
 0x33b   : > { %v1322_v56 = vsel %vm1305_vm6, %v1289_v5, %v7793_v36  ;;  %v7817_v5 = vld [vmem:[#allocation160_spill] sm:$0xff] }
 0x33c   : > { %v1355_v54 = vsel %vm1338_vm8, %v1322_v56, %v7795_v30  ;;  %v7818_v56 = vld [vmem:[#allocation57_spill] sm:$0xff]  ;;  %v7820_v30 = vld [vmem:[#allocation107_spill] sm:$0xff] }
 0x33d   : > { %3292 = vmatmul.msk.f32.gmra.mxu0 %vm1479_vm10, %v1452_v37  ;;  %v1388_v0 = vsel %vm1371_vm7, %v1355_v54, %v7797_v51  ;;  %v7799_v37 = vld [vmem:[#allocation22_spill] sm:$0xff]  ;;  %v1239_v17 = vsel %vm1208_vm3, %v7819_v45, %v7818_v56 }
 0x33e   : > { %v1421_v13 = vsel %vm1404_vm9, %v1388_v0, %v7799_v37  ;;  %v1271_v54 = vsel %vm1240_vm5, %v1239_v17, %v7820_v30  ;;  %v7822_v51 = vld [vmem:[#allocation162_spill] sm:$0xff] }
 0x33f   : > { %v1454_v4 = vsel %vm1437_vm11, %v1421_v13, %v4956_v34  ;;  %v1269_v34 = vsel %vm1240_vm5, %v1237_v12, %v7804_v46  ;;  %v1304_v32 = vsel %vm1272_vm4, %v1271_v54, %v7821_v2 }
 0x340   : > { %3304 = vmatmul.msk.f32.gmra.mxu3 %vm1479_vm10, %v1464_v38  ;;  %v1433_v38 = vsel %vm1404_vm9, %v1400_v8, %v7801_v25  ;;  %v1302_v6 = vsel %vm1272_vm4, %v1269_v34, %v7805_v28  ;;  %v1337_v0 = vsel %vm1305_vm6, %v1304_v32, %v7822_v51 }
 0x341   : > { %v1466_v59 = vsel %vm1437_vm11, %v1433_v38, %v1172_v35  ;;  %v1335_v3 = vsel %vm1305_vm6, %v1302_v6, %v7806_v1  ;;  %v1370_v20 = vsel %vm1338_vm8, %v1337_v0, %v7823_v19 }
 0x342   : > { %v1368_v48 = vsel %vm1338_vm8, %v1335_v3, %v7807_v15  ;;  %v1403_v13 = vsel %vm1371_vm7, %v1370_v20, %v7816_v7 }
 0x343   : > { %v1401_v10 = vsel %vm1371_vm7, %v1368_v48, %v7808_v41  ;;  %v1436_v35 = vsel %vm1404_vm9, %v1403_v13, %v7817_v5 }
 0x344   : > { %v1434_v44 = vsel %vm1404_vm9, %v1401_v10, %v7809_v31  ;;  %v1469_v49 = vsel %vm1437_vm11, %v1436_v35, %v1176_v52 }
 0x345   : > { %3293 = vmatmul.msk.f32.gmra.mxu0 %vm1479_vm10, %v1453_v43  ;;  %v1467_v60 = vsel %vm1437_vm11, %v1434_v44, %v1174_v53  ;;  %v7812_v43 = vld [vmem:[#allocation106_spill] sm:$0xff] }
 0x346   : > { %v1270_v21 = vsel %vm1240_vm5, %v1238_v22, %v7812_v43 }
 0x347   : > { %v1303_v42 = vsel %vm1272_vm4, %v1270_v21, %v7813_v40 }
 0x348   : > { %3305 = vmatmul.msk.f32.gmra.mxu3 %vm1479_vm10, %v1465_v61  ;;  %v1336_v62 = vsel %vm1305_vm6, %v1303_v42, %v7814_v63 }
 0x349   : > { %v1369_v61 = vsel %vm1338_vm8, %v1336_v62, %v7815_v29 }
 0x34a   : > { %v1597_v55 = vpop.f32.mrf.mxu0  ;;  %v1402_v33 = vsel %vm1371_vm7, %v1369_v61, %v7816_v7 }
 0x34b   : > { %v1598_v9 = vadd.f32 %v5303_v26, %v1597_v55  ;;  %v1435_v18 = vsel %vm1404_vm9, %v1402_v33, %v7817_v5 }
 0x34c   : > { %v1468_v36 = vsel %vm1437_vm11, %v1435_v18, %v1176_v52 }
 0x34d   : > { %v5328_v24 = vmax.f32 %v1598_v9, 0.0  ;;  %3294 = vmatmul.msk.f32.gmra.mxu0 %vm1479_vm10, %v1454_v4 }
 0x34f   : > { %1917 = vrot.lane.b32.xlu2 %v5328_v24, %s3398_s25 }
 0x350   : > { %3306 = vmatmul.msk.f32.gmra.mxu3 %vm1479_vm10, %v1466_v59 }
 0x352   : > { %v1600_v23 = vpop.f32.mrf.mxu0 }
 0x353   : > { %v1601_v47 = vadd.f32 %v5303_v26, %v1600_v23 }
 0x355   : > { %v5351_v39 = vmax.f32 %v1601_v47, 0.0 }
 0x357   : > { %1919 = vrot.lane.b32.xlu0 %v5351_v39, %s3398_s25 }
 0x358   : > { %3307 = vmatmul.msk.f32.gmra.mxu3 %vm1479_vm10, %v1467_v60 }
 0x35a   : > { %v1603_v14 = vpop.f32.mrf.mxu0 }
 0x35b   : > { %v1604_v11 = vadd.f32 %v5303_v26, %v1603_v14 }
 0x35d   : > { %v5373_v58 = vmax.f32 %v1604_v11, 0.0 }
 0x35f   : > { %1921 = vrot.lane.b32.xlu1 %v5373_v58, %s3398_s25 }
 0x360   : > { %3308 = vmatmul.msk.f32.gmra.mxu3 %vm1479_vm10, %v1468_v36 }
 0x362   : > { %v1606_v55 = vpop.f32.mrf.mxu0 }
 0x363   : > { %v1607_v37 = vadd.f32 %v5303_v26, %v1606_v55 }
 0x365   : > { %v5395_v9 = vmax.f32 %v1607_v37, 0.0 }
 0x367   : > { %1923 = vrot.lane.b32.xlu2 %v5395_v9, %s3398_s25 }
 0x368   : > { %3309 = vmatmul.msk.f32.gmra.mxu3 %vm1479_vm10, %v1469_v49 }
 0x36a   : > { %v1609_v8 = vpop.f32.mrf.mxu0 }
 0x36b   : > { %v1610_v4 = vadd.f32 %v5303_v26, %v1609_v8 }
 0x36d   : > { %v5402_v25 = vmax.f32 %v1610_v4, 0.0 }
 0x36f   : > { %1925 = vrot.lane.b32.xlu0 %v5402_v25, %s3398_s25 }
 0x372   : > { %v1612_v38 = vpop.f32.mrf.mxu0 }
 0x373   : > { %v1613_v59 = vadd.f32 %v5303_v26, %v1612_v38 }
 0x375   : > { %v5407_v50 = vmax.f32 %v1613_v59, 0.0 }
 0x377   : > { %1927 = vrot.lane.b32.xlu1 %v5407_v50, %s3398_s25 }
 0x37a   : > { %v1615_v16 = vpop.f32.mrf.mxu0 }
 0x37b   : > { %v1648_v12 = vpop.f32.mrf.mxu3  ;;  %v1616_v46 = vadd.f32 %v5303_v26, %v1615_v16 }
 0x37c   : > { %v1649_v36 = vadd.f32 %v5303_v26, %v1648_v12 }
 0x37d   : > { %v5412_v34 = vmax.f32 %v1616_v46, 0.0 }
 0x37e   : > { %v5458_v30 = vmax.f32 %v1649_v36, 0.0 }
 0x37f   : > { %1929 = vrot.lane.b32.xlu2 %v5412_v34, %s3398_s25 }
 0x380   : > { %7830 = vst [vmem:[#allocation9_spill] sm:$0xff] %v5458_v30 }
 0x382   : > { %v1618_v28 = vpop.f32.mrf.mxu0 }
 0x383   : > { %v1651_v6 = vpop.f32.mrf.mxu3  ;;  %v1619_v1 = vadd.f32 %v5303_v26, %v1618_v28 }
 0x384   : > { %v1652_v2 = vadd.f32 %v5303_v26, %v1651_v6 }
 0x385   : > { %v5417_v3 = vmax.f32 %v1619_v1, 0.0 }
 0x386   : > { %v5469_v19 = vmax.f32 %v1652_v2, 0.0 }
 0x387   : > { %1931 = vrot.lane.b32.xlu0 %v5417_v3, %s3398_s25  ;;  %v1858_v36 = vrot.slane %v5417_v3, 1 }
 0x38a   : > { %v1621_v23 = vpop.f32.mrf.mxu0 }
 0x38b   : > { %v1654_v15 = vpop.f32.mrf.mxu3  ;;  %v1622_v48 = vadd.f32 %v5303_v26, %v1621_v23 }
 0x38c   : > { %v1655_v13 = vadd.f32 %v5303_v26, %v1654_v15 }
 0x38d   : > { %v5422_v53 = vmax.f32 %v1622_v48, 0.0 }
 0x38e   : > { %v5484_v8 = vmax.f32 %v1655_v13, 0.0 }
 0x38f   : > { %1933 = vrot.lane.b32.xlu1 %v5422_v53, %s3398_s25 }
 0x392   : > { %v1624_v47 = vpop.f32.mrf.mxu0 }
 0x393   : > { %v1657_v41 = vpop.f32.mrf.mxu3  ;;  %v1625_v10 = vadd.f32 %v5303_v26, %v1624_v47 }
 0x394   : > { %v1658_v32 = vadd.f32 %v5303_v26, %v1657_v41 }
 0x395   : > { %v5427_v31 = vmax.f32 %v1625_v10, 0.0 }
 0x396   : > { %v5473_v37 = vmax.f32 %v1658_v32, 0.0 }
 0x397   : > { %7824 = vst [vmem:[#allocation99_spill] sm:$0xff] %v5427_v31  ;;  %1935 = vrot.lane.b32.xlu2 %v5427_v31, %s3398_s25  ;;  %v1862_v32 = vrot.slane %v5427_v31, 1 }
 0x39a   : > { %v1627_v44 = vpop.f32.mrf.mxu0 }
 0x39b   : > { %v1660_v60 = vpop.f32.mrf.mxu3  ;;  %v1628_v57 = vadd.f32 %v5303_v26, %v1627_v44 }
 0x39c   : > { %v1661_v35 = vadd.f32 %v5303_v26, %v1660_v60 }
 0x39d   : > { %v5432_v27 = vmax.f32 %v1628_v57, 0.0  ;;  %v1846_v57 = vrot.slane %v5351_v39, 1 }
 0x39e   : > { %v5486_v4 = vmax.f32 %v1661_v35, 0.0 }
 0x39f   : > { %7825 = vst [vmem:[#allocation140_spill] sm:$0xff] %v5432_v27  ;;  %1937 = vrot.lane.b32.xlu0 %v5432_v27, %s3398_s25  ;;  %v1865_v13 = vrot.slane %v5432_v27, 1 }
 0x3a2   : > { %v1630_v22 = vpop.f32.mrf.mxu0 }
 0x3a3   : > { %v1663_v43 = vpop.f32.mrf.mxu3  ;;  %v1631_v21 = vadd.f32 %v5303_v26, %v1630_v22 }
 0x3a4   : > { %v1664_v16 = vadd.f32 %v5303_v26, %v1663_v43  ;;  %v7837_v43 = vld [vmem:[#allocation2_spill] sm:$0xff] }
 0x3a5   : > { %v5437_v40 = vmax.f32 %v1631_v21, 0.0  ;;  %v5536_v21 = vsel %vm382_vm0, %v1846_v57, %v7837_v43 }
 0x3a6   : > { %v5499_v28 = vmax.f32 %v1664_v16, 0.0 }
 0x3a7   : > { %7826 = vst [vmem:[#allocation172_spill] sm:$0xff] %v5437_v40  ;;  %1939 = vrot.lane.b32.xlu1 %v5437_v40, %s3398_s25 }
 0x3aa   : > { %v1633_v42 = vpop.f32.mrf.mxu0 }
 0x3ab   : > { %v1666_v63 = vpop.f32.mrf.mxu3  ;;  %v1634_v62 = vadd.f32 %v5303_v26, %v1633_v42  ;;  %v1850_v42 = vrot.slane %v5395_v9, 1 }
 0x3ac   : > { %v1667_v49 = vadd.f32 %v5303_v26, %v1666_v63  ;;  %v1854_v63 = vrot.slane %v5407_v50, 1 }
 0x3ad   : > { %v5442_v14 = vmax.f32 %v1634_v62, 0.0  ;;  %v1845_v62 = vrot.slane %v5328_v24, 1 }
 0x3ae   : > { %v5488_v59 = vmax.f32 %v1667_v49, 0.0 }
 0x3af   : > { %7827 = vst [vmem:[#allocation109_spill] sm:$0xff] %v5442_v14  ;;  %1941 = vrot.lane.b32.xlu2 %v5442_v14, %s3398_s25 }
 0x3b2   : > { %v1636_v29 = vpop.f32.mrf.mxu0 }
 0x3b3   : > { %v1669_v61 = vpop.f32.mrf.mxu3  ;;  %v1637_v52 = vadd.f32 %v5303_v26, %v1636_v29  ;;  %v1849_v29 = vrot.slane %v5373_v58, 1 }
 0x3b4   : > { %v1670_v12 = vadd.f32 %v5303_v26, %v1669_v61  ;;  %v1853_v61 = vrot.slane %v5402_v25, 1 }
 0x3b5   : > { %v5447_v11 = vmax.f32 %v1637_v52, 0.0  ;;  %v5546_v52 = vsel %vm382_vm0, %v1845_v62, %v1846_v57  ;;  %v1878_v62 = vrot.slane %v5458_v30, 1 }
 0x3b6   : > { %v5501_v6 = vmax.f32 %v1670_v12, 0.0 }
 0x3b7   : > { %7828 = vst [vmem:[#allocation132_spill] sm:$0xff] %v5447_v11  ;;  %1943 = vrot.lane.b32.xlu0 %v5447_v11, %s3398_s25  ;;  %v1870_v12 = vrot.slane %v5447_v11, 1 }
 0x3ba   : > { %v1639_v7 = vpop.f32.mrf.mxu0 }
 0x3bb   : > { %v1672_v33 = vpop.f32.mrf.mxu3  ;;  %v1640_v5 = vadd.f32 %v5303_v26, %v1639_v7  ;;  %v5549_v7 = vsel %vm382_vm0, %v1849_v29, %v1850_v42 }
 0x3bc   : > { %v1673_v15 = vadd.f32 %v5303_v26, %v1672_v33  ;;  %v5554_v33 = vsel %vm382_vm0, %v1853_v61, %v1854_v63 }
 0x3bd   : > { %v5452_v18 = vmax.f32 %v1640_v5, 0.0  ;;  %v5560_v5 = vpop.permute.xlu2 %1917 }
 0x3be   : > { %v5514_v41 = vmax.f32 %v1673_v15, 0.0  ;;  %7838 = vst [vmem:[#allocation36_spill] sm:$0xff] %v5560_v5  ;;  %v5618_v15 = vsel %vm382_vm0, %v1870_v12, %v7837_v43 }
 0x3bf   : > { %7829 = vst [vmem:[#allocation173_spill] sm:$0xff] %v5452_v18  ;;  %1945 = vrot.lane.b32.xlu1 %v5452_v18, %s3398_s25 }
 0x3c0   : > { %7845 = vst [vmem:[#allocation67_spill] sm:$0xff] %v5618_v15 }
 0x3c2   : > { %v1642_v56 = vpop.f32.mrf.mxu0 }
 0x3c3   : > { %v1675_v45 = vpop.f32.mrf.mxu3  ;;  %v1643_v17 = vadd.f32 %v5303_v26, %v1642_v56  ;;  %v5565_v56 = vsel %vm382_vm0, %v1850_v42, %v7837_v43  ;;  %v1869_v42 = vrot.slane %v5442_v14, 1 }
 0x3c4   : > { %v1676_v46 = vadd.f32 %v5303_v26, %v1675_v45  ;;  %v5569_v45 = vsel %vm382_vm0, %v1854_v63, %v7837_v43  ;;  %v1873_v63 = vrot.slane %v5452_v18, 1 }
 0x3c5   : > { %v5460_v54 = vmax.f32 %v1643_v17, 0.0  ;;  %v5575_v17 = vsel %vm382_vm0, %v1858_v36, %v7837_v43  ;;  %v5581_v2 = vpop.permute.xlu2 %1923  ;;  %v5634_v29 = vsel %vm382_vm0, %v1869_v42, %v1870_v12  ;;  %v5661_v12 = vsel %vm382_vm0, %v1878_v62, %v7837_v43 }
 0x3c6   : > { %v5503_v1 = vmax.f32 %v1676_v46, 0.0  ;;  %7839 = vst [vmem:[#allocation63_spill] sm:$0xff] %v5581_v2  ;;  %v5608_v46 = vsel %vm382_vm0, %v1862_v32, %v7837_v43  ;;  %v1885_v2 = vrot.slane %v5473_v37, 1 }
 0x3c7   : > { %7831 = vst [vmem:[#allocation35_spill] sm:$0xff] %v5460_v54  ;;  %1947 = vrot.lane.b32.xlu2 %v5460_v54, %s3398_s25  ;;  %1951 = vrot.lane.b32.xlu1 %v5458_v30, %s3398_s25 }
 0x3c8   : > { %7833 = vst [vmem:[#allocation110_spill] sm:$0xff] %v5503_v1 }
 0x3c9   : > { %7843 = vst [vmem:[#allocation11_spill] sm:$0xff] %v5608_v46 }
 0x3ca   : > { %v1645_v51 = vpop.f32.mrf.mxu0  ;;  %7848 = vst [vmem:[#allocation176_spill] sm:$0xff] %v5634_v29 }
 0x3cb   : > { %v1646_v0 = vadd.f32 %v5303_v26, %v1645_v51  ;;  %v1678_v55 = vpop.f32.mrf.mxu3  ;;  %v1866_v51 = vrot.slane %v5437_v40, 1  ;;  %7855 = vst [vmem:[#allocation74_spill] sm:$0xff] %v5661_v12 }
 0x3cc   : > { %v1679_v48 = vadd.f32 %v5303_v26, %v1678_v55  ;;  %v1861_v55 = vrot.slane %v5422_v53, 1 }
 0x3cd   : > { %v5471_v20 = vmax.f32 %v1646_v0, 0.0  ;;  %v1857_v0 = vrot.slane %v5412_v34, 1 }
 0x3ce   : > { %v5516_v10 = vmax.f32 %v1679_v48, 0.0  ;;  %v5592_v49 = vsel %vm382_vm0, %v1861_v55, %v1862_v32  ;;  %v5646_v32 = vpop.permute.xlu0 %1919  ;;  %v1882_v55 = vrot.slane %v5484_v8, 1 }
 0x3cf   : > { %7832 = vst [vmem:[#allocation44_spill] sm:$0xff] %v5471_v20  ;;  %1949 = vrot.lane.b32.xlu0 %v5471_v20, %s3398_s25  ;;  %1953 = vrot.lane.b32.xlu2 %v5469_v19, %s3398_s25  ;;  %v5589_v35 = vsel %vm382_vm0, %v1857_v0, %v1858_v36  ;;  %v1877_v57 = vrot.slane %v5471_v20, 1 }
 0x3d0   : > { %1957 = vrot.lane.b32.xlu1 %v5473_v37, %s3398_s25  ;;  %7834 = vst [vmem:[#allocation142_spill] sm:$0xff] %v5516_v10 }
 0x3d1   : > { %7840 = vst [vmem:[#allocation102_spill] sm:$0xff] %v5592_v49  ;;  %v5624_v48 = vpop.permute.xlu1 %1921  ;;  %v5642_v36 = vsel %vm382_vm0, %v1877_v57, %v1878_v62  ;;  %v5667_v57 = vsel %vm382_vm0, %v1882_v55, %v7837_v43  ;;  %v1886_v62 = vrot.slane %v5486_v4, 1 }
 0x3d2   : > { %7846 = vst [vmem:[#allocation112_spill] sm:$0xff] %v5624_v48  ;;  %v1889_v48 = vrot.slane %v5499_v28, 1 }
 0x3d3   : > { %v1681_v38 = vpop.f32.mrf.mxu3  ;;  %7850 = vst [vmem:[#allocation40_spill] sm:$0xff] %v5642_v36 }
 0x3d4   : > { %v1682_v60 = vadd.f32 %v5303_v26, %v1681_v38  ;;  %v5597_v38 = vsel %vm382_vm0, %v1865_v13, %v1866_v51  ;;  %7851 = vst [vmem:[#allocation50_spill] sm:$0xff] %v5646_v32 }
 0x3d5   : > { %7841 = vst [vmem:[#allocation143_spill] sm:$0xff] %v5597_v38 }
 0x3d6   : > { %v5528_v22 = vmax.f32 %v1682_v60, 0.0  ;;  %v1874_v60 = vrot.slane %v5460_v54, 1  ;;  %7856 = vst [vmem:[#allocation145_spill] sm:$0xff] %v5667_v57 }
 0x3d7   : > { %1955 = vrot.lane.b32.xlu0 %v5484_v8, %s3398_s25  ;;  %1959 = vrot.lane.b32.xlu2 %v5486_v4, %s3398_s25 }
 0x3d8   : > { %1963 = vrot.lane.b32.xlu1 %v5488_v59, %s3398_s25  ;;  %7836 = vst [vmem:[#allocation8_spill] sm:$0xff] %v5528_v22  ;;  %v5637_v61 = vsel %vm382_vm0, %v1873_v63, %v1874_v60  ;;  %v5657_v13 = vsel %vm382_vm0, %v1874_v60, %v7837_v43 }
 0x3d9   : > { %v5603_v16 = vpop.permute.xlu2 %1929  ;;  %7849 = vst [vmem:[#allocation3_spill] sm:$0xff] %v5637_v61 }
 0x3da   : > { %7842 = vst [vmem:[#allocation175_spill] sm:$0xff] %v5603_v16  ;;  %v1890_v16 = vrot.slane %v5488_v59, 1 }
 0x3db   : > { %v1684_v23 = vpop.f32.mrf.mxu3  ;;  %7854 = vst [vmem:[#allocation113_spill] sm:$0xff] %v5657_v13 }
 0x3dc   : > { %v1685_v47 = vadd.f32 %v5303_v26, %v1684_v23  ;;  %v5612_v23 = vsel %vm382_vm0, %v1866_v51, %v7837_v43  ;;  %v5693_v5 = vsel %vm382_vm0, %v1889_v48, %v1890_v16  ;;  %v5712_v48 = vsel %vm382_vm0, %v1890_v16, %v7837_v43 }
 0x3dd   : > { %7844 = vst [vmem:[#allocation41_spill] sm:$0xff] %v5612_v23  ;;  %v1898_v16 = vrot.slane %v5516_v10, 1 }
 0x3de   : > { %v5518_v44 = vmax.f32 %v1685_v47, 0.0  ;;  %7861 = vst [vmem:[#allocation4_spill] sm:$0xff] %v5693_v5 }
 0x3df   : > { %1961 = vrot.lane.b32.xlu0 %v5499_v28, %s3398_s25  ;;  %1965 = vrot.lane.b32.xlu2 %v5501_v6, %s3398_s25  ;;  %7866 = vst [vmem:[#allocation105_spill] sm:$0xff] %v5712_v48 }
 0x3e0   : > { %1969 = vrot.lane.b32.xlu1 %v5503_v1, %s3398_s25  ;;  %7835 = vst [vmem:[#allocation165_spill] sm:$0xff] %v5518_v44 }
 0x3e1   : > { %v5671_v42 = vpop.permute.xlu0 %1925 }
 0x3e2   : > { %7857 = vst [vmem:[#allocation125_spill] sm:$0xff] %v5671_v42  ;;  %v5688_v42 = vsel %vm382_vm0, %v1885_v2, %v1886_v62  ;;  %v1894_v2 = vrot.slane %v5514_v41, 1 }
 0x3e3   : > { %7860 = vst [vmem:[#allocation180_spill] sm:$0xff] %v5688_v42 }
 0x3e7   : > { %1967 = vrot.lane.b32.xlu0 %v5514_v41, %s3398_s25  ;;  %1971 = vrot.lane.b32.xlu2 %v5516_v10, %s3398_s25 }
 0x3e8   : > { %1975 = vrot.lane.b32.xlu1 %v5518_v44, %s3398_s25 }
 0x3e9   : > { %v5650_v51 = vpop.permute.xlu1 %1927 }
 0x3ea   : > { %7852 = vst [vmem:[#allocation31_spill] sm:$0xff] %v5650_v51  ;;  %v1881_v51 = vrot.slane %v5469_v19, 1 }
 0x3ec   : > { %v5685_v32 = vsel %vm382_vm0, %v1881_v51, %v1882_v55  ;;  %v5708_v55 = vsel %vm382_vm0, %v1886_v62, %v7837_v43 }
 0x3ed   : > { %7865 = vst [vmem:[#allocation66_spill] sm:$0xff] %v5708_v55 }
 0x3ef   : > { %1973 = vrot.lane.b32.xlu0 %v5528_v22, %s3398_s25  ;;  %2008 = vrot.lane.b32.xlu2 %v7837_v43, %s3400_s27  ;;  %s3408_s25 = smov 64  }
 0x3f0   : > { %2012 = vrot.lane.b32.xlu1 %v5536_v21, %s3400_s27 }
 0x3f1   : > { %v5626_v47 = vpop.permute.xlu2 %1935 }
 0x3f2   : > { %7847 = vst [vmem:[#allocation135_spill] sm:$0xff] %v5626_v47 }
 0x3f7   : > { %2010 = vrot.lane.b32.xlu0 %v5546_v52, %s3400_s27  ;;  %2014 = vrot.lane.b32.xlu2 %v5549_v7, %s3400_s27 }
 0x3f8   : > { %2018 = vrot.lane.b32.xlu1 %v5554_v33, %s3400_s27 }
 0x3ff   : > { %2016 = vrot.lane.b32.xlu0 %v5565_v56, %s3400_s27  ;;  %2020 = vrot.lane.b32.xlu2 %v5569_v45, %s3400_s27 }
 0x400   : > { %2024 = vrot.lane.b32.xlu1 %v5575_v17, %s3400_s27 }
 0x401   : > { %v5675_v60 = vpop.permute.xlu1 %1933 }
 0x402   : > { %7858 = vst [vmem:[#allocation168_spill] sm:$0xff] %v5675_v60  ;;  %v1893_v60 = vrot.slane %v5501_v6, 1 }
 0x407   : > { %2022 = vrot.lane.b32.xlu0 %v5589_v35, %s3400_s27  ;;  %2026 = vrot.lane.b32.xlu2 %v5592_v49, %s3400_s27 }
 0x408   : > { %2030 = vrot.lane.b32.xlu1 %v5597_v38, %s3400_s27 }
 0x409   : > { %v5652_v0 = vpop.permute.xlu2 %1941 }
 0x40a   : > { %7853 = vst [vmem:[#allocation65_spill] sm:$0xff] %v5652_v0 }
 0x40f   : > { %2028 = vrot.lane.b32.xlu0 %v5608_v46, %s3400_s27  ;;  %2032 = vrot.lane.b32.xlu2 %v5612_v23, %s3400_s27 }
 0x410   : > { %2036 = vrot.lane.b32.xlu1 %v5618_v15, %s3400_s27 }
 0x417   : > { %2034 = vrot.lane.b32.xlu0 %v5634_v29, %s3400_s27  ;;  %2038 = vrot.lane.b32.xlu2 %v5637_v61, %s3400_s27 }
 0x418   : > { %2042 = vrot.lane.b32.xlu1 %v5642_v36, %s3400_s27 }
 0x419   : > { %v5701_v0 = vpop.permute.xlu1 %1939 }
 0x41a   : > { %7863 = vst [vmem:[#allocation69_spill] sm:$0xff] %v5701_v0  ;;  %v1902_v0 = vrot.slane %v5518_v44, 1 }
 0x41f   : > { %2040 = vrot.lane.b32.xlu0 %v5657_v13, %s3400_s27  ;;  %2044 = vrot.lane.b32.xlu2 %v5661_v12, %s3400_s27 }
 0x420   : > { %2048 = vrot.lane.b32.xlu1 %v5667_v57, %s3400_s27 }
 0x421   : > { %v5677_v63 = vpop.permute.xlu2 %1947 }
 0x422   : > { %7859 = vst [vmem:[#allocation156_spill] sm:$0xff] %v5677_v63  ;;  %v5697_v63 = vpop.permute.xlu0 %1931 }
 0x423   : > { %7862 = vst [vmem:[#allocation42_spill] sm:$0xff] %v5697_v63  ;;  %v5718_v63 = vsel %vm382_vm0, %v1894_v2, %v7837_v43 }
 0x424   : > { %7867 = vst [vmem:[#allocation93_spill] sm:$0xff] %v5718_v63 }
 0x427   : > { %2046 = vrot.lane.b32.xlu0 %v5685_v32, %s3400_s27  ;;  %2050 = vrot.lane.b32.xlu2 %v5688_v42, %s3400_s27  ;;  %v1901_v42 = vrot.slane %v5528_v22, 1 }
 0x428   : > { %2054 = vrot.lane.b32.xlu1 %v5693_v5, %s3400_s27  ;;  %v1897_v5 = vrot.slane %v5503_v1, 1 }
 0x429   : > { %v5703_v51 = vpop.permute.xlu2 %1953 }
 0x42a   : > { %7864 = vst [vmem:[#allocation13_spill] sm:$0xff] %v5703_v51  ;;  %v5722_v51 = vpop.permute.xlu0 %1937 }
 0x42b   : > { %7868 = vst [vmem:[#allocation146_spill] sm:$0xff] %v5722_v51  ;;  %v5739_v51 = vsel %vm382_vm0, %v1897_v5, %v1898_v16  ;;  %v1757_v5 = vrot.slane %v5351_v39, 7 }
 0x42c   : > { %7872 = vst [vmem:[#allocation12_spill] sm:$0xff] %v5739_v51 }
 0x42f   : > { %2052 = vrot.lane.b32.xlu0 %v5708_v55, %s3400_s27  ;;  %2056 = vrot.lane.b32.xlu2 %v5712_v48, %s3400_s27  ;;  %v5736_v48 = vsel %vm382_vm0, %v1893_v60, %v1894_v2  ;;  %v1755_v2 = vrot.slane %v5328_v24, 7 }
 0x430   : > { %2060 = vrot.lane.b32.xlu1 %v5718_v63, %s3400_s27  ;;  %7871 = vst [vmem:[#allocation29_spill] sm:$0xff] %v5736_v48 }
 0x431   : > { %v5726_v62 = vpop.permute.xlu2 %1959  ;;  %v5728_v47 = vpop.permute.xlu1 %1945 }
 0x432   : > { %7869 = vst [vmem:[#allocation117_spill] sm:$0xff] %v5726_v62  ;;  %v5748_v62 = vpop.permute.xlu0 %1943 }
 0x433   : > { %7870 = vst [vmem:[#allocation178_spill] sm:$0xff] %v5728_v47  ;;  %v5744_v47 = vsel %vm382_vm0, %v1901_v42, %v1902_v0  ;;  %v5760_v42 = vsel %vm382_vm0, %v1898_v16, %v7837_v43 }
 0x434   : > { %7873 = vst [vmem:[#allocation46_spill] sm:$0xff] %v5744_v47 }
 0x435   : > { %7874 = vst [vmem:[#allocation73_spill] sm:$0xff] %v5748_v62  ;;  %v5767_v62 = vsel %vm288_vm1, %v1755_v2, %v1757_v5  ;;  %v1763_v5 = vrot.slane %v5402_v25, 7 }
 0x436   : > { %7877 = vst [vmem:[#allocation115_spill] sm:$0xff] %v5760_v42 }
 0x437   : > { %2058 = vrot.lane.b32.xlu0 %v5736_v48, %s3400_s27  ;;  %2062 = vrot.lane.b32.xlu2 %v5739_v51, %s3400_s27  ;;  %v5764_v51 = vsel %vm382_vm0, %v1902_v0, %v7837_v43  ;;  %7879 = vst [vmem:[#allocation138_spill] sm:$0xff] %v5767_v62  ;;  %v7883_v43 = vld [vmem:[#allocation33_spill] sm:$0xff]  ;;  %v1769_v48 = vrot.slane %v5417_v3, 7 }
 0x438   : > { %2066 = vrot.lane.b32.xlu1 %v5744_v47, %s3400_s27  ;;  %7878 = vst [vmem:[#allocation95_spill] sm:$0xff] %v5764_v51  ;;  %v1759_v47 = vrot.slane %v5373_v58, 7 }
 0x439   : > { %v5752_v63 = vpop.permute.xlu2 %1965  ;;  %v5754_v60 = vpop.permute.xlu1 %1951 }
 0x43a   : > { %7875 = vst [vmem:[#allocation32_spill] sm:$0xff] %v5752_v63 }
 0x43b   : > { %7876 = vst [vmem:[#allocation70_spill] sm:$0xff] %v5754_v60  ;;  %v5785_v60 = vsel %vm288_vm1, %v7883_v43, %v1755_v2 }
 0x43c   : > { %7884 = vst [vmem:[#allocation14_spill] sm:$0xff] %v5785_v60 }
 0x43f   : > { %2064 = vrot.lane.b32.xlu0 %v5760_v42, %s3400_s27  ;;  %2068 = vrot.lane.b32.xlu2 %v5764_v51, %s3400_s27  ;;  %v5789_v51 = vsel %vm288_vm1, %v7883_v43, %v1759_v47  ;;  %v1761_v42 = vrot.slane %v5395_v9, 7 }
 0x440   : > { %2103 = vrot.lane.b32.xlu1 %v5767_v62, %s3402_s29  ;;  %7885 = vst [vmem:[#allocation47_spill] sm:$0xff] %v5789_v51  ;;  %v5793_v62 = vsel %vm288_vm1, %v7883_v43, %v1763_v5 }
 0x441   : > { %v5775_v63 = vpop.permute.xlu0 %1949  ;;  %v5777_v16 = vpop.permute.xlu2 %1971  ;;  %7886 = vst [vmem:[#allocation56_spill] sm:$0xff] %v5793_v62  ;;  %v5812_v55 = vsel %vm288_vm1, %v1759_v47, %v1761_v42  ;;  %v1771_v47 = vrot.slane %v5422_v53, 7 }
 0x442   : > { %7880 = vst [vmem:[#allocation127_spill] sm:$0xff] %v5775_v63  ;;  %v5780_v0 = vpop.permute.xlu1 %1957  ;;  %v1765_v63 = vrot.slane %v5407_v50, 7 }
 0x443   : > { %7881 = vst [vmem:[#allocation179_spill] sm:$0xff] %v5777_v16 }
 0x444   : > { %7882 = vst [vmem:[#allocation16_spill] sm:$0xff] %v5780_v0 }
 0x445   : > { %7890 = vst [vmem:[#allocation80_spill] sm:$0xff] %v5812_v55 }
 0x447   : > { %2101 = vrot.lane.b32.xlu0 %v5785_v60, %s3402_s29  ;;  %2105 = vrot.lane.b32.xlu2 %v5789_v51, %s3402_s29  ;;  %v1767_v60 = vrot.slane %v5412_v34, 7  ;;  %v5815_v51 = vsel %vm288_vm1, %v1763_v5, %v1765_v63  ;;  %v5840_v5 = vsel %vm288_vm1, %v7883_v43, %v1771_v47 }
 0x448   : > { %2109 = vrot.lane.b32.xlu1 %v5793_v62, %s3402_s29  ;;  %7891 = vst [vmem:[#allocation148_spill] sm:$0xff] %v5815_v51  ;;  %v1781_v62 = vrot.slane %v5447_v11, 7 }
 0x449   : > { %v5801_v16 = vpop.permute.xlu0 %1955  ;;  %v5803_v2 = vpop.permute.xlu2 %2008  ;;  %v5836_v42 = vsel %vm288_vm1, %v7883_v43, %v1767_v60  ;;  %7897 = vst [vmem:[#allocation75_spill] sm:$0xff] %v5840_v5 }
 0x44a   : > { %7887 = vst [vmem:[#allocation38_spill] sm:$0xff] %v5801_v16  ;;  %v5807_v0 = vpop.permute.xlu1 %1963  ;;  %v5818_v16 = vsel %vm288_vm1, %v1767_v60, %v1769_v48  ;;  %v1775_v48 = vrot.slane %v5432_v27, 7 }
 0x44b   : > { %7888 = vst [vmem:[#allocation71_spill] sm:$0xff] %v5803_v2 }
 0x44c   : > { %7889 = vst [vmem:[#allocation116_spill] sm:$0xff] %v5807_v0 }
 0x44d   : > { %7892 = vst [vmem:[#allocation128_spill] sm:$0xff] %v5818_v16 }
 0x44e   : > { %7896 = vst [vmem:[#allocation48_spill] sm:$0xff] %v5836_v42 }
 0x44f   : > { %2107 = vrot.lane.b32.xlu0 %v5812_v55, %s3402_s29  ;;  %2111 = vrot.lane.b32.xlu2 %v5815_v51, %s3402_s29 }
 0x450   : > { %2115 = vrot.lane.b32.xlu1 %v5818_v16, %s3402_s29  ;;  %v5844_v16 = vsel %vm288_vm1, %v7883_v43, %v1775_v48 }
 0x451   : > { %v5826_v2 = vpop.permute.xlu0 %1961  ;;  %v5828_v0 = vpop.permute.xlu2 %2014  ;;  %7898 = vst [vmem:[#allocation18_spill] sm:$0xff] %v5844_v16 }
 0x452   : > { %7893 = vst [vmem:[#allocation171_spill] sm:$0xff] %v5826_v2  ;;  %v5831_v63 = vpop.permute.xlu1 %1969  ;;  %v1777_v2 = vrot.slane %v5437_v40, 7 }
 0x453   : > { %7894 = vst [vmem:[#allocation159_spill] sm:$0xff] %v5828_v0  ;;  %v1773_v0 = vrot.slane %v5427_v31, 7 }
 0x454   : > { %7895 = vst [vmem:[#allocation5_spill] sm:$0xff] %v5831_v63 }
 0x455   : > { %v5863_v55 = vsel %vm288_vm1, %v1771_v47, %v1773_v0  ;;  %v1783_v0 = vrot.slane %v5452_v18, 7 }
 0x456   : > { %7902 = vst [vmem:[#allocation149_spill] sm:$0xff] %v5863_v55 }
 0x457   : > { %2113 = vrot.lane.b32.xlu0 %v5836_v42, %s3402_s29  ;;  %2117 = vrot.lane.b32.xlu2 %v5840_v5, %s3402_s29  ;;  %v1779_v42 = vrot.slane %v5442_v14, 7  ;;  %v5866_v5 = vsel %vm288_vm1, %v1775_v48, %v1777_v2  ;;  %v5891_v48 = vsel %vm288_vm1, %v7883_v43, %v1783_v0 }
 0x458   : > { %2121 = vrot.lane.b32.xlu1 %v5844_v16, %s3402_s29  ;;  %7903 = vst [vmem:[#allocation120_spill] sm:$0xff] %v5866_v5  ;;  %v1793_v16 = vrot.slane %v5484_v8, 7 }
 0x459   : > { %v5852_v63 = vpop.permute.xlu0 %1967  ;;  %v5854_v60 = vpop.permute.xlu2 %2020  ;;  %v5887_v47 = vsel %vm288_vm1, %v7883_v43, %v1779_v42  ;;  %7909 = vst [vmem:[#allocation39_spill] sm:$0xff] %v5891_v48 }
 0x45a   : > { %7899 = vst [vmem:[#allocation72_spill] sm:$0xff] %v5852_v63  ;;  %v5858_v51 = vpop.permute.xlu1 %1975  ;;  %v5869_v63 = vsel %vm288_vm1, %v1779_v42, %v1781_v62  ;;  %v1787_v62 = vrot.slane %v5471_v20, 7 }
 0x45b   : > { %7900 = vst [vmem:[#allocation108_spill] sm:$0xff] %v5854_v60 }
 0x45c   : > { %7901 = vst [vmem:[#allocation97_spill] sm:$0xff] %v5858_v51 }
 0x45d   : > { %7904 = vst [vmem:[#allocation181_spill] sm:$0xff] %v5869_v63 }
 0x45e   : > { %7908 = vst [vmem:[#allocation79_spill] sm:$0xff] %v5887_v47 }
 0x45f   : > { %2119 = vrot.lane.b32.xlu0 %v5863_v55, %s3402_s29  ;;  %2123 = vrot.lane.b32.xlu2 %v5866_v5, %s3402_s29  ;;  %v1789_v5 = vrot.slane %v5458_v30, 7 }
 0x460   : > { %2127 = vrot.lane.b32.xlu1 %v5869_v63, %s3402_s29  ;;  %v5895_v63 = vsel %vm288_vm1, %v7883_v43, %v1787_v62 }
 0x461   : > { %v5877_v51 = vpop.permute.xlu0 %1973  ;;  %v5879_v60 = vpop.permute.xlu2 %2026  ;;  %7910 = vst [vmem:[#allocation76_spill] sm:$0xff] %v5895_v63 }
 0x462   : > { %7905 = vst [vmem:[#allocation161_spill] sm:$0xff] %v5877_v51  ;;  %v5882_v2 = vpop.permute.xlu1 %2012 }
 0x463   : > { %7906 = vst [vmem:[#allocation15_spill] sm:$0xff] %v5879_v60 }
 0x464   : > { %7907 = vst [vmem:[#allocation52_spill] sm:$0xff] %v5882_v2  ;;  %v1785_v2 = vrot.slane %v5460_v54, 7 }
 0x466   : > { %v5914_v60 = vsel %vm288_vm1, %v1783_v0, %v1785_v2  ;;  %v1795_v0 = vrot.slane %v5473_v37, 7  ;;  %v1687_v2 = vpop.f32.mrf.mxu3 }
 0x467   : > { %2125 = vrot.lane.b32.xlu0 %v5887_v47, %s3402_s29  ;;  %2129 = vrot.lane.b32.xlu2 %v5891_v48, %s3402_s29  ;;  %v1791_v47 = vrot.slane %v5469_v19, 7  ;;  %7914 = vst [vmem:[#allocation130_spill] sm:$0xff] %v5914_v60  ;;  %v5917_v48 = vsel %vm288_vm1, %v1787_v62, %v1789_v5 }
 0x468   : > { %2133 = vrot.lane.b32.xlu1 %v5895_v63, %s3402_s29  ;;  %7915 = vst [vmem:[#allocation182_spill] sm:$0xff] %v5917_v48 }
 0x469   : > { %v5903_v51 = vpop.permute.xlu0 %2010  ;;  %v5905_v42 = vpop.permute.xlu2 %2032  ;;  %v5938_v62 = vsel %vm288_vm1, %v7883_v43, %v1791_v47 }
 0x46a   : > { %7911 = vst [vmem:[#allocation118_spill] sm:$0xff] %v5903_v51  ;;  %v5908_v55 = vpop.permute.xlu1 %2018  ;;  %v5920_v51 = vsel %vm288_vm1, %v1791_v47, %v1793_v16  ;;  %v1799_v16 = vrot.slane %v5499_v28, 7 }
 0x46b   : > { %7912 = vst [vmem:[#allocation98_spill] sm:$0xff] %v5905_v42 }
 0x46c   : > { %7913 = vst [vmem:[#allocation141_spill] sm:$0xff] %v5908_v55 }
 0x46d   : > { %7916 = vst [vmem:[#allocation152_spill] sm:$0xff] %v5920_v51 }
 0x46e   : > { %7920 = vst [vmem:[#allocation43_spill] sm:$0xff] %v5938_v62 }
 0x46f   : > { %2131 = vrot.lane.b32.xlu0 %v5914_v60, %s3402_s29  ;;  %2135 = vrot.lane.b32.xlu2 %v5917_v48, %s3402_s29  ;;  %v5942_v60 = vsel %vm288_vm1, %v7883_v43, %v1795_v0  ;;  %v1801_v48 = vrot.slane %v5488_v59, 7 }
 0x470   : > { %2139 = vrot.lane.b32.xlu1 %v5920_v51, %s3402_s29  ;;  %7921 = vst [vmem:[#allocation77_spill] sm:$0xff] %v5942_v60  ;;  %v1805_v51 = vrot.slane %v5514_v41, 7 }
 0x471   : > { %v5928_v55 = vpop.permute.xlu0 %2016  ;;  %v5930_v63 = vpop.permute.xlu2 %2038 }
 0x472   : > { %7917 = vst [vmem:[#allocation19_spill] sm:$0xff] %v5928_v55  ;;  %v5933_v5 = vpop.permute.xlu1 %2024  ;;  %v5946_v55 = vsel %vm288_vm1, %v7883_v43, %v1799_v16 }
 0x473   : > { %7918 = vst [vmem:[#allocation53_spill] sm:$0xff] %v5930_v63  ;;  %v1797_v63 = vrot.slane %v5486_v4, 7 }
 0x474   : > { %7919 = vst [vmem:[#allocation62_spill] sm:$0xff] %v5933_v5 }
 0x475   : > { %7922 = vst [vmem:[#allocation119_spill] sm:$0xff] %v5946_v55  ;;  %v5965_v57 = vsel %vm288_vm1, %v1795_v0, %v1797_v63 }
 0x476   : > { %7926 = vst [vmem:[#allocation174_spill] sm:$0xff] %v5965_v57 }
 0x477   : > { %2137 = vrot.lane.b32.xlu0 %v5938_v62, %s3402_s29  ;;  %2141 = vrot.lane.b32.xlu2 %v5942_v60, %s3402_s29  ;;  %v1803_v62 = vrot.slane %v5501_v6, 7  ;;  %v5968_v60 = vsel %vm288_vm1, %v1799_v16, %v1801_v48  ;;  %v1807_v48 = vrot.slane %v5503_v1, 7  ;;  %v1811_v16 = vrot.slane %v5528_v22, 7 }
 0x478   : > { %2145 = vrot.lane.b32.xlu1 %v5946_v55, %s3402_s29  ;;  %7927 = vst [vmem:[#allocation163_spill] sm:$0xff] %v5968_v60  ;;  %v1688_v55 = vadd.f32 %v5303_v26, %v1687_v2 }
 0x479   : > { %v5954_v5 = vpop.permute.xlu0 %2022  ;;  %v5956_v47 = vpop.permute.xlu2 %2044 }
 0x47a   : > { %7923 = vst [vmem:[#allocation86_spill] sm:$0xff] %v5954_v5  ;;  %v5960_v42 = vpop.permute.xlu1 %2030  ;;  %v5971_v5 = vsel %vm288_vm1, %v1803_v62, %v1805_v51 }
 0x47b   : > { %7924 = vst [vmem:[#allocation150_spill] sm:$0xff] %v5956_v47 }
 0x47c   : > { %7925 = vst [vmem:[#allocation131_spill] sm:$0xff] %v5960_v42  ;;  %v1690_v42 = vpop.f32.mrf.mxu3 }
 0x47d   : > { %7928 = vst [vmem:[#allocation7_spill] sm:$0xff] %v5971_v5  ;;  %v1691_v51 = vadd.f32 %v5303_v26, %v1690_v42  ;;  %v6009_v26 = vmax.f32 %v1688_v55, 0.0 }
 0x47f   : > { %2143 = vrot.lane.b32.xlu0 %v5965_v57, %s3402_s29  ;;  %2147 = vrot.lane.b32.xlu2 %v5968_v60, %s3402_s29  ;;  %v5991_v60 = vsel %vm288_vm1, %v7883_v43, %v1803_v62  ;;  %7936 = vst [vmem:[#allocation123_spill] sm:$0xff] %v6009_v26  ;;  %v1809_v62 = vrot.slane %v5516_v10, 7  ;;  %v1907_v57 = vrot.slane %v6009_v26, 7 }
 0x480   : > { %2151 = vrot.lane.b32.xlu1 %v5971_v5, %s3402_s29  ;;  %7932 = vst [vmem:[#allocation78_spill] sm:$0xff] %v5991_v60  ;;  %v5995_v5 = vsel %vm288_vm1, %v7883_v43, %v1807_v48 }
 0x481   : > { %v5979_v47 = vpop.permute.xlu0 %2028  ;;  %v5981_v63 = vpop.permute.xlu2 %2050  ;;  %7933 = vst [vmem:[#allocation111_spill] sm:$0xff] %v5995_v5 }
 0x482   : > { %7929 = vst [vmem:[#allocation54_spill] sm:$0xff] %v5979_v47  ;;  %v5984_v0 = vpop.permute.xlu1 %2036  ;;  %v5997_v47 = vmax.f32 %v1691_v51, 0.0  ;;  %v1813_v51 = vrot.slane %v5518_v44, 7 }
 0x483   : > { %7930 = vst [vmem:[#allocation81_spill] sm:$0xff] %v5981_v63  ;;  %v6001_v63 = vsel %vm288_vm1, %v7883_v43, %v1811_v16 }
 0x484   : > { %7931 = vst [vmem:[#allocation24_spill] sm:$0xff] %v5984_v0  ;;  %v6025_v55 = vsel %vm288_vm1, %v1811_v16, %v1813_v51  ;;  %v6044_v16 = vsel %vm288_vm1, %v7883_v43, %v1907_v57 }
 0x485   : > { %7934 = vst [vmem:[#allocation100_spill] sm:$0xff] %v5997_v47 }
 0x486   : > { %7935 = vst [vmem:[#allocation151_spill] sm:$0xff] %v6001_v63 }
 0x487   : > { %2149 = vrot.lane.b32.xlu0 %v5991_v60, %s3402_s29  ;;  %2153 = vrot.lane.b32.xlu2 %v5995_v5, %s3402_s29  ;;  %v1909_v60 = vrot.slane %v5997_v47, 7  ;;  %v6022_v5 = vsel %vm288_vm1, %v1807_v48, %v1809_v62  ;;  %7940 = vst [vmem:[#allocation58_spill] sm:$0xff] %v6025_v55 }
 0x488   : > { %2157 = vrot.lane.b32.xlu1 %v6001_v63, %s3402_s29  ;;  %7939 = vst [vmem:[#allocation20_spill] sm:$0xff] %v6022_v5 }
 0x489   : > { %v6011_v42 = vpop.permute.xlu0 %2034  ;;  %v6013_v2 = vpop.permute.xlu2 %2056  ;;  %v6028_v63 = vsel %vm288_vm1, %v1907_v57, %v1909_v60  ;;  %7944 = vst [vmem:[#allocation121_spill] sm:$0xff] %v6044_v16  ;;  %vm2939_vm1 = vcmask 588800  }
 0x48a   : > { %7937 = vst [vmem:[#allocation183_spill] sm:$0xff] %v6013_v2  ;;  %v6017_v0 = vpop.permute.xlu1 %2042 }
 0x48b   : > { %7938 = vst [vmem:[#allocation164_spill] sm:$0xff] %v6017_v0 }
 0x48c   : > { %7941 = vst [vmem:[#allocation85_spill] sm:$0xff] %v6028_v63 }
 0x48f   : > { %2155 = vrot.lane.b32.xlu0 %v6022_v5, %s3402_s29  ;;  %2159 = vrot.lane.b32.xlu2 %v6025_v55, %s3402_s29 }
 0x490   : > { %2163 = vrot.lane.b32.xlu1 %v6028_v63, %s3402_s29 }
 0x491   : > { %v6036_v0 = vpop.permute.xlu0 %2040  ;;  %v6038_v2 = vpop.permute.xlu2 %2062 }
 0x492   : > { %7942 = vst [vmem:[#allocation45_spill] sm:$0xff] %v6036_v0  ;;  %v6040_v48 = vpop.permute.xlu1 %2048 }
 0x493   : > { %7943 = vst [vmem:[#allocation82_spill] sm:$0xff] %v6038_v2 }
 0x497   : > { %2161 = vrot.lane.b32.xlu0 %v6044_v16, %s3402_s29  ;;  %2197 = vrot.lane.b32.xlu2 %v5328_v24, %s3404_s6 }
 0x498   : > { %2201 = vrot.lane.b32.xlu1 %v5373_v58, %s3404_s6 }
 0x499   : > { %v6052_v60 = vpop.permute.xlu0 %2046  ;;  %v6054_v62 = vpop.permute.xlu2 %2068 }
 0x49a   : > { %7945 = vst [vmem:[#allocation101_spill] sm:$0xff] %v6054_v62  ;;  %v6056_v51 = vpop.permute.xlu1 %2054 }
 0x49f   : > { %2199 = vrot.lane.b32.xlu0 %v5351_v39, %s3404_s6  ;;  %2203 = vrot.lane.b32.xlu2 %v5395_v9, %s3404_s6 }
 0x4a0   : > { %2207 = vrot.lane.b32.xlu1 %v5407_v50, %s3404_s6 }
 0x4a1   : > { %v6064_v57 = vpop.permute.xlu0 %2052  ;;  %v6066_v24 = vpop.permute.xlu2 %2105 }
 0x4a2   : > { %7946 = vst [vmem:[#allocation144_spill] sm:$0xff] %v6066_v24  ;;  %v6068_v2 = vpop.permute.xlu1 %2060 }
 0x4a3   : > { %7947 = vst [vmem:[#allocation133_spill] sm:$0xff] %v6068_v2 }
 0x4a7   : > { %2205 = vrot.lane.b32.xlu0 %v5402_v25, %s3404_s6  ;;  %2209 = vrot.lane.b32.xlu2 %v5412_v34, %s3404_s6 }
 0x4a8   : > { %2213 = vrot.lane.b32.xlu1 %v5422_v53, %s3404_s6 }
 0x4a9   : > { %v6076_v39 = vpop.permute.xlu0 %2058  ;;  %v6078_v62 = vpop.permute.xlu2 %2111 }
 0x4aa   : > { %7948 = vst [vmem:[#allocation155_spill] sm:$0xff] %v6076_v39  ;;  %v6080_v63 = vpop.permute.xlu1 %2066 }
 0x4ab   : > { %7949 = vst [vmem:[#allocation194_spill] sm:$0xff] %v6078_v62 }
 0x4ac   : > { %7950 = vst [vmem:[#allocation188_spill] sm:$0xff] %v6080_v63 }
 0x4af   : > { %2211 = vrot.lane.b32.xlu0 %v5417_v3, %s3404_s6  ;;  %2215 = vrot.lane.b32.xlu2 %v5427_v31, %s3404_s6 }
 0x4b0   : > { %2219 = vrot.lane.b32.xlu1 %v5437_v40, %s3404_s6 }
 0x4b1   : > { %v6088_v2 = vpop.permute.xlu0 %2064  ;;  %v6090_v16 = vpop.permute.xlu2 %2117 }
 0x4b2   : > { %7951 = vst [vmem:[#allocation17_spill] sm:$0xff] %v6088_v2  ;;  %v6092_v55 = vpop.permute.xlu1 %2103 }
 0x4b3   : > { %7952 = vst [vmem:[#allocation199_spill] sm:$0xff] %v6090_v16 }
 0x4b4   : > { %7953 = vst [vmem:[#allocation25_spill] sm:$0xff] %v6092_v55 }
 0x4b7   : > { %2217 = vrot.lane.b32.xlu0 %v5432_v27, %s3404_s6  ;;  %2221 = vrot.lane.b32.xlu2 %v5442_v14, %s3404_s6 }
 0x4b8   : > { %2225 = vrot.lane.b32.xlu1 %v5452_v18, %s3404_s6 }
 0x4b9   : > { %v6100_v63 = vpop.permute.xlu0 %2101  ;;  %v6102_v39 = vpop.permute.xlu2 %2123 }
 0x4ba   : > { %7954 = vst [vmem:[#allocation59_spill] sm:$0xff] %v6100_v63  ;;  %v6104_v62 = vpop.permute.xlu1 %2109  ;;  %v7988_v63 = vld [vmem:[#allocation43_spill] sm:$0xff] }
 0x4bb   : > { %7955 = vst [vmem:[#allocation27_spill] sm:$0xff] %v6104_v62 }
 0x4bf   : > { %2223 = vrot.lane.b32.xlu0 %v5447_v11, %s3404_s6  ;;  %2227 = vrot.lane.b32.xlu2 %v5460_v54, %s3404_s6 }
 0x4c0   : > { %2231 = vrot.lane.b32.xlu1 %v5458_v30, %s3404_s6 }
 0x4c1   : > { %v6112_v2 = vpop.permute.xlu0 %2107  ;;  %v6114_v16 = vpop.permute.xlu2 %2129 }
 0x4c2   : > { %7956 = vst [vmem:[#allocation68_spill] sm:$0xff] %v6112_v2  ;;  %v6116_v18 = vpop.permute.xlu1 %2115 }
 0x4c3   : > { %7957 = vst [vmem:[#allocation49_spill] sm:$0xff] %v6116_v18 }
 0x4c7   : > { %2229 = vrot.lane.b32.xlu0 %v5471_v20, %s3404_s6  ;;  %2233 = vrot.lane.b32.xlu2 %v5469_v19, %s3404_s6 }
 0x4c8   : > { %2237 = vrot.lane.b32.xlu1 %v5473_v37, %s3404_s6 }
 0x4c9   : > { %v6124_v62 = vpop.permute.xlu0 %2113  ;;  %v6126_v54 = vpop.permute.xlu2 %2135 }
 0x4ca   : > { %7958 = vst [vmem:[#allocation83_spill] sm:$0xff] %v6124_v62  ;;  %v6128_v30 = vpop.permute.xlu1 %2121 }
 0x4cb   : > { %7959 = vst [vmem:[#allocation122_spill] sm:$0xff] %v6126_v54  ;;  %v7991_v54 = vld [vmem:[#allocation47_spill] sm:$0xff] }
 0x4cf   : > { %2235 = vrot.lane.b32.xlu0 %v5484_v8, %s3404_s6  ;;  %2239 = vrot.lane.b32.xlu2 %v5486_v4, %s3404_s6 }
 0x4d0   : > { %2243 = vrot.lane.b32.xlu1 %v5488_v59, %s3404_s6 }
 0x4d1   : > { %v6136_v20 = vpop.permute.xlu0 %2119  ;;  %v6138_v18 = vpop.permute.xlu2 %2141 }
 0x4d2   : > { %7960 = vst [vmem:[#allocation92_spill] sm:$0xff] %v6136_v20  ;;  %v6140_v11 = vpop.permute.xlu1 %2127 }
 0x4d7   : > { %2241 = vrot.lane.b32.xlu0 %v5499_v28, %s3404_s6  ;;  %2245 = vrot.lane.b32.xlu2 %v5501_v6, %s3404_s6 }
 0x4d8   : > { %2249 = vrot.lane.b32.xlu1 %v5503_v1, %s3404_s6 }
 0x4d9   : > { %v6148_v62 = vpop.permute.xlu0 %2125  ;;  %v6150_v14 = vpop.permute.xlu2 %2147 }
 0x4da   : > { %v6152_v2 = vpop.permute.xlu1 %2133 }
 0x4db   : > { %7961 = vst [vmem:[#allocation153_spill] sm:$0xff] %v6152_v2  ;;  %v8012_v2 = vld [vmem:[#allocation98_spill] sm:$0xff] }
 0x4df   : > { %2247 = vrot.lane.b32.xlu0 %v5514_v41, %s3404_s6  ;;  %2251 = vrot.lane.b32.xlu2 %v5516_v10, %s3404_s6 }
 0x4e0   : > { %2255 = vrot.lane.b32.xlu1 %v5518_v44, %s3404_s6 }
 0x4e1   : > { %v6160_v20 = vpop.permute.xlu0 %2131  ;;  %v6162_v24 = vpop.permute.xlu2 %2153 }
 0x4e2   : > { %7962 = vst [vmem:[#allocation134_spill] sm:$0xff] %v6162_v24  ;;  %v6164_v40 = vpop.permute.xlu1 %2139 }
 0x4e7   : > { %2253 = vrot.lane.b32.xlu0 %v5528_v22, %s3404_s6  ;;  %2257 = vrot.lane.b32.xlu2 %v6009_v26, %s3404_s6 }
 0x4e8   : > { %2293 = vrot.lane.b32.xlu1 %v5546_v52, %s3405_s22 }
 0x4e9   : > { %v6172_v55 = vpop.permute.xlu0 %2137  ;;  %v6174_v10 = vpop.permute.xlu2 %2159 }
 0x4ea   : > { %7963 = vst [vmem:[#allocation177_spill] sm:$0xff] %v6172_v55  ;;  %v6176_v44 = vpop.permute.xlu1 %2145 }
 0x4eb   : > { %7964 = vst [vmem:[#allocation166_spill] sm:$0xff] %v6174_v10 }
 0x4ef   : > { %2259 = vrot.lane.b32.xlu0 %v5997_v47, %s3404_s6  ;;  %2295 = vrot.lane.b32.xlu2 %v5536_v21, %s3405_s22 }
 0x4f0   : > { %2299 = vrot.lane.b32.xlu1 %v5565_v56, %s3405_s22 }
 0x4f1   : > { %v6184_v24 = vpop.permute.xlu0 %2143  ;;  %v6186_v26 = vpop.permute.xlu2 %2197 }
 0x4f2   : > { %7965 = vst [vmem:[#allocation195_spill] sm:$0xff] %v6186_v26  ;;  %v6188_v52 = vpop.permute.xlu1 %2151 }
 0x4f7   : > { %2297 = vrot.lane.b32.xlu0 %v5549_v7, %s3405_s22  ;;  %2301 = vrot.lane.b32.xlu2 %v5554_v33, %s3405_s22 }
 0x4f8   : > { %2305 = vrot.lane.b32.xlu1 %v5589_v35, %s3405_s22 }
 0x4f9   : > { %v6196_v10 = vpop.permute.xlu0 %2149  ;;  %v6198_v21 = vpop.permute.xlu2 %2203 }
 0x4fa   : > { %7966 = vst [vmem:[#allocation186_spill] sm:$0xff] %v6198_v21  ;;  %v6200_v47 = vpop.permute.xlu1 %2157 }
 0x4fb   : > { %7967 = vst [vmem:[#allocation203_spill] sm:$0xff] %v6200_v47 }
 0x4ff   : > { %2303 = vrot.lane.b32.xlu0 %v5569_v45, %s3405_s22  ;;  %2307 = vrot.lane.b32.xlu2 %v5575_v17, %s3405_s22 }
 0x500   : > { %2311 = vrot.lane.b32.xlu1 %v5608_v46, %s3405_s22 }
 0x501   : > { %v6208_v22 = vpop.permute.xlu0 %2155  ;;  %v6210_v5 = vpop.permute.xlu2 %2209 }
 0x502   : > { %7968 = vst [vmem:[#allocation200_spill] sm:$0xff] %v6208_v22  ;;  %v6212_v55 = vpop.permute.xlu1 %2163 }
 0x503   : > { %7969 = vst [vmem:[#allocation6_spill] sm:$0xff] %v6210_v5 }
 0x504   : > { %7970 = vst [vmem:[#allocation10_spill] sm:$0xff] %v6212_v55 }
 0x507   : > { %2309 = vrot.lane.b32.xlu0 %v5592_v49, %s3405_s22  ;;  %2313 = vrot.lane.b32.xlu2 %v5597_v38, %s3405_s22 }
 0x508   : > { %2317 = vrot.lane.b32.xlu1 %v5634_v29, %s3405_s22 }
 0x509   : > { %v6220_v47 = vpop.permute.xlu0 %2161  ;;  %v6222_v21 = vpop.permute.xlu2 %2215 }
 0x50a   : > { %7971 = vst [vmem:[#allocation60_spill] sm:$0xff] %v6220_v47  ;;  %v6224_v27 = vpop.permute.xlu1 %2201 }
 0x50b   : > { %7972 = vst [vmem:[#allocation23_spill] sm:$0xff] %v6222_v21 }
 0x50c   : > { %7973 = vst [vmem:[#allocation87_spill] sm:$0xff] %v6224_v27 }
 0x50f   : > { %2315 = vrot.lane.b32.xlu0 %v5612_v23, %s3405_s22  ;;  %2319 = vrot.lane.b32.xlu2 %v5618_v15, %s3405_s22 }
 0x510   : > { %2323 = vrot.lane.b32.xlu1 %v5657_v13, %s3405_s22 }
 0x511   : > { %v6232_v55 = vpop.permute.xlu0 %2199  ;;  %v6234_v22 = vpop.permute.xlu2 %2221 }
 0x512   : > { %7974 = vst [vmem:[#allocation30_spill] sm:$0xff] %v6232_v55  ;;  %v6236_v5 = vpop.permute.xlu1 %2207  ;;  %v7986_v55 = vld [vmem:[#allocation93_spill] sm:$0xff] }
 0x513   : > { %7975 = vst [vmem:[#allocation84_spill] sm:$0xff] %v6236_v5  ;;  %v7978_v5 = vld [vmem:[#allocation145_spill] sm:$0xff] }
 0x517   : > { %2321 = vrot.lane.b32.xlu0 %v5637_v61, %s3405_s22  ;;  %2325 = vrot.lane.b32.xlu2 %v5642_v36, %s3405_s22  ;;  %v7979_v61 = vld [vmem:[#allocation66_spill] sm:$0xff] }
 0x518   : > { %2329 = vrot.lane.b32.xlu1 %v5685_v32, %s3405_s22 }
 0x519   : > { %v6244_v47 = vpop.permute.xlu0 %2205  ;;  %v6246_v21 = vpop.permute.xlu2 %2227 }
 0x51a   : > { %7976 = vst [vmem:[#allocation114_spill] sm:$0xff] %v6244_v47  ;;  %v6248_v13 = vpop.permute.xlu1 %2213  ;;  %v7982_v47 = vld [vmem:[#allocation180_spill] sm:$0xff] }
 0x51b   : > { %7977 = vst [vmem:[#allocation103_spill] sm:$0xff] %v6248_v13  ;;  %v7983_v13 = vld [vmem:[#allocation4_spill] sm:$0xff] }
 0x51f   : > { %2327 = vrot.lane.b32.xlu0 %v5661_v12, %s3405_s22  ;;  %2331 = vrot.lane.b32.xlu2 %v7978_v5, %s3405_s22  ;;  %v7984_v12 = vld [vmem:[#allocation29_spill] sm:$0xff] }
 0x520   : > { %2335 = vrot.lane.b32.xlu1 %v7979_v61, %s3405_s22 }
 0x521   : > { %v6256_v15 = vpop.permute.xlu0 %2211  ;;  %v6258_v36 = vpop.permute.xlu2 %2233 }
 0x522   : > { %7980 = vst [vmem:[#allocation154_spill] sm:$0xff] %v6256_v15  ;;  %v6260_v29 = vpop.permute.xlu1 %2219  ;;  %v7985_v15 = vld [vmem:[#allocation105_spill] sm:$0xff] }
 0x523   : > { %7981 = vst [vmem:[#allocation126_spill] sm:$0xff] %v6258_v36 }
 0x527   : > { %2333 = vrot.lane.b32.xlu0 %v7982_v47, %s3405_s22  ;;  %2337 = vrot.lane.b32.xlu2 %v7983_v13, %s3405_s22 }
 0x528   : > { %2341 = vrot.lane.b32.xlu1 %v7984_v12, %s3405_s22 }
 0x529   : > { %v2218_v27 = vpop.permute.xlu0 %2217  ;;  %v6268_v23 = vpop.permute.xlu2 %2239 }
 0x52a   : > { %v6270_v38 = vpop.permute.xlu1 %2225 }
 0x52f   : > { %2339 = vrot.lane.b32.xlu0 %v7985_v15, %s3405_s22  ;;  %2343 = vrot.lane.b32.xlu2 %v7986_v55, %s3405_s22 }
 0x530   : > { %2514 = vrot.lane.b32.xlu1 %v5469_v19, %s3406_s23 }
 0x531   : > { %v2224_v36 = vpop.permute.xlu0 %2223  ;;  %v6278_v46 = vpop.permute.xlu2 %2245 }
 0x532   : > { %v6280_v26 = vpop.permute.xlu1 %2231 }
 0x533   : > { %7987 = vst [vmem:[#allocation184_spill] sm:$0xff] %v6280_v26  ;;  %v7992_v26 = vld [vmem:[#allocation152_spill] sm:$0xff] }
 0x537   : > { %2421 = vrot.lane.b32.xlu0 %v7988_v63, %s3407_s24  ;;  %2607 = vrot.lane.b32.xlu2 %v5685_v32, %s3408_s25 }
 0x538   : > { %2482 = vrot.lane.b32.xlu1 %v5373_v58, %s3406_s23 }
 0x539   : > { %v6288_v43 = vpop.permute.xlu0 %2229  ;;  %v6290_v1 = vpop.permute.xlu2 %2251 }
 0x53a   : > { %7989 = vst [vmem:[#allocation167_spill] sm:$0xff] %v6288_v43  ;;  %v6292_v19 = vpop.permute.xlu1 %2237  ;;  %v8004_v43 = vld [vmem:[#allocation75_spill] sm:$0xff] }
 0x53b   : > { %7990 = vst [vmem:[#allocation193_spill] sm:$0xff] %v6290_v1 }
 0x53f   : > { %2389 = vrot.lane.b32.xlu0 %v7991_v54, %s3407_s24  ;;  %2423 = vrot.lane.b32.xlu2 %v7992_v26, %s3407_s24 }
 0x540   : > { %2516 = vrot.lane.b32.xlu1 %v5484_v8, %s3406_s23  ;;  %v7996_v8 = vld [vmem:[#allocation80_spill] sm:$0xff] }
 0x541   : > { %v2236_v0 = vpop.permute.xlu0 %2235  ;;  %v6300_v32 = vpop.permute.xlu2 %2257 }
 0x542   : > { %7993 = vst [vmem:[#allocation189_spill] sm:$0xff] %v6300_v32  ;;  %v6302_v31 = vpop.permute.xlu1 %2243  ;;  %v7997_v32 = vld [vmem:[#allocation77_spill] sm:$0xff] }
 0x547   : > { %2575 = vrot.lane.b32.xlu0 %v5549_v7, %s3408_s25  ;;  %2609 = vrot.lane.b32.xlu2 %v7978_v5, %s3408_s25 }
 0x548   : > { %2484 = vrot.lane.b32.xlu1 %v5395_v9, %s3406_s23 }
 0x549   : > { %v6310_v58 = vpop.permute.xlu0 %2241  ;;  %v6312_v1 = vpop.permute.xlu2 %2295 }
 0x54a   : > { %7994 = vst [vmem:[#allocation21_spill] sm:$0xff] %v6312_v1  ;;  %v6314_v54 = vpop.permute.xlu1 %2249  ;;  %v8003_v1 = vld [vmem:[#allocation168_spill] sm:$0xff] }
 0x54b   : > { %7995 = vst [vmem:[#allocation197_spill] sm:$0xff] %v6314_v54 }
 0x54f   : > { %2391 = vrot.lane.b32.xlu0 %v7996_v8, %s3407_s24  ;;  %2425 = vrot.lane.b32.xlu2 %v7997_v32, %s3407_s24 }
 0x550   : > { %2518 = vrot.lane.b32.xlu1 %v5473_v37, %s3406_s23 }
 0x551   : > { %v6322_v7 = vpop.permute.xlu0 %2247  ;;  %v6324_v5 = vpop.permute.xlu2 %2301 }
 0x552   : > { %7998 = vst [vmem:[#allocation26_spill] sm:$0xff] %v6324_v5  ;;  %v6326_v9 = vpop.permute.xlu1 %2255  ;;  %v2677_v5 = vsel %vm1240_vm5, %v8004_v43, %v8003_v1 }
 0x553   : > { %7999 = vst [vmem:[#allocation64_spill] sm:$0xff] %v6326_v9  ;;  %v8005_v9 = vld [vmem:[#allocation15_spill] sm:$0xff] }
 0x554   : > { %v2708_v55 = vsel %vm1305_vm6, %v2677_v5, %v8005_v9  ;;  %v8010_v9 = vld [vmem:[#allocation69_spill] sm:$0xff] }
 0x557   : > { %2577 = vrot.lane.b32.xlu0 %v5565_v56, %s3408_s25  ;;  %2611 = vrot.lane.b32.xlu2 %v7982_v47, %s3408_s25  ;;  %v8006_v56 = vld [vmem:[#allocation56_spill] sm:$0xff]  ;;  %v8007_v47 = vld [vmem:[#allocation174_spill] sm:$0xff] }
 0x558   : > { %2486 = vrot.lane.b32.xlu1 %v5402_v25, %s3406_s23  ;;  %v2740_v25 = vsel %vm1371_vm7, %v2708_v55, %v6128_v30 }
 0x559   : > { %v6334_v54 = vpop.permute.xlu0 %2253  ;;  %v6336_v8 = vpop.permute.xlu2 %2307 }
 0x55a   : > { %8000 = vst [vmem:[#allocation34_spill] sm:$0xff] %v6334_v54  ;;  %v6338_v37 = vpop.permute.xlu1 %2293  ;;  %v2772_v54 = vsel %vm1437_vm11, %v2740_v25, %v2218_v27 }
 0x55b   : > { %8001 = vst [vmem:[#allocation91_spill] sm:$0xff] %v6336_v8 }
 0x55c   : > { %8002 = vst [vmem:[#allocation51_spill] sm:$0xff] %v6338_v37 }
 0x55f   : > { %2393 = vrot.lane.b32.xlu0 %v8006_v56, %s3407_s24  ;;  %2427 = vrot.lane.b32.xlu2 %v8007_v47, %s3407_s24  ;;  %v8011_v56 = vld [vmem:[#allocation120_spill] sm:$0xff] }
 0x560   : > { %2520 = vrot.lane.b32.xlu1 %v5486_v4, %s3406_s23  ;;  %v2680_v49 = vsel %vm1240_vm5, %v8011_v56, %v8010_v9 }
 0x561   : > { %v6354_v8 = vpop.permute.xlu0 %2259  ;;  %v2314_v1 = vpop.permute.xlu2 %2313  ;;  %v2711_v30 = vsel %vm1305_vm6, %v2680_v49, %v8012_v2  ;;  %v8017_v2 = vld [vmem:[#allocation70_spill] sm:$0xff] }
 0x562   : > { %8008 = vst [vmem:[#allocation88_spill] sm:$0xff] %v6354_v8  ;;  %v6356_v37 = vpop.permute.xlu1 %2299  ;;  %v6359_v5 = vsel %vm2794_vm12, %v2772_v54, %v2314_v1  ;;  %v2743_v27 = vsel %vm1371_vm7, %v2711_v30, %v6140_v11  ;;  %v8018_v1 = vld [vmem:[#allocation182_spill] sm:$0xff] }
 0x563   : > { %8009 = vst [vmem:[#allocation124_spill] sm:$0xff] %v6359_v5  ;;  %v2775_v54 = vsel %vm1437_vm11, %v2743_v27, %v2224_v36  ;;  %v2686_v9 = vsel %vm1240_vm5, %v8018_v1, %v8017_v2  ;;  %v8019_v30 = vld [vmem:[#allocation146_spill] sm:$0xff] }
 0x564   : > { %v8020_v27 = vld [vmem:[#allocation18_spill] sm:$0xff] }
 0x567   : > { %2579 = vrot.lane.b32.xlu0 %v5554_v33, %s3408_s25  ;;  %2613 = vrot.lane.b32.xlu2 %v7979_v61, %s3408_s25  ;;  %v8014_v33 = vld [vmem:[#allocation148_spill] sm:$0xff]  ;;  %v8015_v61 = vld [vmem:[#allocation119_spill] sm:$0xff] }
 0x568   : > { %2488 = vrot.lane.b32.xlu1 %v5407_v50, %s3406_s23 }
 0x569   : > { %v6375_v4 = vpop.permute.xlu0 %2297  ;;  %v2320_v55 = vpop.permute.xlu2 %2319 }
 0x56a   : > { %v6377_v25 = vpop.permute.xlu1 %2305  ;;  %v6380_v49 = vsel %vm2794_vm12, %v2775_v54, %v2320_v55  ;;  %v2679_v54 = vsel %vm1240_vm5, %v8020_v27, %v8019_v30  ;;  %v8021_v55 = vld [vmem:[#allocation150_spill] sm:$0xff] }
 0x56b   : > { %8013 = vst [vmem:[#allocation104_spill] sm:$0xff] %v6380_v49  ;;  %v2717_v8 = vsel %vm1305_vm6, %v2686_v9, %v8021_v55 }
 0x56c   : > { %v2749_v5 = vsel %vm1371_vm7, %v2717_v8, %v6164_v40  ;;  %v8025_v8 = vld [vmem:[#allocation149_spill] sm:$0xff] }
 0x56d   : > { %v2781_v9 = vsel %vm1437_vm11, %v2749_v5, %v2236_v0  ;;  %v2933_v0 = vld [vmem:[%s7160_s3 + $0x38] sm:$0xff]  ;;  %v8026_v5 = vld [vmem:[#allocation16_spill] sm:$0xff] }
 0x56f   : > { %2395 = vrot.lane.b32.xlu0 %v8014_v33, %s3407_s24  ;;  %2429 = vrot.lane.b32.xlu2 %v8015_v61, %s3407_s24 }
 0x570   : > { %2522 = vrot.lane.b32.xlu1 %v5499_v28, %s3406_s23  ;;  %v8022_v28 = vld [vmem:[#allocation131_spill] sm:$0xff] }
 0x571   : > { %v6388_v50 = vpop.permute.xlu0 %2303  ;;  %v6390_v11 = vpop.permute.xlu2 %2325  ;;  %v2710_v49 = vsel %vm1305_vm6, %v2679_v54, %v8022_v28  ;;  %v8027_v28 = vld [vmem:[#allocation73_spill] sm:$0xff] }
 0x572   : > { %v6392_v36 = vpop.permute.xlu1 %2311  ;;  %v2742_v2 = vsel %vm1371_vm7, %v2710_v49, %v6148_v62  ;;  %v8024_v62 = vld [vmem:[#allocation135_spill] sm:$0xff]  ;;  %v2689_v49 = vsel %vm1240_vm5, %v7997_v32, %v8026_v5 }
 0x573   : > { %8016 = vst [vmem:[#allocation147_spill] sm:$0xff] %v6392_v36  ;;  %v8033_v36 = vld [vmem:[#allocation24_spill] sm:$0xff] }
 0x577   : > { %2581 = vrot.lane.b32.xlu0 %v5569_v45, %s3408_s25  ;;  %2615 = vrot.lane.b32.xlu2 %v7983_v13, %s3408_s25  ;;  %v2774_v13 = vsel %vm1437_vm11, %v2742_v2, %v6234_v22  ;;  %v2678_v22 = vsel %vm1240_vm5, %v8025_v8, %v8024_v62  ;;  %v8028_v2 = vld [vmem:[#allocation181_spill] sm:$0xff]  ;;  %v8032_v62 = vld [vmem:[#allocation163_spill] sm:$0xff] }
 0x578   : > { %2490 = vrot.lane.b32.xlu1 %v5412_v34, %s3406_s23  ;;  %v2934_v34 = vld [vmem:[%s7160_s3 + $0x40] sm:$0xff] }
 0x579   : > { %v6415_v30 = vpop.permute.xlu0 %2309  ;;  %v2332_v45 = vpop.permute.xlu2 %2331  ;;  %3351 = vmatpush.msra.mxu2 %v2934_v34  ;;  %3043 = vmatpush.msra.mxu1 %v2934_v34 }
 0x57a   : > { %v2318_v55 = vpop.permute.xlu1 %2317  ;;  %v6420_v54 = vsel %vm2794_vm12, %v2781_v9, %v2332_v45  ;;  %v2682_v9 = vsel %vm1240_vm5, %v8028_v2, %v8027_v28  ;;  %v8029_v45 = vld [vmem:[#allocation54_spill] sm:$0xff] }
 0x57b   : > { %v6423_v40 = vsel %vm2794_vm12, %v2774_v13, %v2318_v55  ;;  %3352 = vmatpush.msra.mxu2 %v2933_v0  ;;  %3044 = vmatpush.msra.mxu1 %v2933_v0  ;;  %v2709_v13 = vsel %vm1305_vm6, %v2678_v22, %v8029_v45  ;;  %v8030_v55 = vld [vmem:[#allocation81_spill] sm:$0xff]  ;;  %v2713_v32 = vsel %vm1305_vm6, %v2682_v9, %v8033_v36  ;;  %v2932_v22 = vld [vmem:[%s7160_s3 + $0x30] sm:$0xff] }
 0x57c   : > { %8023 = vst [vmem:[#allocation136_spill] sm:$0xff] %v6423_v40  ;;  %v2720_v34 = vsel %vm1305_vm6, %v2689_v49, %v8030_v55  ;;  %v8031_v40 = vld [vmem:[#allocation48_spill] sm:$0xff]  ;;  %v2741_v0 = vsel %vm1371_vm7, %v2709_v13, %v6102_v39  ;;  %v2745_v49 = vsel %vm1371_vm7, %v2713_v32, %v6160_v20  ;;  %v2931_v20 = vld [vmem:[%s7160_s3 + $0x28] sm:$0xff]  ;;  %v8034_v55 = vld [vmem:[#allocation65_spill] sm:$0xff] }
 0x57d   : > { %v2752_v5 = vsel %vm1371_vm7, %v2720_v34, %v6176_v44  ;;  %v2773_v28 = vsel %vm1437_vm11, %v2741_v0, %v6260_v29  ;;  %3353 = vmatpush.msra.mxu2 %v2932_v22  ;;  %3045 = vmatpush.msra.mxu1 %v2932_v22  ;;  %v2930_v29 = vld [vmem:[%s7160_s3 + $0x20] sm:$0xff]  ;;  %v8035_v34 = vld [vmem:[#allocation79_spill] sm:$0xff]  ;;  %v8036_v0 = vld [vmem:[#allocation116_spill] sm:$0xff] }
 0x57e   : > { %v2784_v36 = vsel %vm1437_vm11, %v2752_v5, %v6310_v58  ;;  %v2681_v32 = vsel %vm1240_vm5, %v8035_v34, %v8034_v55  ;;  %v2692_v5 = vsel %vm1240_vm5, %v8032_v62, %v8036_v0 }
 0x57f   : > { %2397 = vrot.lane.b32.xlu0 %v8031_v40, %s3407_s24  ;;  %2431 = vrot.lane.b32.xlu2 %v8032_v62, %s3407_s24  ;;  %v2712_v22 = vsel %vm1305_vm6, %v2681_v32, %v6011_v42  ;;  %v2928_v42 = vld [vmem:[%s7160_s3 + $0x10] sm:$0xff] }
 0x580   : > { %2524 = vrot.lane.b32.xlu1 %v5488_v59, %s3406_s23  ;;  %v2777_v59 = vsel %vm1437_vm11, %v2745_v49, %v6246_v21  ;;  %3354 = vmatpush.msra.mxu2 %v2931_v20  ;;  %v2929_v21 = vld [vmem:[%s7160_s3 + $0x18] sm:$0xff]  ;;  %v8037_v49 = vld [vmem:[#allocation183_spill] sm:$0xff] }
 0x581   : > { %v2316_v39 = vpop.permute.xlu0 %2315  ;;  %v2338_v9 = vpop.permute.xlu2 %2337  ;;  %3046 = vmatpush.msra.mxu1 %v2931_v20  ;;  %v8039_v20 = vld [vmem:[#allocation128_spill] sm:$0xff] }
 0x582   : > { %v2324_v44 = vpop.permute.xlu1 %2323  ;;  %v6468_v45 = vsel %vm2794_vm12, %v2773_v28, %v2316_v39  ;;  %v6471_v13 = vsel %vm2794_vm12, %v2784_v36, %v2338_v9  ;;  %3355 = vmatpush.msra.mxu2 %v2930_v29  ;;  %v2723_v28 = vsel %vm1305_vm6, %v2692_v5, %v8037_v49  ;;  %v2744_v36 = vsel %vm1371_vm7, %v2712_v22, %v6114_v16  ;;  %v8041_v49 = vld [vmem:[#allocation13_spill] sm:$0xff] }
 0x583   : > { %v6480_v58 = vsel %vm2794_vm12, %v2777_v59, %v2324_v44  ;;  %3047 = vmatpush.msra.mxu1 %v2930_v29  ;;  %v2755_v39 = vsel %vm1371_vm7, %v2723_v28, %v6188_v52  ;;  %v2927_v59 = vld [vmem:[%s7160_s3 + $0x8] sm:$0xff]  ;;  %v8040_v29 = vld [vmem:[#allocation78_spill] sm:$0xff] }
 0x584   : > { %3356 = vmatpush.msra.mxu2 %v2929_v21  ;;  %v8042_v28 = vld [vmem:[#allocation171_spill] sm:$0xff] }
 0x585   : > { %3048 = vmatpush.msra.mxu1 %v2929_v21 }
 0x586   : > { %3357 = vmatpush.msra.mxu2 %v2928_v42 }
 0x587   : > { %2583 = vrot.lane.b32.xlu0 %v5589_v35, %s3408_s25  ;;  %2617 = vrot.lane.b32.xlu2 %v7985_v15, %s3408_s25  ;;  %v2776_v35 = vsel %vm1437_vm11, %v2744_v36, %v6270_v38  ;;  %v2787_v15 = vsel %vm1437_vm11, %v2755_v39, %v6322_v7  ;;  %v2926_v38 = vld [vmem:[%s7160_s3] sm:$0xff] }
 0x588   : > { %2492 = vrot.lane.b32.xlu1 %v5417_v3, %s3406_s23  ;;  %3049 = vmatpush.msra.mxu1 %v2928_v42  ;;  %v8038_v7 = vld [vmem:[#allocation38_spill] sm:$0xff]  ;;  %v8043_v42 = vld [vmem:[#allocation117_spill] sm:$0xff] }
 0x589   : > { %v2322_v62 = vpop.permute.xlu0 %2321  ;;  %v2344_v9 = vpop.permute.xlu2 %2343  ;;  %3358 = vmatpush.msra.mxu2 %v2927_v59  ;;  %v2688_v44 = vsel %vm1240_vm5, %v7992_v26, %v8038_v7 }
 0x58a   : > { %v6512_v16 = vpop.permute.xlu1 %2329  ;;  %v6515_v52 = vsel %vm2794_vm12, %v2776_v35, %v2322_v62  ;;  %v6518_v3 = vsel %vm2794_vm12, %v2787_v15, %v2344_v9  ;;  %3050 = vmatpush.msra.mxu1 %v2927_v59  ;;  %v2719_v21 = vsel %vm1305_vm6, %v2688_v44, %v6040_v48  ;;  %v2687_v48 = vsel %vm1240_vm5, %v7988_v63, %v8041_v49  ;;  %v8045_v9 = vld [vmem:[#allocation178_spill] sm:$0xff] }
 0x58b   : > { %3359 = vmatpush.msra.mxu2 %v2926_v38  ;;  %v2751_v55 = vsel %vm1371_vm7, %v2719_v21, %v6184_v24  ;;  %v2718_v24 = vsel %vm1305_vm6, %v2687_v48, %v6052_v60  ;;  %v8051_v21 = vld [vmem:[#allocation167_spill] sm:$0xff] }
 0x58c   : > { %3051 = vmatpush.msra.mxu1 %v2926_v38  ;;  %v2783_v26 = vsel %vm1437_vm11, %v2751_v55, %v6268_v23  ;;  %v2750_v36 = vsel %vm1371_vm7, %v2718_v24, %v6138_v18  ;;  %v8047_v38 = vld [vmem:[#allocation53_spill] sm:$0xff] }
 0x58d   : > { %v2782_v60 = vsel %vm1437_vm11, %v2750_v36, %v6292_v19  ;;  %v8044_v19 = vld [vmem:[#allocation7_spill] sm:$0xff]  ;;  %v8053_v36 = vld [vmem:[#allocation61_spill] sm:$0xff] }
 0x58f   : > { %2399 = vrot.lane.b32.xlu0 %v8039_v20, %s3407_s24  ;;  %2433 = vrot.lane.b32.xlu2 %v8040_v29, %s3407_s24 }
 0x590   : > { %2526 = vrot.lane.b32.xlu1 %v5501_v6, %s3406_s23  ;;  %v2691_v6 = vsel %vm1240_vm5, %v8015_v61, %v8042_v28 }
 0x591   : > { %v2328_v32 = vpop.permute.xlu0 %2327  ;;  %v2608_v0 = vpop.permute.xlu2 %2607  ;;  %v2722_v23 = vsel %vm1305_vm6, %v2691_v6, %v6056_v51 }
 0x592   : > { %v2336_v5 = vpop.permute.xlu1 %2335  ;;  %v2754_v63 = vsel %vm1371_vm7, %v2722_v23, %v6196_v10 }
 0x593   : > { %v6542_v22 = vsel %vm2794_vm12, %v2783_v26, %v2336_v5  ;;  %v8052_v26 = vld [vmem:[#allocation99_spill] sm:$0xff] }
 0x597   : > { %2585 = vrot.lane.b32.xlu0 %v5575_v17, %s3408_s25  ;;  %2619 = vrot.lane.b32.xlu2 %v7984_v12, %s3408_s25  ;;  %v2786_v12 = vsel %vm1437_vm11, %v2754_v63, %v6278_v46  ;;  %v3385_v63 = vunpack.i.h.bf16 %v8053_v36 }
 0x598   : > { %2494 = vrot.lane.b32.xlu1 %v5422_v53, %s3406_s23  ;;  %v2690_v53 = vsel %vm1240_vm5, %v8007_v47, %v8043_v42  ;;  %v8057_v42 = vld [vmem:[#allocation122_spill] sm:$0xff] }
 0x599   : > { %v2334_v61 = vpop.permute.xlu0 %2333  ;;  %v2424_v17 = vpop.permute.xlu2 %2423  ;;  %v2721_v10 = vsel %vm1305_vm6, %v2690_v53, %v6064_v57 }
 0x59a   : > { %v2342_v39 = vpop.permute.xlu1 %2341  ;;  %v6569_v51 = vsel %vm2794_vm12, %v2782_v60, %v2334_v61  ;;  %v2753_v46 = vsel %vm1371_vm7, %v2721_v10, %v6150_v14  ;;  %v8048_v14 = vld [vmem:[#allocation153_spill] sm:$0xff]  ;;  %v8054_v60 = vld [vmem:[#allocation156_spill] sm:$0xff]  ;;  %v8055_v61 = vld [vmem:[#allocation130_spill] sm:$0xff] }
 0x59b   : > { %v6572_v18 = vsel %vm2794_vm12, %v2786_v12, %v2342_v39  ;;  %v2785_v35 = vsel %vm1437_vm11, %v2753_v46, %v6302_v31  ;;  %v8050_v31 = vld [vmem:[#allocation93_spill] sm:$0xff]  ;;  %v2684_v12 = vsel %vm1240_vm5, %v8055_v61, %v8054_v60  ;;  %v8058_v10 = vld [vmem:[#allocation111_spill] sm:$0xff] }
 0x59f   : > { %2401 = vrot.lane.b32.xlu0 %v8004_v43, %s3407_s24  ;;  %2435 = vrot.lane.b32.xlu2 %v8044_v19, %s3407_s24  ;;  %v8046_v43 = vld [vmem:[#allocation39_spill] sm:$0xff] }
 0x5a0   : > { %2528 = vrot.lane.b32.xlu1 %v5514_v41, %s3406_s23  ;;  %v2683_v59 = vsel %vm1240_vm5, %v8046_v43, %v8045_v9  ;;  %v8049_v41 = vld [vmem:[#allocation102_spill] sm:$0xff] }
 0x5a1   : > { %v2340_v15 = vpop.permute.xlu0 %2339  ;;  %v2610_v47 = vpop.permute.xlu2 %2609  ;;  %v2714_v7 = vsel %vm1305_vm6, %v2683_v59, %v8047_v38 }
 0x5a2   : > { %v2515_v62 = vpop.permute.xlu1 %2514  ;;  %v6590_v57 = vsel %vm2794_vm12, %v2785_v35, %v2340_v15  ;;  %v2746_v44 = vsel %vm1371_vm7, %v2714_v7, %v8048_v14  ;;  %v8060_v35 = vld [vmem:[#allocation110_spill] sm:$0xff]  ;;  %v8061_v15 = vld [vmem:[#allocation33_spill] sm:$0xff]  ;;  %v8062_v7 = vld [vmem:[#allocation71_spill] sm:$0xff] }
 0x5a3   : > { %v2778_v55 = vsel %vm1437_vm11, %v2746_v44, %v8051_v21 }
 0x5a4   : > { %v2811_v5 = vsel %vm2794_vm12, %v2778_v55, %v6390_v11  ;;  %v8056_v11 = vld [vmem:[#allocation45_spill] sm:$0xff]  ;;  %v8064_v55 = vld [vmem:[#allocation195_spill] sm:$0xff] }
 0x5a5   : > { %v2715_v39 = vsel %vm1305_vm6, %v2684_v12, %v8056_v11  ;;  %v8069_v11 = vld [vmem:[#allocation127_spill] sm:$0xff] }
 0x5a6   : > { %v2747_v53 = vsel %vm1371_vm7, %v2715_v39, %v8057_v42  ;;  %v8070_v39 = vld [vmem:[#allocation76_spill] sm:$0xff] }
 0x5a7   : > { %2587 = vrot.lane.b32.xlu0 %v8049_v41, %s3408_s25  ;;  %2621 = vrot.lane.b32.xlu2 %v8050_v31, %s3408_s25  ;;  %v8063_v41 = vld [vmem:[#allocation59_spill] sm:$0xff]  ;;  %v2685_v42 = vsel %vm1240_vm5, %v8070_v39, %v8069_v11  ;;  %v8082_v11 = vld [vmem:[#allocation41_spill] sm:$0xff] }
 0x5a8   : > { %2496 = vrot.lane.b32.xlu1 %v8052_v26, %s3406_s23 }
 0x5a9   : > { %v2422_v49 = vpop.permute.xlu0 %2421  ;;  %v2426_v48 = vpop.permute.xlu2 %2425 }
 0x5aa   : > { %v2483_v28 = vpop.permute.xlu1 %2482  ;;  %v2844_v6 = vsel %vm2827_vm14, %v2811_v5, %v2422_v49  ;;  %v8065_v49 = vld [vmem:[#allocation51_spill] sm:$0xff] }
 0x5ab   : > { %v2877_v24 = vsel %vm2860_vm13, %v2844_v6, %v2515_v62  ;;  %v2668_v62 = vsel %vm1240_vm5, %v8061_v15, %v3385_v63 }
 0x5ac   : > { %v2910_v23 = vsel %vm2893_vm15, %v2877_v24, %v2608_v0  ;;  %v8059_v0 = vld [vmem:[#allocation184_spill] sm:$0xff]  ;;  %v2699_v14 = vsel %vm1305_vm6, %v2668_v62, %v8062_v7  ;;  %v8074_v62 = vld [vmem:[#allocation126_spill] sm:$0xff] }
 0x5ad   : > { %3326 = vmatmul.msk.f32.vlgmr.msra.gmra.mxu2 %vm2939_vm1, %v2910_v23  ;;  %v2779_v46 = vsel %vm1437_vm11, %v2747_v53, %v8059_v0  ;;  %v2730_v31 = vsel %vm1371_vm7, %v2699_v14, %v8063_v41  ;;  %v8067_v24 = vld [vmem:[#allocation12_spill] sm:$0xff] }
 0x5ae   : > { %v2812_v9 = vsel %vm2794_vm12, %v2779_v46, %v2328_v32  ;;  %v2762_v26 = vsel %vm1437_vm11, %v2730_v31, %v8064_v55  ;;  %v8068_v23 = vld [vmem:[#allocation140_spill] sm:$0xff]  ;;  %v8072_v46 = vld [vmem:[#allocation177_spill] sm:$0xff] }
 0x5af   : > { %2403 = vrot.lane.b32.xlu0 %v8025_v8, %s3407_s24  ;;  %2437 = vrot.lane.b32.xlu2 %v8058_v10, %s3407_s24  ;;  %v2845_v8 = vsel %vm2827_vm14, %v2812_v9, %v2424_v17  ;;  %v2795_v32 = vsel %vm2794_vm12, %v2762_v26, %v8065_v49  ;;  %v8066_v17 = vld [vmem:[#allocation11_spill] sm:$0xff]  ;;  %v8071_v53 = vld [vmem:[#allocation164_spill] sm:$0xff]  ;;  %v8077_v26 = vld [vmem:[#allocation30_spill] sm:$0xff] }
 0x5b0   : > { %2530 = vrot.lane.b32.xlu1 %v8060_v35, %s3406_s23  ;;  %v2716_v0 = vsel %vm1305_vm6, %v2685_v42, %v8071_v53  ;;  %v8083_v42 = vld [vmem:[#allocation36_spill] sm:$0xff] }
 0x5b1   : > { %v2390_v59 = vpop.permute.xlu0 %2389  ;;  %v2612_v38 = vpop.permute.xlu2 %2611  ;;  %v2748_v35 = vsel %vm1371_vm7, %v2716_v0, %v8072_v46  ;;  %v8085_v46 = vld [vmem:[#allocation118_spill] sm:$0xff] }
 0x5b2   : > { %v2517_v44 = vpop.permute.xlu1 %2516  ;;  %v2828_v6 = vsel %vm2827_vm14, %v2795_v32, %v2390_v59  ;;  %v2780_v9 = vsel %vm1437_vm11, %v2748_v35, %v8074_v62  ;;  %v8075_v59 = vld [vmem:[#allocation142_spill] sm:$0xff]  ;;  %v8078_v32 = vld [vmem:[#allocation21_spill] sm:$0xff] }
 0x5b3   : > { %v2878_v21 = vsel %vm2860_vm13, %v2845_v8, %v2517_v44  ;;  %v2813_v7 = vsel %vm2794_vm12, %v2780_v9, %v6512_v16 }
 0x5b4   : > { %v2911_v5 = vsel %vm2893_vm15, %v2878_v21, %v2610_v47  ;;  %v2861_v47 = vsel %vm2860_vm13, %v2828_v6, %v2483_v28  ;;  %v8073_v28 = vld [vmem:[#allocation20_spill] sm:$0xff]  ;;  %v2846_v41 = vsel %vm2827_vm14, %v2813_v7, %v2426_v48  ;;  %v8076_v21 = vld [vmem:[#allocation25_spill] sm:$0xff]  ;;  %v8079_v48 = vld [vmem:[#allocation143_spill] sm:$0xff] }
 0x5b5   : > { %3327 = vmatmul.msk.f32.gmra.mxu2 %vm2939_vm1, %v2911_v5 }
 0x5b7   : > { %2589 = vrot.lane.b32.xlu0 %v8066_v17, %s3408_s25  ;;  %2623 = vrot.lane.b32.xlu2 %v8067_v24, %s3408_s25  ;;  %v8080_v17 = vld [vmem:[#allocation115_spill] sm:$0xff] }
 0x5b8   : > { %2498 = vrot.lane.b32.xlu1 %v8068_v23, %s3406_s23 }
 0x5b9   : > { %v2576_v36 = vpop.permute.xlu0 %2575  ;;  %v2428_v63 = vpop.permute.xlu2 %2427 }
 0x5ba   : > { %v2485_v60 = vpop.permute.xlu1 %2484  ;;  %v2894_v12 = vsel %vm2893_vm15, %v2861_v47, %v2576_v36  ;;  %v2847_v62 = vsel %vm2827_vm14, %v6420_v54, %v2428_v63  ;;  %v8088_v54 = vld [vmem:[#allocation151_spill] sm:$0xff]  ;;  %v8089_v63 = vld [vmem:[#allocation8_spill] sm:$0xff] }
 0x5bb   : > { %3310 = vmatmul.msk.f32.vlgmr.msra.gmra.mxu1 %vm2939_vm1, %v2894_v12  ;;  %v8081_v12 = vld [vmem:[#allocation172_spill] sm:$0xff] }
 0x5bf   : > { %2405 = vrot.lane.b32.xlu0 %v8020_v27, %s3407_s24  ;;  %2439 = vrot.lane.b32.xlu2 %v8073_v28, %s3407_s24  ;;  %v2731_v27 = vsel %vm1371_vm7, %v2699_v14, %v8076_v21 }
 0x5c0   : > { %2532 = vrot.lane.b32.xlu1 %v8075_v59, %s3406_s23  ;;  %v2763_v5 = vsel %vm1437_vm11, %v2731_v27, %v8077_v26 }
 0x5c1   : > { %v2392_v8 = vpop.permute.xlu0 %2391  ;;  %v2614_v44 = vpop.permute.xlu2 %2613  ;;  %v2796_v6 = vsel %vm2794_vm12, %v2763_v5, %v8078_v32  ;;  %v8091_v32 = vld [vmem:[#allocation58_spill] sm:$0xff] }
 0x5c2   : > { %v2519_v31 = vpop.permute.xlu1 %2518  ;;  %v2829_v16 = vsel %vm2827_vm14, %v2796_v6, %v2392_v8  ;;  %v8087_v8 = vld [vmem:[#allocation87_spill] sm:$0xff]  ;;  %v8092_v6 = vld [vmem:[#allocation50_spill] sm:$0xff] }
 0x5c3   : > { %v2879_v55 = vsel %vm2860_vm13, %v2846_v41, %v2519_v31 }
 0x5c4   : > { %v2912_v49 = vsel %vm2893_vm15, %v2879_v55, %v2612_v38  ;;  %v2862_v38 = vsel %vm2860_vm13, %v2829_v16, %v2485_v60 }
 0x5c5   : > { %3328 = vmatmul.msk.f32.gmra.mxu2 %vm2939_vm1, %v2912_v49  ;;  %v8090_v49 = vld [vmem:[#allocation46_spill] sm:$0xff] }
 0x5c7   : > { %2591 = vrot.lane.b32.xlu0 %v8079_v48, %s3408_s25  ;;  %2625 = vrot.lane.b32.xlu2 %v8080_v17, %s3408_s25 }
 0x5c8   : > { %2345 = vrot.lane.b32.xlu1 %v8067_v24, %s3405_s22  ;;  %v8084_v24 = vld [vmem:[#allocation14_spill] sm:$0xff] }
 0x5c9   : > { %v2578_v14 = vpop.permute.xlu0 %2577  ;;  %v2430_v23 = vpop.permute.xlu2 %2429  ;;  %v2669_v53 = vsel %vm1240_vm5, %v8084_v24, %v8083_v42  ;;  %v8096_v24 = vld [vmem:[#allocation186_spill] sm:$0xff] }
 0x5ca   : > { %v2487_v36 = vpop.permute.xlu1 %2486  ;;  %v2895_v47 = vsel %vm2893_vm15, %v2862_v38, %v2578_v14  ;;  %v2700_v35 = vsel %vm1305_vm6, %v2669_v53, %v8085_v46  ;;  %v8094_v38 = vld [vmem:[#allocation52_spill] sm:$0xff] }
 0x5cb   : > { %3311 = vmatmul.msk.f32.gmra.mxu1 %vm2939_vm1, %v2895_v47  ;;  %v2848_v47 = vsel %vm2827_vm14, %v6569_v51, %v2430_v23  ;;  %v8097_v51 = vld [vmem:[#allocation109_spill] sm:$0xff]  ;;  %v8098_v23 = vld [vmem:[#allocation176_spill] sm:$0xff] }
 0x5cf   : > { %2407 = vrot.lane.b32.xlu0 %v8011_v56, %s3407_s24  ;;  %2500 = vrot.lane.b32.xlu2 %v8081_v12, %s3406_s23  ;;  %v8086_v56 = vld [vmem:[#allocation144_spill] sm:$0xff] }
 0x5d0   : > { %2593 = vrot.lane.b32.xlu1 %v8082_v11, %s3408_s25  ;;  %v2732_v59 = vsel %vm1371_vm7, %v2700_v35, %v8086_v56  ;;  %v8095_v11 = vld [vmem:[#allocation68_spill] sm:$0xff] }
 0x5d1   : > { %v2394_v0 = vpop.permute.xlu0 %2393  ;;  %v2616_v60 = vpop.permute.xlu2 %2615  ;;  %v2764_v41 = vsel %vm1437_vm11, %v2732_v59, %v8087_v8  ;;  %v8101_v8 = vld [vmem:[#allocation132_spill] sm:$0xff] }
 0x5d2   : > { %v2521_v9 = vpop.permute.xlu1 %2520  ;;  %v2797_v21 = vsel %vm2794_vm12, %v2764_v41, %v6375_v4  ;;  %v8102_v41 = vld [vmem:[#allocation112_spill] sm:$0xff] }
 0x5d3   : > { %v2880_v7 = vsel %vm2860_vm13, %v2847_v62, %v2521_v9  ;;  %v2830_v27 = vsel %vm2827_vm14, %v2797_v21, %v2394_v0  ;;  %v8099_v62 = vld [vmem:[#allocation95_spill] sm:$0xff] }
 0x5d4   : > { %v2913_v31 = vsel %vm2893_vm15, %v2880_v7, %v2614_v44  ;;  %v2863_v44 = vsel %vm2860_vm13, %v2830_v27, %v2487_v36  ;;  %v8100_v7 = vld [vmem:[#allocation165_spill] sm:$0xff] }
 0x5d5   : > { %3329 = vmatmul.msk.f32.gmra.mxu2 %vm2939_vm1, %v2913_v31  ;;  %v8103_v31 = vld [vmem:[#allocation47_spill] sm:$0xff] }
 0x5d6   : > { %v2671_v21 = vsel %vm1240_vm5, %v8103_v31, %v8102_v41  ;;  %v8115_v31 = vld [vmem:[#allocation194_spill] sm:$0xff] }
 0x5d7   : > { %2441 = vrot.lane.b32.xlu0 %v8088_v54, %s3407_s24  ;;  %2534 = vrot.lane.b32.xlu2 %v8089_v63, %s3406_s23 }
 0x5d8   : > { %2409 = vrot.lane.b32.xlu1 %v8035_v34, %s3407_s24  ;;  %v8093_v34 = vld [vmem:[#allocation138_spill] sm:$0xff] }
 0x5d9   : > { %v2580_v55 = vpop.permute.xlu0 %2579  ;;  %v2432_v26 = vpop.permute.xlu2 %2431  ;;  %v2670_v16 = vsel %vm1240_vm5, %v8093_v34, %v8092_v6  ;;  %v8105_v6 = vld [vmem:[#allocation27_spill] sm:$0xff] }
 0x5da   : > { %v2489_v5 = vpop.permute.xlu1 %2488  ;;  %v2896_v4 = vsel %vm2893_vm15, %v2863_v44, %v2580_v55  ;;  %v2701_v36 = vsel %vm1305_vm6, %v2670_v16, %v8094_v38  ;;  %v8104_v55 = vld [vmem:[#allocation159_spill] sm:$0xff]  ;;  %v8106_v16 = vld [vmem:[#allocation114_spill] sm:$0xff] }
 0x5db   : > { %3312 = vmatmul.msk.f32.gmra.mxu1 %vm2939_vm1, %v2896_v4  ;;  %v2733_v42 = vsel %vm1371_vm7, %v2701_v36, %v8095_v11  ;;  %v2702_v44 = vsel %vm1305_vm6, %v2671_v21, %v8104_v55  ;;  %v8107_v36 = vld [vmem:[#allocation26_spill] sm:$0xff]  ;;  %v8116_v55 = vld [vmem:[#allocation84_spill] sm:$0xff] }
 0x5dc   : > { %v2765_v53 = vsel %vm1437_vm11, %v2733_v42, %v8096_v24  ;;  %v2734_v34 = vsel %vm1371_vm7, %v2702_v44, %v8105_v6 }
 0x5dd   : > { %v2798_v46 = vsel %vm2794_vm12, %v2765_v53, %v6356_v37  ;;  %v8110_v53 = vld [vmem:[#allocation100_spill] sm:$0xff] }
 0x5df   : > { %2627 = vrot.lane.b32.xlu0 %v8090_v49, %s3408_s25  ;;  %2347 = vrot.lane.b32.xlu2 %v8080_v17, %s3405_s22 }
 0x5e0   : > { %2443 = vrot.lane.b32.xlu1 %v8091_v32, %s3407_s24 }
 0x5e1   : > { %v2396_v48 = vpop.permute.xlu0 %2395  ;;  %v2618_v14 = vpop.permute.xlu2 %2617 }
 0x5e2   : > { %v2523_v12 = vpop.permute.xlu1 %2522  ;;  %v2831_v35 = vsel %vm2827_vm14, %v2798_v46, %v2396_v48  ;;  %v2766_v48 = vsel %vm1437_vm11, %v2734_v34, %v8106_v16  ;;  %v8119_v16 = vld [vmem:[#allocation85_spill] sm:$0xff] }
 0x5e3   : > { %v2881_v17 = vsel %vm2860_vm13, %v2848_v47, %v2523_v12  ;;  %v2799_v47 = vsel %vm2794_vm12, %v2766_v48, %v8107_v36  ;;  %v8121_v48 = vld [vmem:[#allocation56_spill] sm:$0xff] }
 0x5e4   : > { %v2914_v0 = vsel %vm2893_vm15, %v2881_v17, %v2616_v60  ;;  %v2864_v60 = vsel %vm2860_vm13, %v2831_v35, %v2489_v5  ;;  %v2849_v5 = vsel %vm2827_vm14, %v6542_v22, %v2432_v26  ;;  %v8108_v22 = vld [vmem:[#allocation121_spill] sm:$0xff]  ;;  %v8109_v26 = vld [vmem:[#allocation123_spill] sm:$0xff] }
 0x5e5   : > { %3330 = vmatmul.msk.f32.gmra.mxu2 %vm2939_vm1, %v2914_v0  ;;  %v1912_v0 = vrot.slane %v8110_v53, 1  ;;  %v1911_v46 = vrot.slane %v8109_v26, 1  ;;  %v8111_v35 = vld [vmem:[#allocation67_spill] sm:$0xff] }
 0x5e7   : > { %2502 = vrot.lane.b32.xlu0 %v8097_v51, %s3406_s23  ;;  %2595 = vrot.lane.b32.xlu2 %v8098_v23, %s3408_s25  ;;  %v8112_v51 = vld [vmem:[#allocation63_spill] sm:$0xff]  ;;  %v8113_v23 = vld [vmem:[#allocation80_spill] sm:$0xff] }
 0x5e8   : > { %2629 = vrot.lane.b32.xlu1 %v8099_v62, %s3408_s25 }
 0x5e9   : > { %v2582_v9 = vpop.permute.xlu0 %2581  ;;  %v2434_v56 = vpop.permute.xlu2 %2433 }
 0x5ea   : > { %v2491_v59 = vpop.permute.xlu1 %2490  ;;  %v2897_v37 = vsel %vm2893_vm15, %v2864_v60, %v2582_v9  ;;  %v2672_v9 = vsel %vm1240_vm5, %v8113_v23, %v8112_v51  ;;  %v8125_v23 = vld [vmem:[#allocation2_spill] sm:$0xff] }
 0x5eb   : > { %3313 = vmatmul.msk.f32.gmra.mxu1 %vm2939_vm1, %v2897_v37  ;;  %v8114_v37 = vld [vmem:[#allocation19_spill] sm:$0xff] }
 0x5ef   : > { %2536 = vrot.lane.b32.xlu0 %v8100_v7, %s3406_s23  ;;  %2411 = vrot.lane.b32.xlu2 %v8028_v2, %s3407_s24  ;;  %v2703_v7 = vsel %vm1305_vm6, %v2672_v9, %v8114_v37  ;;  %v8126_v37 = vld [vmem:[#allocation35_spill] sm:$0xff] }
 0x5f0   : > { %2504 = vrot.lane.b32.xlu1 %v8101_v8, %s3406_s23  ;;  %v2850_v8 = vsel %vm2827_vm14, %v6471_v13, %v2434_v56  ;;  %v2735_v21 = vsel %vm1371_vm7, %v2703_v7, %v8115_v31  ;;  %v8117_v13 = vld [vmem:[#allocation173_spill] sm:$0xff]  ;;  %v8118_v56 = vld [vmem:[#allocation3_spill] sm:$0xff] }
 0x5f1   : > { %v2398_v27 = vpop.permute.xlu0 %2397  ;;  %v2620_v63 = vpop.permute.xlu2 %2619 }
 0x5f2   : > { %v2525_v4 = vpop.permute.xlu1 %2524  ;;  %v2832_v12 = vsel %vm2827_vm14, %v2799_v47, %v2398_v27 }
 0x5f3   : > { %v2882_v2 = vsel %vm2860_vm13, %v2849_v5, %v2525_v4 }
 0x5f4   : > { %v2915_v38 = vsel %vm2893_vm15, %v2882_v2, %v2618_v14  ;;  %v2865_v14 = vsel %vm2860_vm13, %v2832_v12, %v2491_v59  ;;  %v8122_v12 = vld [vmem:[#allocation141_spill] sm:$0xff] }
 0x5f5   : > { %3331 = vmatmul.msk.f32.gmra.mxu2 %vm2939_vm1, %v2915_v38 }
 0x5f7   : > { %2349 = vrot.lane.b32.xlu0 %v8090_v49, %s3405_s22  ;;  %2445 = vrot.lane.b32.xlu2 %v8108_v22, %s3407_s24  ;;  %v1913_v49 = vsel %vm382_vm0, %v1911_v46, %v1912_v0 }
 0x5f8   : > { %2538 = vrot.lane.b32.xlu1 %v8109_v26, %s3406_s23 }
 0x5f9   : > { %v2584_v11 = vpop.permute.xlu0 %2583  ;;  %v2436_v42 = vpop.permute.xlu2 %2435 }
 0x5fa   : > { %v2493_v17 = vpop.permute.xlu1 %2492  ;;  %v2898_v24 = vsel %vm2893_vm15, %v2865_v14, %v2584_v11  ;;  %v2851_v26 = vsel %vm2827_vm14, %v6590_v57, %v2436_v42  ;;  %v8123_v14 = vld [vmem:[#allocation83_spill] sm:$0xff]  ;;  %v1914_v57 = vsel %vm382_vm0, %v1912_v0, %v8125_v23  ;;  %v8127_v0 = vld [vmem:[#allocation113_spill] sm:$0xff] }
 0x5fb   : > { %3314 = vmatmul.msk.f32.gmra.mxu1 %vm2939_vm1, %v2898_v24 }
 0x5ff   : > { %2597 = vrot.lane.b32.xlu0 %v8111_v35, %s3408_s25  ;;  %2631 = vrot.lane.b32.xlu2 %v1913_v49, %s3408_s25 }
 0x600   : > { %2351 = vrot.lane.b32.xlu1 %v8099_v62, %s3405_s22  ;;  %v2767_v62 = vsel %vm1437_vm11, %v2735_v21, %v8116_v55  ;;  %v8130_v55 = vld [vmem:[#allocation49_spill] sm:$0xff] }
 0x601   : > { %v2400_v60 = vpop.permute.xlu0 %2399  ;;  %v2622_v59 = vpop.permute.xlu2 %2621  ;;  %v2800_v5 = vsel %vm2794_vm12, %v2767_v62, %v6388_v50 }
 0x602   : > { %v2527_v41 = vpop.permute.xlu1 %2526  ;;  %v2833_v4 = vsel %vm2827_vm14, %v2800_v5, %v2400_v60  ;;  %v8131_v5 = vld [vmem:[#allocation154_spill] sm:$0xff] }
 0x603   : > { %v2883_v27 = vsel %vm2860_vm13, %v2850_v8, %v2527_v41  ;;  %v8129_v41 = vld [vmem:[#allocation108_spill] sm:$0xff] }
 0x604   : > { %v2916_v44 = vsel %vm2893_vm15, %v2883_v27, %v2620_v63  ;;  %v2866_v63 = vsel %vm2860_vm13, %v2833_v4, %v2493_v17 }
 0x605   : > { %3332 = vmatmul.msk.f32.gmra.mxu2 %vm2939_vm1, %v2916_v44 }
 0x607   : > { %2413 = vrot.lane.b32.xlu0 %v8046_v43, %s3407_s24  ;;  %2506 = vrot.lane.b32.xlu2 %v8117_v13, %s3406_s23  ;;  %v8120_v43 = vld [vmem:[#allocation125_spill] sm:$0xff] }
 0x608   : > { %2599 = vrot.lane.b32.xlu1 %v8118_v56, %s3408_s25  ;;  %v2673_v38 = vsel %vm1240_vm5, %v8121_v48, %v8120_v43  ;;  %v6888_v48 = vld [vmem:[%s7161_s4] ss:$0 sm:$0xff] }
 0x609   : > { %v2586_v6 = vpop.permute.xlu0 %2585  ;;  %v2438_v34 = vpop.permute.xlu2 %2437  ;;  %v2704_v22 = vsel %vm1305_vm6, %v2673_v38, %v8122_v12  ;;  %v8136_v38 = vld [vmem:[#allocation9_spill] sm:$0xff] }
 0x60a   : > { %v2495_v2 = vpop.permute.xlu1 %2494  ;;  %v2899_v50 = vsel %vm2893_vm15, %v2866_v63, %v2586_v6  ;;  %v2736_v17 = vsel %vm1371_vm7, %v2704_v22, %v8123_v14  ;;  %v2852_v21 = vsel %vm2827_vm14, %v6572_v18, %v2438_v34  ;;  %v8133_v18 = vmov 0.0   ;;  %v8134_v34 = vld [vmem:[#allocation44_spill] sm:$0xff]  ;;  %v8138_v14 = vld [vmem:[#allocation86_spill] sm:$0xff] }
 0x60b   : > { %3315 = vmatmul.msk.f32.gmra.mxu1 %vm2939_vm1, %v2899_v50 }
 0x60f   : > { %2447 = vrot.lane.b32.xlu0 %v8119_v16, %s3407_s24  ;;  %2540 = vrot.lane.b32.xlu2 %v8110_v53, %s3406_s23  ;;  %v8124_v53 = vld [vmem:[#allocation6_spill] sm:$0xff] }
 0x610   : > { %2415 = vrot.lane.b32.xlu1 %v8055_v61, %s3407_s24  ;;  %v2768_v61 = vsel %vm1437_vm11, %v2736_v17, %v8124_v53 }
 0x611   : > { %v2402_v36 = vpop.permute.xlu0 %2401  ;;  %v2624_v47 = vpop.permute.xlu2 %2623  ;;  %v2801_v35 = vsel %vm2794_vm12, %v2768_v61, %v6377_v25  ;;  %v8139_v61 = vld [vmem:[#allocation199_spill] sm:$0xff] }
 0x612   : > { %v2529_v11 = vpop.permute.xlu1 %2528  ;;  %v2834_v51 = vsel %vm2827_vm14, %v2801_v35, %v2402_v36 }
 0x613   : > { %v2884_v24 = vsel %vm2860_vm13, %v2851_v26, %v2529_v11  ;;  %v2867_v60 = vsel %vm2860_vm13, %v2834_v51, %v2495_v2  ;;  %v8140_v51 = vld [vmem:[#allocation103_spill] sm:$0xff] }
 0x614   : > { %v2917_v46 = vsel %vm2893_vm15, %v2884_v24, %v2622_v59 }
 0x615   : > { %3333 = vmatmul.msk.f32.gmra.mxu2 %vm2939_vm1, %v2917_v46 }
 0x617   : > { %2633 = vrot.lane.b32.xlu0 %v1914_v57, %s3408_s25  ;;  %2353 = vrot.lane.b32.xlu2 %v1913_v49, %s3405_s22  ;;  %v8128_v49 = vld [vmem:[#allocation31_spill] sm:$0xff] }
 0x618   : > { %2449 = vrot.lane.b32.xlu1 %v8061_v15, %s3407_s24  ;;  %v2674_v15 = vsel %vm1240_vm5, %v8014_v33, %v8128_v49  ;;  %v8132_v33 = vld [vmem:[#allocation91_spill] sm:$0xff] }
 0x619   : > { %v2588_v42 = vpop.permute.xlu0 %2587  ;;  %v2440_v9 = vpop.permute.xlu2 %2439  ;;  %v2705_v31 = vsel %vm1305_vm6, %v2674_v15, %v8129_v41  ;;  %v8142_v41 = vld [vmem:[#allocation42_spill] sm:$0xff] }
 0x61a   : > { %v2497_v59 = vpop.permute.xlu1 %2496  ;;  %v2900_v25 = vsel %vm2893_vm15, %v2867_v60, %v2588_v42  ;;  %v2737_v62 = vsel %vm1371_vm7, %v2705_v31, %v8130_v55  ;;  %v2853_v24 = vsel %vm2827_vm14, %v6518_v3, %v2440_v9  ;;  %v8141_v9 = vld [vmem:[#allocation74_spill] sm:$0xff]  ;;  %v2676_v31 = vsel %vm1240_vm5, %v8039_v20, %v8142_v41  ;;  %v8144_v55 = vld [vmem:[#allocation92_spill] sm:$0xff]  ;;  %v8153_v41 = vld [vmem:[#allocation133_spill] sm:$0xff] }
 0x61b   : > { %3316 = vmatmul.msk.f32.gmra.mxu1 %vm2939_vm1, %v2900_v25  ;;  %v2769_v4 = vsel %vm1437_vm11, %v2737_v62, %v8131_v5 }
 0x61c   : > { %v2802_v56 = vsel %vm2794_vm12, %v2769_v4, %v8132_v33  ;;  %v8146_v4 = vld [vmem:[#allocation147_spill] sm:$0xff] }
 0x61f   : > { %2508 = vrot.lane.b32.xlu0 %v8126_v37, %s3406_s23  ;;  %2601 = vrot.lane.b32.xlu2 %v8127_v0, %s3408_s25 }
 0x620   : > { %2635 = vrot.lane.b32.xlu1 %v8125_v23, %s3408_s25 }
 0x621   : > { %v2404_v7 = vpop.permute.xlu0 %2403  ;;  %v2626_v8 = vpop.permute.xlu2 %2625 }
 0x622   : > { %v2531_v27 = vpop.permute.xlu1 %2530  ;;  %v2835_v6 = vsel %vm2827_vm14, %v2802_v56, %v2404_v7 }
 0x623   : > { %v2885_v44 = vsel %vm2860_vm13, %v2852_v21, %v2531_v27  ;;  %v2868_v50 = vsel %vm2860_vm13, %v2835_v6, %v2497_v59  ;;  %v8143_v21 = vld [vmem:[#allocation62_spill] sm:$0xff] }
 0x624   : > { %v2918_v13 = vsel %vm2893_vm15, %v2885_v44, %v2624_v47  ;;  %v8137_v47 = vld [vmem:[#allocation175_spill] sm:$0xff]  ;;  %v2707_v27 = vsel %vm1305_vm6, %v2676_v31, %v8143_v21  ;;  %v8154_v21 = vld [vmem:[#allocation200_spill] sm:$0xff] }
 0x625   : > { %3334 = vmatmul.msk.f32.gmra.mxu2 %vm2939_vm1, %v2918_v13  ;;  %v2675_v12 = vsel %vm1240_vm5, %v8031_v40, %v8137_v47  ;;  %v2739_v62 = vsel %vm1371_vm7, %v2707_v27, %v8144_v55  ;;  %v8145_v44 = vld [vmem:[#allocation23_spill] sm:$0xff]  ;;  %v8155_v55 = vld [vmem:[#allocation193_spill] sm:$0xff] }
 0x626   : > { %v2706_v17 = vsel %vm1305_vm6, %v2675_v12, %v8138_v14  ;;  %v2771_v5 = vsel %vm1437_vm11, %v2739_v62, %v8145_v44  ;;  %v8148_v47 = vld [vmem:[#allocation155_spill] sm:$0xff] }
 0x627   : > { %2542 = vrot.lane.b32.xlu0 %v8133_v18, %s3406_s23  ;;  %2417 = vrot.lane.b32.xlu2 %v8070_v39, %s3407_s24  ;;  %v8135_v39 = vld [vmem:[#allocation40_spill] sm:$0xff]  ;;  %v2738_v40 = vsel %vm1371_vm7, %v2706_v17, %v8139_v61  ;;  %v2804_v13 = vsel %vm2794_vm12, %v2771_v5, %v8146_v4 }
 0x628   : > { %2510 = vrot.lane.b32.xlu1 %v8134_v34, %s3406_s23  ;;  %v2770_v23 = vsel %vm1437_vm11, %v2738_v40, %v8140_v51 }
 0x629   : > { %v2590_v63 = vpop.permute.xlu0 %2589  ;;  %v2501_v2 = vpop.permute.xlu2 %2500  ;;  %v2803_v3 = vsel %vm2794_vm12, %v2770_v23, %v6415_v30 }
 0x62a   : > { %v2499_v16 = vpop.permute.xlu1 %2498  ;;  %v2901_v43 = vsel %vm2893_vm15, %v2868_v50, %v2590_v63 }
 0x62b   : > { %3317 = vmatmul.msk.f32.gmra.mxu1 %vm2939_vm1, %v2901_v43 }
 0x62f   : > { %2355 = vrot.lane.b32.xlu0 %v1914_v57, %s3405_s22  ;;  %2603 = vrot.lane.b32.xlu2 %v8135_v39, %s3408_s25 }
 0x630   : > { %2512 = vrot.lane.b32.xlu1 %v8136_v38, %s3406_s23  ;;  %v3101_v36 = vpop.f32.mrf.mxu2  ;;  %s6908_s23 = scalar_lea.vmem %s7162_s5, %s3344_s21 }
 0x631   : > { %v3102_v22 = vadd.f32 %v6888_v48, %v3101_v36  ;;  %v2406_v26 = vpop.permute.xlu0 %2405  ;;  %v2535_v11 = vpop.permute.xlu2 %2534 }
 0x632   : > { %v2533_v53 = vpop.permute.xlu1 %2532  ;;  %v2836_v42 = vsel %vm2827_vm14, %v2803_v3, %v2406_v26 }
 0x633   : > { %v3165_v46 = vmax.f32 %v3102_v22, 0.0  ;;  %v2886_v35 = vsel %vm2860_vm13, %v2853_v24, %v2533_v53  ;;  %v2869_v49 = vsel %vm2860_vm13, %v2836_v42, %v2499_v16  ;;  %v8147_v16 = vld [vmem:[#allocation32_spill] sm:$0xff]  ;;  %v8149_v22 = vld [vmem:[#allocation134_spill] sm:$0xff]  ;;  %v8150_v53 = vld [vmem:[#allocation197_spill] sm:$0xff] }
 0x634   : > { %v2919_v57 = vsel %vm2893_vm15, %v2886_v35, %v2626_v8  ;;  %v2693_v43 = vsel %vm1240_vm5, %v8040_v29, %v8147_v16 }
 0x635   : > { %3197 = vst.msk [vmem:[%s6908_s23 + $0x80] sm:$0xff] %vm1240_vm5, %v3165_v46  ;;  %3335 = vmatmul.msk.f32.gmra.mxu2 %vm2939_vm1, %v2919_v57 }
 0x637   : > { %2419 = vrot.lane.b32.xlu0 %v8018_v1, %s3407_s24  ;;  %2605 = vrot.lane.b32.xlu2 %v8141_v9, %s3408_s25  ;;  %v8151_v9 = vld [vmem:[#allocation124_spill] sm:$0xff] }
 0x638   : > { %v3053_v60 = vpop.f32.mrf.mxu1  ;;  %v3104_v59 = vpop.f32.mrf.mxu2 }
 0x639   : > { %v3054_v25 = vadd.f32 %v6888_v48, %v3053_v60  ;;  %v3105_v30 = vadd.f32 %v6888_v48, %v3104_v59  ;;  %v2592_v37 = vpop.permute.xlu0 %2591  ;;  %v6928_v0 = vpop.permute.xlu2 %2347 }
 0x63a   : > { %v2346_v15 = vpop.permute.xlu1 %2345  ;;  %v2902_v7 = vsel %vm2893_vm15, %v2869_v49, %v2592_v37 }
 0x63b   : > { %v3149_v8 = vmax.f32 %v3054_v25, 0.0  ;;  %v3166_v1 = vmax.f32 %v3105_v30, 0.0  ;;  %3318 = vmatmul.msk.f32.gmra.mxu1 %vm2939_vm1, %v2902_v7 }
 0x63d   : > { %3181 = vst.msk [vmem:[%s6908_s23] sm:$0xff] %vm1240_vm5, %v3149_v8  ;;  %v8152_v8 = vld [vmem:[#allocation72_spill] sm:$0xff] }
 0x63e   : > { %3198 = vst.msk [vmem:[%s6908_s23 + $0x88] sm:$0xff] %vm1240_vm5, %v3166_v1  ;;  %v2694_v1 = vsel %vm1240_vm5, %v8044_v19, %v8152_v8  ;;  %v8162_v8 = vld [vmem:[#allocation17_spill] sm:$0xff] }
 0x63f   : > { %v2725_v31 = vsel %vm1305_vm6, %v2694_v1, %v8153_v41 }
 0x640   : > { %v2757_v27 = vsel %vm1371_vm7, %v2725_v31, %v8154_v21  ;;  %v8163_v31 = vld [vmem:[#allocation166_spill] sm:$0xff] }
 0x641   : > { %v2408_v33 = vpop.permute.xlu0 %2407  ;;  %v2596_v56 = vpop.permute.xlu2 %2595  ;;  %v2789_v62 = vsel %vm1437_vm11, %v2757_v27, %v8155_v55  ;;  %v8164_v27 = vld [vmem:[#allocation64_spill] sm:$0xff] }
 0x642   : > { %v2594_v6 = vpop.permute.xlu1 %2593  ;;  %v2837_v20 = vsel %vm2827_vm14, %v2804_v13, %v2408_v33  ;;  %v2822_v5 = vsel %vm2794_vm12, %v2789_v62, %v6928_v0 }
 0x643   : > { %v2870_v18 = vsel %vm2860_vm13, %v2837_v20, %v2501_v2  ;;  %v2724_v2 = vsel %vm1305_vm6, %v2693_v43, %v8148_v47  ;;  %v8159_v43 = vld [vmem:[#allocation34_spill] sm:$0xff] }
 0x644   : > { %v2903_v34 = vsel %vm2893_vm15, %v2870_v18, %v2594_v6  ;;  %v2756_v26 = vsel %vm1371_vm7, %v2724_v2, %v8149_v22  ;;  %v8156_v6 = vld [vmem:[#allocation5_spill] sm:$0xff]  ;;  %v8157_v18 = vld [vmem:[#allocation82_spill] sm:$0xff] }
 0x645   : > { %3319 = vmatmul.msk.f32.gmra.mxu1 %vm2939_vm1, %v2903_v34  ;;  %v2788_v61 = vsel %vm1437_vm11, %v2756_v26, %v8150_v53  ;;  %v2695_v20 = vsel %vm1240_vm5, %v8058_v10, %v8156_v6 }
 0x646   : > { %v2821_v29 = vsel %vm2794_vm12, %v2788_v61, %v2346_v15  ;;  %v2726_v34 = vsel %vm1305_vm6, %v2695_v20, %v8157_v18 }
 0x648   : > { %v3107_v63 = vpop.f32.mrf.mxu2  ;;  %v3056_v50 = vpop.f32.mrf.mxu1 }
 0x649   : > { %v3108_v39 = vadd.f32 %v6888_v48, %v3107_v63  ;;  %v3057_v38 = vadd.f32 %v6888_v48, %v3056_v50  ;;  %v2442_v36 = vpop.permute.xlu0 %2441  ;;  %v2412_v24 = vpop.permute.xlu2 %2411  ;;  %v8158_v63 = vld [vmem:[#allocation203_spill] sm:$0xff] }
 0x64a   : > { %v2410_v12 = vpop.permute.xlu1 %2409  ;;  %v2854_v40 = vsel %vm2827_vm14, %v2821_v29, %v2442_v36  ;;  %v2758_v0 = vsel %vm1371_vm7, %v2726_v34, %v8158_v63  ;;  %v2839_v61 = vsel %vm2827_vm14, %v6468_v45, %v2412_v24  ;;  %v8160_v45 = vld [vmem:[#allocation136_spill] sm:$0xff] }
 0x64b   : > { %v3167_v14 = vmax.f32 %v3108_v39, 0.0  ;;  %v3150_v17 = vmax.f32 %v3057_v38, 0.0  ;;  %v2887_v35 = vsel %vm2860_vm13, %v2854_v40, %v2535_v11  ;;  %v2838_v60 = vsel %vm2827_vm14, %v8151_v9, %v2410_v12  ;;  %v8165_v63 = vld [vmem:[#allocation104_spill] sm:$0xff] }
 0x64c   : > { %v2790_v39 = vsel %vm1437_vm11, %v2758_v0, %v8159_v43 }
 0x64d   : > { %3199 = vst.msk [vmem:[%s6908_s23 + $0x90] sm:$0xff] %vm1240_vm5, %v3167_v14 }
 0x64e   : > { %3182 = vst.msk [vmem:[%s6908_s23 + $0x8] sm:$0xff] %vm1240_vm5, %v3150_v17 }
 0x651   : > { %v2628_v46 = vpop.permute.xlu0 %2627  ;;  %v2446_v57 = vpop.permute.xlu2 %2445 }
 0x652   : > { %v2444_v51 = vpop.permute.xlu1 %2443  ;;  %v2920_v23 = vsel %vm2893_vm15, %v2887_v35, %v2628_v46 }
 0x653   : > { %3336 = vmatmul.msk.f32.gmra.mxu2 %vm2939_vm1, %v2920_v23  ;;  %v2855_v19 = vsel %vm2827_vm14, %v2822_v5, %v2444_v51 }
 0x658   : > { %v3110_v3 = vpop.f32.mrf.mxu2  ;;  %v3059_v42 = vpop.f32.mrf.mxu1 }
 0x659   : > { %v3111_v59 = vadd.f32 %v6888_v48, %v3110_v3  ;;  %v3060_v25 = vadd.f32 %v6888_v48, %v3059_v42  ;;  %v2503_v30 = vpop.permute.xlu0 %2502  ;;  %v2632_v44 = vpop.permute.xlu2 %2631 }
 0x65a   : > { %v2630_v37 = vpop.permute.xlu1 %2629  ;;  %v2871_v11 = vsel %vm2860_vm13, %v2838_v60, %v2503_v30 }
 0x65b   : > { %v3168_v49 = vmax.f32 %v3111_v59, 0.0  ;;  %v3151_v15 = vmax.f32 %v3060_v25, 0.0  ;;  %v2904_v7 = vsel %vm2893_vm15, %v2871_v11, %v2596_v56 }
 0x65c   : > { %3320 = vmatmul.msk.f32.gmra.mxu1 %vm2939_vm1, %v2904_v7 }
 0x65d   : > { %3200 = vst.msk [vmem:[%s6908_s23 + $0x98] sm:$0xff] %vm1240_vm5, %v3168_v49  ;;  %v8161_v49 = vld [vmem:[#allocation179_spill] sm:$0xff] }
 0x65e   : > { %3183 = vst.msk [vmem:[%s6908_s23 + $0x10] sm:$0xff] %vm1240_vm5, %v3151_v15  ;;  %v2696_v15 = vsel %vm1240_vm5, %v8073_v28, %v8161_v49 }
 0x65f   : > { %v2727_v1 = vsel %vm1305_vm6, %v2696_v15, %v8162_v8 }
 0x660   : > { %v2759_v21 = vsel %vm1371_vm7, %v2727_v1, %v8163_v31 }
 0x661   : > { %v2537_v4 = vpop.permute.xlu0 %2536  ;;  %v2507_v38 = vpop.permute.xlu2 %2506  ;;  %v2791_v55 = vsel %vm1437_vm11, %v2759_v21, %v8164_v27 }
 0x662   : > { %v2505_v13 = vpop.permute.xlu1 %2504  ;;  %v2888_v33 = vsel %vm2860_vm13, %v2855_v19, %v2537_v4 }
 0x663   : > { %v2921_v56 = vsel %vm2893_vm15, %v2888_v33, %v2630_v37  ;;  %v2872_v29 = vsel %vm2860_vm13, %v2839_v61, %v2505_v13 }
 0x664   : > { %3337 = vmatmul.msk.f32.gmra.mxu2 %vm2939_vm1, %v2921_v56 }
 0x668   : > { %v3113_v50 = vpop.f32.mrf.mxu2  ;;  %v3062_v16 = vpop.f32.mrf.mxu1 }
 0x669   : > { %v3114_v36 = vadd.f32 %v6888_v48, %v3113_v50  ;;  %v3063_v47 = vadd.f32 %v6888_v48, %v3062_v16  ;;  %v2350_v2 = vpop.permute.xlu0 %2349  ;;  %v2541_v51 = vpop.permute.xlu2 %2540 }
 0x66a   : > { %v2539_v10 = vpop.permute.xlu1 %2538  ;;  %v2823_v12 = vsel %vm2794_vm12, %v2790_v39, %v2350_v2  ;;  %v8167_v2 = vld [vmem:[#allocation188_spill] sm:$0xff] }
 0x66b   : > { %v3169_v22 = vmax.f32 %v3114_v36, 0.0  ;;  %v3152_v26 = vmax.f32 %v3063_v47, 0.0  ;;  %v2856_v14 = vsel %vm2827_vm14, %v2823_v12, %v2446_v57  ;;  %v8166_v36 = vld [vmem:[#allocation161_spill] sm:$0xff]  ;;  %v8168_v12 = vld [vmem:[#allocation60_spill] sm:$0xff] }
 0x66c   : > { %v2889_v17 = vsel %vm2860_vm13, %v2856_v14, %v2539_v10  ;;  %v2697_v47 = vsel %vm1240_vm5, %v8088_v54, %v8166_v36 }
 0x66d   : > { %3201 = vst.msk [vmem:[%s6908_s23 + $0xa0] sm:$0xff] %vm1240_vm5, %v3169_v22  ;;  %v2922_v53 = vsel %vm2893_vm15, %v2889_v17, %v2632_v44  ;;  %v2728_v10 = vsel %vm1305_vm6, %v2697_v47, %v8167_v2 }
 0x66e   : > { %3184 = vst.msk [vmem:[%s6908_s23 + $0x18] sm:$0xff] %vm1240_vm5, %v3152_v26  ;;  %3338 = vmatmul.msk.f32.gmra.mxu2 %vm2939_vm1, %v2922_v53  ;;  %v2760_v22 = vsel %vm1371_vm7, %v2728_v10, %v8168_v12  ;;  %v8169_v26 = vld [vmem:[#allocation189_spill] sm:$0xff] }
 0x66f   : > { %v2792_v14 = vsel %vm1437_vm11, %v2760_v22, %v8169_v26 }
 0x671   : > { %v2598_v40 = vpop.permute.xlu0 %2597  ;;  %v2354_v11 = vpop.permute.xlu2 %2353 }
 0x672   : > { %v2352_v46 = vpop.permute.xlu1 %2351  ;;  %v2905_v35 = vsel %vm2893_vm15, %v2872_v29, %v2598_v40  ;;  %v2825_v17 = vsel %vm2794_vm12, %v2792_v14, %v2354_v11  ;;  %v8173_v11 = vld [vmem:[#allocation88_spill] sm:$0xff] }
 0x673   : > { %3321 = vmatmul.msk.f32.gmra.mxu1 %vm2939_vm1, %v2905_v35  ;;  %v2824_v62 = vsel %vm2794_vm12, %v2791_v55, %v2352_v46 }
 0x678   : > { %v3116_v23 = vpop.f32.mrf.mxu2  ;;  %v3065_v57 = vpop.f32.mrf.mxu1 }
 0x679   : > { %v3117_v3 = vadd.f32 %v6888_v48, %v3116_v23  ;;  %v3066_v42 = vadd.f32 %v6888_v48, %v3065_v57  ;;  %v2414_v9 = vpop.permute.xlu0 %2413  ;;  %v2602_v5 = vpop.permute.xlu2 %2601 }
 0x67a   : > { %v2600_v60 = vpop.permute.xlu1 %2599  ;;  %v2840_v24 = vsel %vm2827_vm14, %v8160_v45, %v2414_v9 }
 0x67b   : > { %v3170_v59 = vmax.f32 %v3117_v3, 0.0  ;;  %v3153_v25 = vmax.f32 %v3066_v42, 0.0  ;;  %v2873_v30 = vsel %vm2860_vm13, %v2840_v24, %v2507_v38  ;;  %v8170_v24 = vld [vmem:[#allocation97_spill] sm:$0xff] }
 0x67c   : > { %v2906_v37 = vsel %vm2893_vm15, %v2873_v30, %v2600_v60  ;;  %v8172_v30 = vld [vmem:[#allocation10_spill] sm:$0xff] }
 0x67d   : > { %3202 = vst.msk [vmem:[%s6908_s23 + $0xa8] sm:$0xff] %vm1240_vm5, %v3170_v59  ;;  %3322 = vmatmul.msk.f32.gmra.mxu1 %vm2939_vm1, %v2906_v37  ;;  %v8171_v59 = vld [vmem:[#allocation101_spill] sm:$0xff] }
 0x67e   : > { %3185 = vst.msk [vmem:[%s6908_s23 + $0x20] sm:$0xff] %vm1240_vm5, %v3153_v25 }
 0x681   : > { %v2448_v7 = vpop.permute.xlu0 %2447  ;;  %v2418_v50 = vpop.permute.xlu2 %2417 }
 0x682   : > { %v2416_v41 = vpop.permute.xlu1 %2415  ;;  %v2857_v44 = vsel %vm2827_vm14, %v2824_v62, %v2448_v7  ;;  %v2842_v35 = vsel %vm2827_vm14, %v6515_v52, %v2418_v50  ;;  %v2698_v52 = vsel %vm1240_vm5, %v8091_v32, %v8170_v24 }
 0x683   : > { %v2890_v56 = vsel %vm2860_vm13, %v2857_v44, %v2541_v51  ;;  %v2841_v0 = vsel %vm2827_vm14, %v8165_v63, %v2416_v41  ;;  %v2729_v25 = vsel %vm1305_vm6, %v2698_v52, %v8171_v59 }
 0x684   : > { %v2761_v37 = vsel %vm1371_vm7, %v2729_v25, %v8172_v30 }
 0x685   : > { %v2793_v49 = vsel %vm1437_vm11, %v2761_v37, %v8173_v11 }
 0x688   : > { %v3119_v19 = vpop.f32.mrf.mxu2  ;;  %v3068_v28 = vpop.f32.mrf.mxu1 }
 0x689   : > { %v3120_v4 = vadd.f32 %v6888_v48, %v3119_v19  ;;  %v3069_v13 = vadd.f32 %v6888_v48, %v3068_v28  ;;  %v2634_v33 = vpop.permute.xlu0 %2633  ;;  %v2604_v57 = vpop.permute.xlu2 %2603 }
 0x68a   : > { %v2450_v6 = vpop.permute.xlu1 %2449  ;;  %v2923_v20 = vsel %vm2893_vm15, %v2890_v56, %v2634_v33 }
 0x68b   : > { %v3171_v18 = vmax.f32 %v3120_v4, 0.0  ;;  %v3154_v34 = vmax.f32 %v3069_v13, 0.0  ;;  %3339 = vmatmul.msk.f32.gmra.mxu2 %vm2939_vm1, %v2923_v20  ;;  %v2858_v29 = vsel %vm2827_vm14, %v2825_v17, %v2450_v6 }
 0x68d   : > { %3203 = vst.msk [vmem:[%s6908_s23 + $0xb0] sm:$0xff] %vm1240_vm5, %v3171_v18 }
 0x68e   : > { %3186 = vst.msk [vmem:[%s6908_s23 + $0x28] sm:$0xff] %vm1240_vm5, %v3154_v34 }
 0x691   : > { %v2509_v16 = vpop.permute.xlu0 %2508 }
 0x692   : > { %v2636_v43 = vpop.permute.xlu1 %2635  ;;  %v2874_v39 = vsel %vm2860_vm13, %v2841_v0, %v2509_v16 }
 0x693   : > { %v2907_v38 = vsel %vm2893_vm15, %v2874_v39, %v2602_v5  ;;  %v2606_v5 = vpop.permute.xlu2 %2605 }
 0x694   : > { %3323 = vmatmul.msk.f32.gmra.mxu1 %vm2939_vm1, %v2907_v38 }
 0x698   : > { %v3122_v53 = vpop.f32.mrf.mxu2  ;;  %v3071_v61 = vpop.f32.mrf.mxu1 }
 0x699   : > { %v3123_v54 = vadd.f32 %v6888_v48, %v3122_v53  ;;  %v3072_v40 = vadd.f32 %v6888_v48, %v3071_v61  ;;  %v2543_v46 = vpop.permute.xlu0 %2542 }
 0x69a   : > { %v2511_v51 = vpop.permute.xlu1 %2510  ;;  %v2891_v23 = vsel %vm2860_vm13, %v2858_v29, %v2543_v46 }
 0x69b   : > { %v3172_v3 = vmax.f32 %v3123_v54, 0.0  ;;  %v3155_v42 = vmax.f32 %v3072_v40, 0.0  ;;  %v2875_v9 = vsel %vm2860_vm13, %v2842_v35, %v2511_v51  ;;  %v2924_v60 = vsel %vm2893_vm15, %v2891_v23, %v2636_v43 }
 0x69c   : > { %v2908_v45 = vsel %vm2893_vm15, %v2875_v9, %v2604_v57  ;;  %3340 = vmatmul.msk.f32.gmra.mxu2 %vm2939_vm1, %v2924_v60 }
 0x69d   : > { %3204 = vst.msk [vmem:[%s6908_s23 + $0xb8] sm:$0xff] %vm1240_vm5, %v3172_v3  ;;  %3324 = vmatmul.msk.f32.gmra.mxu1 %vm2939_vm1, %v2908_v45 }
 0x69e   : > { %3187 = vst.msk [vmem:[%s6908_s23 + $0x30] sm:$0xff] %vm1240_vm5, %v3155_v42 }
 0x6a1   : > { %v2356_v15 = vpop.permute.xlu0 %2355 }
 0x6a2   : > { %v2826_v7 = vsel %vm2794_vm12, %v2793_v49, %v2356_v15  ;;  %v2513_v62 = vpop.permute.xlu1 %2512 }
 0x6a3   : > { %v2859_v8 = vsel %vm2827_vm14, %v2826_v7, %v2450_v6 }
 0x6a4   : > { %v2892_v1 = vsel %vm2860_vm13, %v2859_v8, %v2543_v46 }
 0x6a5   : > { %v2925_v32 = vsel %vm2893_vm15, %v2892_v1, %v2636_v43 }
 0x6a6   : > { %3341 = vmatmul.msk.f32.gmra.mxu2 %vm2939_vm1, %v2925_v32 }
 0x6a8   : > { %v3125_v41 = vpop.f32.mrf.mxu2  ;;  %v3074_v31 = vpop.f32.mrf.mxu1 }
 0x6a9   : > { %v3126_v21 = vadd.f32 %v6888_v48, %v3125_v41  ;;  %v3075_v27 = vadd.f32 %v6888_v48, %v3074_v31  ;;  %v2420_v55 = vpop.permute.xlu0 %2419 }
 0x6aa   : > { %v2843_v44 = vsel %vm2827_vm14, %v6480_v58, %v2420_v55 }
 0x6ab   : > { %v3173_v19 = vmax.f32 %v3126_v21, 0.0  ;;  %v3156_v28 = vmax.f32 %v3075_v27, 0.0  ;;  %v2876_v4 = vsel %vm2860_vm13, %v2843_v44, %v2513_v62 }
 0x6ac   : > { %v2909_v13 = vsel %vm2893_vm15, %v2876_v4, %v2606_v5 }
 0x6ad   : > { %3205 = vst.msk [vmem:[%s6908_s23 + $0xc0] sm:$0xff] %vm1240_vm5, %v3173_v19  ;;  %3325 = vmatmul.msk.f32.gmra.mxu1 %vm2939_vm1, %v2909_v13 }
 0x6ae   : > { %3188 = vst.msk [vmem:[%s6908_s23 + $0x38] sm:$0xff] %vm1240_vm5, %v3156_v28 }
 0x6b8   : > { %v3128_v33 = vpop.f32.mrf.mxu2  ;;  %v3077_v56 = vpop.f32.mrf.mxu1 }
 0x6b9   : > { %v3129_v58 = vadd.f32 %v6888_v48, %v3128_v33  ;;  %v3078_v6 = vadd.f32 %v6888_v48, %v3077_v56 }
 0x6bb   : > { %v3174_v20 = vmax.f32 %v3129_v58, 0.0  ;;  %v3157_v18 = vmax.f32 %v3078_v6, 0.0 }
 0x6bd   : > { %3206 = vst.msk [vmem:[%s6908_s23 + $0xc8] sm:$0xff] %vm1240_vm5, %v3174_v20 }
 0x6be   : > { %3189 = vst.msk [vmem:[%s6908_s23 + $0x40] sm:$0xff] %vm1240_vm5, %v3157_v18 }
 0x6c2   : > { %v3080_v34 = vpop.f32.mrf.mxu1 }
 0x6c3   : > { %v3081_v63 = vadd.f32 %v6888_v48, %v3080_v34 }
 0x6c5   : > { %v3158_v0 = vmax.f32 %v3081_v63, 0.0 }
 0x6c7   : > { %3190 = vst.msk [vmem:[%s6908_s23 + $0x48] sm:$0xff] %vm1240_vm5, %v3158_v0 }
 0x6d6   : > { %v3131_v50 = vpop.f32.mrf.mxu2 }
 0x6d7   : > { %v3132_v16 = vadd.f32 %v6888_v48, %v3131_v50 }
 0x6d9   : > { %v3175_v43 = vmax.f32 %v3132_v16, 0.0  ;;  %v3083_v39 = vpop.f32.mrf.mxu1 }
 0x6da   : > { %v3084_v38 = vadd.f32 %v6888_v48, %v3083_v39 }
 0x6db   : > { %3207 = vst.msk [vmem:[%s6908_s23 + $0xd0] sm:$0xff] %vm1240_vm5, %v3175_v43 }
 0x6dc   : > { %v3159_v36 = vmax.f32 %v3084_v38, 0.0 }
 0x6de   : > { %3191 = vst.msk [vmem:[%s6908_s23 + $0x50] sm:$0xff] %vm1240_vm5, %v3159_v36 }
 0x6e7   : > { %v3134_v47 = vpop.f32.mrf.mxu2 }
 0x6e8   : > { %v3135_v2 = vadd.f32 %v6888_v48, %v3134_v47 }
 0x6ea   : > { %v3176_v10 = vmax.f32 %v3135_v2, 0.0 }
 0x6ec   : > { %3208 = vst.msk [vmem:[%s6908_s23 + $0xd8] sm:$0xff] %vm1240_vm5, %v3176_v10 }
 0x6f0   : > { %v3086_v12 = vpop.f32.mrf.mxu1 }
 0x6f1   : > { %v3087_v22 = vadd.f32 %v6888_v48, %v3086_v12  ;;  %v3137_v26 = vpop.f32.mrf.mxu2 }
 0x6f2   : > { %v3138_v14 = vadd.f32 %v6888_v48, %v3137_v26 }
 0x6f3   : > { %v3160_v17 = vmax.f32 %v3087_v22, 0.0 }
 0x6f4   : > { %v3177_v53 = vmax.f32 %v3138_v14, 0.0 }
 0x6f5   : > { %3192 = vst.msk [vmem:[%s6908_s23 + $0x58] sm:$0xff] %vm1240_vm5, %v3160_v17 }
 0x6f6   : > { %3209 = vst.msk [vmem:[%s6908_s23 + $0xe0] sm:$0xff] %vm1240_vm5, %v3177_v53 }
 0x6fa   : > { %v3089_v61 = vpop.f32.mrf.mxu1 }
 0x6fb   : > { %v3090_v29 = vadd.f32 %v6888_v48, %v3089_v61 }
 0x6fd   : > { %v3161_v54 = vmax.f32 %v3090_v29, 0.0 }
 0x6ff   : > { %3193 = vst.msk [vmem:[%s6908_s23 + $0x60] sm:$0xff] %vm1240_vm5, %v3161_v54 }
 0x70e   : > { %v3140_v40 = vpop.f32.mrf.mxu2 }
 0x70f   : > { %v3141_v46 = vadd.f32 %v6888_v48, %v3140_v40 }
 0x711   : > { %v3178_v35 = vmax.f32 %v3141_v46, 0.0  ;;  %v3092_v51 = vpop.f32.mrf.mxu1 }
 0x712   : > { %v3093_v23 = vadd.f32 %v6888_v48, %v3092_v51 }
 0x713   : > { %3210 = vst.msk [vmem:[%s6908_s23 + $0xe8] sm:$0xff] %vm1240_vm5, %v3178_v35 }
 0x714   : > { %v3162_v57 = vmax.f32 %v3093_v23, 0.0 }
 0x716   : > { %3194 = vst.msk [vmem:[%s6908_s23 + $0x68] sm:$0xff] %vm1240_vm5, %v3162_v57 }
 0x71a   : > { %v3095_v3 = vpop.f32.mrf.mxu1 }
 0x71b   : > { %v3096_v42 = vadd.f32 %v6888_v48, %v3095_v3 }
 0x71d   : > { %v3163_v9 = vmax.f32 %v3096_v42, 0.0 }
 0x71f   : > { %3195 = vst.msk [vmem:[%s6908_s23 + $0x70] sm:$0xff] %vm1240_vm5, %v3163_v9  ;;  %v3143_v60 = vpop.f32.mrf.mxu2 }
 0x720   : > { %v3144_v45 = vadd.f32 %v6888_v48, %v3143_v60 }
 0x722   : > { %v3179_v24 = vmax.f32 %v3144_v45, 0.0 }
 0x724   : > { %3211 = vst.msk [vmem:[%s6908_s23 + $0xf0] sm:$0xff] %vm1240_vm5, %v3179_v24 }
 0x729   : > { %v3146_v52 = vpop.f32.mrf.mxu2 }
 0x72a   : > { %v3147_v59 = vadd.f32 %v6888_v48, %v3146_v52  ;;  %v3098_v25 = vpop.f32.mrf.mxu1 }
 0x72b   : > { %v3099_v30 = vadd.f32 %v6888_v48, %v3098_v25 }
 0x72c   : > { %v3180_v37 = vmax.f32 %v3147_v59, 0.0 }
 0x72d   : > { %v3164_v11 = vmax.f32 %v3099_v30, 0.0 }
 0x72e   : > { %3212 = vst.msk [vmem:[%s6908_s23 + $0xf8] sm:$0xff] %vm1240_vm5, %v3180_v37 }
 0x72f   : > { %3196 = vst.msk [vmem:[%s6908_s23 + $0x78] sm:$0xff] %vm1240_vm5, %v3164_v11 }
 0x730 PF: > { %s15_s18 = sadd.s32 1, %s3394_s18  }
 0x731   : > { %p12_p4 = scmp.ge.s32.totalorder %s15_s18, 4  }
 0x733   :  { %14 = sbr.rel (!%p12_p4) target bundleno = 1 (0x1), region = 70 }

</bundles_post_ra>
